<compile_context>
chip_gen: v7x
topology: tpu7x:2x2x1
jax: 0.10.0
libtpu: 0.0.40
codegen_flags: <defaults>
</compile_context>

<pallas_src>
import math

import jax
import jax.numpy as jnp
from jax.experimental import pallas as pl
from jax.experimental.pallas import tpu as pltpu

# ---------------- small deterministic config ----------------
BATCH = 2
CHANNELS = 3
IMG = 16
PATCH = 4
NUM_PATCHES = (IMG // PATCH) ** 2          # 16
SEQ = NUM_PATCHES + 1                      # 17 (CLS prepended)
SEQ_PAD = 24                               # query rows padded to 8-sublane mult
KPAD = 32                                  # per-head key block (power of two)
HIDDEN = 32
NUM_HEADS = 4
HEAD_DIM = HIDDEN // NUM_HEADS             # 8
KEYS = NUM_HEADS * KPAD                    # 128 packed key lanes (all heads)
FFN = 4 * HIDDEN                           # 128
NUM_LAYERS = 2
NUM_CLASSES = 2
PATCH_DIM = CHANNELS * PATCH * PATCH       # 48
ROWS = BATCH * SEQ_PAD                     # 48
LN_EPS = 1e-5
NEG_INF = -1e30
OUT_PAD = 128                              # lane-dense logits width
KPAD_SHIFT = KPAD.bit_length() - 1         # 5
HEAD_SHIFT = HEAD_DIM.bit_length() - 1     # 3


# ---------------- in-kernel helpers ----------------
def _gelu(x):
    # TODO(synk): PyTorch nn.GELU defaults to the exact erf form; the tanh
    # approximation is used here for robust Mosaic lowering (~1e-3 deviation).
    c = math.sqrt(2.0 / math.pi)
    return 0.5 * x * (1.0 + jnp.tanh(c * (x + 0.044715 * x * x * x)))


# ---------------- fused whole-model kernel ----------------
def _vit_fused_kernel(patches_ref, base_ref, patch_w_ref, layer_w_ref,
                      layer_vec_ref, head_w_ref, head_vec_ref, o_ref):
    f32, bf16 = jnp.float32, jnp.bfloat16
    H3 = 3 * HIDDEN

    ones_col = jnp.ones((HIDDEN, 1), f32)

    def layer_norm(x, g, b):
        # fused one-pass stats; reductions run on the (otherwise idle) MXU,
        # keeping the XLU/VPU free.  var = E[x^2] - E[x]^2, all f32.
        s1 = jnp.dot(x, ones_col, preferred_element_type=f32)
        s2 = jnp.dot(x * x, ones_col, preferred_element_type=f32)
        mu = s1 * (1.0 / HIDDEN)
        var = s2 * (1.0 / HIDDEN) - mu * mu
        return (x - mu) * jax.lax.rsqrt(var + LN_EPS) * g + b

    # ---- constant attention-layout masks (shift/and only -> cheap, lowers) ----
    # block-diagonal K/V layout: head(key row) == head(hidden lane)
    rk = jax.lax.broadcasted_iota(jnp.int32, (KEYS, HIDDEN), 0)
    ch = jax.lax.broadcasted_iota(jnp.int32, (KEYS, HIDDEN), 1)
    head_mask = (jnp.right_shift(rk, KPAD_SHIFT)
                 == jnp.right_shift(ch, HEAD_SHIFT)).astype(f32)     # (128, 32)
    # same-head indicator: per-head softmax denominators via one matmul
    ki = jax.lax.broadcasted_iota(jnp.int32, (KEYS, KEYS), 0)
    kj = jax.lax.broadcasted_iota(jnp.int32, (KEYS, KEYS), 1)
    blk_ind = (jnp.right_shift(ki, KPAD_SHIFT)
               == jnp.right_shift(kj, KPAD_SHIFT)).astype(f32)       # (128, 128)
    # padded key positions (>= SEQ within each 32-key block) -> -inf bias
    jpos = jax.lax.broadcasted_iota(jnp.int32, (1, KEYS), 1)
    key_bias = jnp.where(jnp.bitwise_and(jpos, KPAD - 1) < SEQ,
                         0.0, NEG_INF).astype(f32)                   # (1, 128)

    # ---- patch embedding + CLS token + learned pos-emb (precomputed base) ----
    x = jnp.dot(patches_ref[...].astype(bf16), patch_w_ref[...],
                preferred_element_type=f32) + base_ref[...]          # (48,32) f32

    scale = 1.0 / math.sqrt(HEAD_DIM)
    kv_zero = jnp.zeros((BATCH, KPAD - SEQ_PAD, HIDDEN), f32)

    for l in range(NUM_LAYERS):                                      # static unroll
        lw = layer_w_ref.at[l]                                       # (224,128) bf16 view
        lv = layer_vec_ref.at[l]                                     # (8,128)  f32 view
        wqkv = lw[0:HIDDEN, 0:H3]                                    # (32, 96)
        wo = lw[HIDDEN:2 * HIDDEN, 0:HIDDEN]                         # (32, 32)
        w1 = lw[2 * HIDDEN:3 * HIDDEN, :]                            # (32, 128)
        w2 = lw[3 * HIDDEN:3 * HIDDEN + FFN, 0:HIDDEN]               # (128, 32)
        ln1_g = lv[0:1, 0:HIDDEN]
        ln1_b = lv[1:2, 0:HIDDEN]
        bqkv = lv[2:3, 0:H3]
        bo = lv[3:4, 0:HIDDEN]
        ln2_g = lv[4:5, 0:HIDDEN]
        ln2_b = lv[5:6, 0:HIDDEN]
        b1 = lv[6:7, :]
        b2 = lv[7:8, 0:HIDDEN]

        # --- pre-LN fused-QKV self-attention, all heads packed in lanes ---
        h = layer_norm(x, ln1_g, ln1_b)
        qkv = jnp.dot(h.astype(bf16), wqkv,
                      preferred_element_type=f32) + bqkv             # (48,96) f32
        q3 = (qkv[:, 0:HIDDEN] * scale).reshape(BATCH, SEQ_PAD, HIDDEN)
        k3 = qkv[:, HIDDEN:2 * HIDDEN].reshape(BATCH, SEQ_PAD, HIDDEN)
        v3 = qkv[:, 2 * HIDDEN:H3].reshape(BATCH, SEQ_PAD, HIDDEN)
        # block-diagonal K/V: head h owns key rows [h*KPAD, (h+1)*KPAD)
        k3 = jnp.concatenate([k3, kv_zero], axis=1)                  # (2,32,32)
        v3 = jnp.concatenate([v3, kv_zero], axis=1)
        kb = jnp.concatenate([k3] * NUM_HEADS, axis=1) * head_mask   # (2,128,32)
        vb = jnp.concatenate([v3] * NUM_HEADS, axis=1) * head_mask

        # all-head scores in one lane-dense (48,128) slab
        s = jnp.einsum("bqc,bkc->bqk", q3.astype(bf16), kb.astype(bf16),
                       preferred_element_type=f32)                   # (2,24,128)
        s = s.reshape(ROWS, KEYS) + key_bias
        # subtracting the row max (over all heads) is softmax-invariant within
        # each head block; scores are O(1) here so no per-head underflow risk.
        p = jnp.exp(s - jnp.max(s, axis=-1, keepdims=True))
        denom = jnp.dot(p, blk_ind, preferred_element_type=f32)      # per-head sums (MXU)
        p = p * pl.reciprocal(denom, approx=True)
        ctx = jnp.einsum("bqk,bkc->bqc",
                         p.reshape(BATCH, SEQ_PAD, KEYS).astype(bf16),
                         vb.astype(bf16),
                         preferred_element_type=f32)                 # (2,24,32)
        attn = jnp.dot(ctx.reshape(ROWS, HIDDEN).astype(bf16), wo,
                       preferred_element_type=f32) + bo
        x = x + attn

        # --- pre-LN MLP (GELU) ---
        h2 = layer_norm(x, ln2_g, ln2_b)
        f = jnp.dot(h2.astype(bf16), w1, preferred_element_type=f32) + b1
        f = _gelu(f)
        f = jnp.dot(f.astype(bf16), w2, preferred_element_type=f32) + b2
        x = x + f

    # --- final LN on CLS token -> BertPooler (dense + tanh) -> classifier ---
    ln_f_g = head_vec_ref[0:1, 0:HIDDEN]
    ln_f_b = head_vec_ref[1:2, 0:HIDDEN]
    pool_b = head_vec_ref[2:3, :]
    cls_b = head_vec_ref[3:4, :]
    pool_w = head_w_ref[0:HIDDEN, :]                  # (32,128), lanes [0,32) live
    cls_w = head_w_ref[HIDDEN:2 * HIDDEN, :]          # (32,128), lanes [0,2)  live

    cls_tok = x.reshape(BATCH, SEQ_PAD, HIDDEN)[:, 0, :]             # (2,32)
    cls_tok = layer_norm(cls_tok, ln_f_g, ln_f_b)
    pooled = jnp.tanh(jnp.dot(cls_tok.astype(bf16), pool_w,
                              preferred_element_type=f32) + pool_b)  # (2,128)
    o_ref[...] = jnp.dot(pooled[:, 0:HIDDEN].astype(bf16), cls_w,
                         preferred_element_type=f32) + cls_b         # (2,128)


# ---------------- wrapper (per-call plumbing: patchify only) ----------------
def _zero_map(ndim):
    return lambda i: (0,) * ndim


def patchify(img):
    # NCHW -> (B, N, C*ps*ps), flattened in (c, kh, kw) order to match Conv2d.
    b, c, hh, ww = img.shape
    nh, nw = hh // PATCH, ww // PATCH
    x = img.reshape(b, c, nh, PATCH, nw, PATCH)
    x = x.transpose(0, 2, 4, 1, 3, 5)            # (b, nh, nw, c, ph, pw)
    return x.reshape(b, nh * nw, c * PATCH * PATCH)


def vit_classification_forward(image, packed):
    # image-dependent layout plumbing: patchify + pad rows to SEQ_PAD with a
    # zero CLS slot and zero pad rows (their matmul output is zero; the
    # precomputed `base` slab carries cls_token/pos_emb/patch_b per row).
    p = patchify(image)                                        # (B, 16, 48)
    p = jnp.pad(p, ((0, 0), (1, SEQ_PAD - 1 - NUM_PATCHES), (0, 0)))
    patches_pad = p.reshape(ROWS, PATCH_DIM)                   # (48, 48)

    args = (patches_pad, packed["base"], packed["patch_w"], packed["layer_w"],
            packed["layer_vec"], packed["head_w"], packed["head_vec"])
    out = pl.pallas_call(
        _vit_fused_kernel,
        out_shape=jax.ShapeDtypeStruct((BATCH, OUT_PAD), jnp.float32),
        grid=(1,),
        in_specs=[pl.BlockSpec(a.shape, _zero_map(a.ndim)) for a in args],
        out_specs=pl.BlockSpec((BATCH, OUT_PAD), lambda i: (0, 0)),
        compiler_params=pltpu.CompilerParams(
            dimension_semantics=("arbitrary",)),
    )(*args)
    return out[:, :NUM_CLASSES]


# ---------------- parameters ----------------
def init_params(key):
    keys = iter(jax.random.split(key, 64))

    def nrm(shape):
        return 0.02 * jax.random.normal(next(keys), shape, jnp.float32)

    def zeros(shape):
        return jnp.zeros(shape, jnp.float32)

    def ones(shape):
        return jnp.ones(shape, jnp.float32)

    def stack(fn):
        return jnp.stack([fn() for _ in range(NUM_LAYERS)], axis=0)

    return {
        "patch_w": nrm((PATCH_DIM, HIDDEN)),      # Conv2d(C,H,ps,ps) as matmul
        "patch_b": zeros((1, HIDDEN)),
        "cls_token": nrm((1, HIDDEN)),
        "pos_emb": nrm((SEQ, HIDDEN)),
        "ln1_g": stack(lambda: ones((1, HIDDEN))),
        "ln1_b": stack(lambda: zeros((1, HIDDEN))),
        "wqkv": stack(lambda: nrm((HIDDEN, 3 * HIDDEN))),
        "bqkv": stack(lambda: zeros((1, 3 * HIDDEN))),
        "wo": stack(lambda: nrm((HIDDEN, HIDDEN))),
        "bo": stack(lambda: zeros((1, HIDDEN))),
        "ln2_g": stack(lambda: ones((1, HIDDEN))),
        "ln2_b": stack(lambda: zeros((1, HIDDEN))),
        "w1": stack(lambda: nrm((HIDDEN, FFN))),
        "b1": stack(lambda: zeros((1, FFN))),
        "w2": stack(lambda: nrm((FFN, HIDDEN))),
        "b2": stack(lambda: zeros((1, HIDDEN))),
        "ln_f_g": ones((1, HIDDEN)), "ln_f_b": zeros((1, HIDDEN)),
        "pool_w": nrm((HIDDEN, HIDDEN)), "pool_b": zeros((1, HIDDEN)),
        "cls_w": nrm((HIDDEN, NUM_CLASSES)), "cls_b": zeros((1, NUM_CLASSES)),
    }


def _pad_lanes(a, width=128):
    return jnp.pad(a, ((0, 0), (0, width - a.shape[-1])))


def pack_params(p):
    """One-time packing of logical params into a few DMA-friendly slabs."""
    # additive per-row base: row0 = cls_token + pos_emb[0]; patch rows =
    # pos_emb[1:] + patch_b; pad rows 0.  Batch-tiled once here (not per call).
    base_rows = jnp.concatenate([
        p["cls_token"] + p["pos_emb"][0:1],
        p["pos_emb"][1:] + p["patch_b"],
        jnp.zeros((SEQ_PAD - SEQ, HIDDEN), jnp.float32)], axis=0)
    base = jnp.tile(base_rows, (BATCH, 1))                       # (48, 32) f32

    # per-layer weight slab (L, 224, 128) bf16:
    #   rows [0,32)=Wqkv(lanes 0:96) [32,64)=Wo [64,96)=W1 [96,224)=W2
    layer_w = jnp.stack([
        jnp.concatenate([
            _pad_lanes(p["wqkv"][l]),
            _pad_lanes(p["wo"][l]),
            p["w1"][l],
            _pad_lanes(p["w2"][l]),
        ], axis=0) for l in range(NUM_LAYERS)], axis=0).astype(jnp.bfloat16)

    # per-layer vector slab (L, 8, 128) f32:
    #   rows: ln1_g, ln1_b, bqkv, bo, ln2_g, ln2_b, b1, b2
    layer_vec = jnp.stack([
        jnp.concatenate([
            _pad_lanes(p["ln1_g"][l]), _pad_lanes(p["ln1_b"][l]),
            _pad_lanes(p["bqkv"][l]), _pad_lanes(p["bo"][l]),
            _pad_lanes(p["ln2_g"][l]), _pad_lanes(p["ln2_b"][l]),
            p["b1"][l], _pad_lanes(p["b2"][l]),
        ], axis=0) for l in range(NUM_LAYERS)], axis=0)          # (L, 8, 128)

    head_w = jnp.concatenate(
        [_pad_lanes(p["pool_w"]), _pad_lanes(p["cls_w"])], axis=0
    ).astype(jnp.bfloat16)                                       # (64, 128)

    head_vec = jnp.concatenate([
        _pad_lanes(p["ln_f_g"]), _pad_lanes(p["ln_f_b"]),
        _pad_lanes(p["pool_b"]), _pad_lanes(p["cls_b"]),
        jnp.zeros((4, 128), jnp.float32)], axis=0)               # (8, 128)

    return {
        "base": base,
        "patch_w": p["patch_w"].astype(jnp.bfloat16),
        "layer_w": layer_w,
        "layer_vec": layer_vec,
        "head_w": head_w,
        "head_vec": head_vec,
    }


if __name__ == "__main__":
    key = jax.random.PRNGKey(0)
    pkey, xkey = jax.random.split(key)
    params = init_params(pkey)
    packed = pack_params(params)
    image = jax.random.normal(xkey, (BATCH, CHANNELS, IMG, IMG), jnp.float32)

    logits = jax.jit(vit_classification_forward)(image, packed)
    jax.block_until_ready(logits)
    assert logits.shape == (BATCH, NUM_CLASSES)
    assert bool(jnp.all(jnp.isfinite(logits)))
    print("KERNEL_OK")
</pallas_src>

<mosaic_0001>
module attributes {stable_mosaic.version = 11 : i64} {
  func.func @_vit_fused_kernel(%arg0: i32, %arg1: memref<48x48xf32, #tpu.memory_space<vmem>>, %arg2: memref<48x32xf32, #tpu.memory_space<vmem>>, %arg3: memref<48x32xbf16, #tpu.memory_space<vmem>>, %arg4: memref<2x224x128xbf16, #tpu.memory_space<vmem>>, %arg5: memref<2x8x128xf32, #tpu.memory_space<vmem>>, %arg6: memref<64x128xbf16, #tpu.memory_space<vmem>>, %arg7: memref<8x128xf32, #tpu.memory_space<vmem>>, %arg8: memref<2x128xf32, #tpu.memory_space<vmem>>) attributes {dimension_semantics = [#tpu.dimension_semantics<arbitrary>], iteration_bounds = array<i64: 1>, scalar_prefetch = 0 : i64, scratch_operands = 0 : i64, tpu.core_type = #tpu.core_type<tc>, window_params = [{pipeline_mode = #tpu.pipeline_mode<synchronous>, transform_indices = @transform_0, window_bounds = array<i64: 48, 48>}, {pipeline_mode = #tpu.pipeline_mode<synchronous>, transform_indices = @transform_1, window_bounds = array<i64: 48, 32>}, {pipeline_mode = #tpu.pipeline_mode<synchronous>, transform_indices = @transform_2, window_bounds = array<i64: 48, 32>}, {pipeline_mode = #tpu.pipeline_mode<synchronous>, transform_indices = @transform_3, window_bounds = array<i64: 2, 224, 128>}, {pipeline_mode = #tpu.pipeline_mode<synchronous>, transform_indices = @transform_4, window_bounds = array<i64: 2, 8, 128>}, {pipeline_mode = #tpu.pipeline_mode<synchronous>, transform_indices = @transform_5, window_bounds = array<i64: 64, 128>}, {pipeline_mode = #tpu.pipeline_mode<synchronous>, transform_indices = @transform_6, window_bounds = array<i64: 8, 128>}, {pipeline_mode = #tpu.pipeline_mode<synchronous>, transform_indices = @transform_7, window_bounds = array<i64: 2, 128>}]} {
    %cst = arith.constant 1.000000e+00 : f32
    %0 = vector.broadcast %cst : f32 to vector<32x1xf32>
    %1 = tpu.iota {dimensions = array<i32: 0>} : vector<128x32xi32>
    %2 = tpu.iota {dimensions = array<i32: 1>} : vector<128x32xi32>
    %c5_i32 = arith.constant 5 : i32
    %3 = vector.broadcast %c5_i32 : i32 to vector<128x32xi32>
    %4 = arith.shrsi %1, %3 : vector<128x32xi32>
    %c3_i32 = arith.constant 3 : i32
    %5 = vector.broadcast %c3_i32 : i32 to vector<128x32xi32>
    %6 = arith.shrsi %2, %5 : vector<128x32xi32>
    %7 = arith.cmpi eq, %4, %6 : vector<128x32xi32>
    %8 = arith.extui %7 : vector<128x32xi1> to vector<128x32xi32>
    %9 = arith.sitofp %8 : vector<128x32xi32> to vector<128x32xf32>
    %10 = tpu.iota {dimensions = array<i32: 0>} : vector<128x128xi32>
    %11 = tpu.iota {dimensions = array<i32: 1>} : vector<128x128xi32>
    %c5_i32_0 = arith.constant 5 : i32
    %12 = vector.broadcast %c5_i32_0 : i32 to vector<128x128xi32>
    %13 = arith.shrsi %10, %12 : vector<128x128xi32>
    %c5_i32_1 = arith.constant 5 : i32
    %14 = vector.broadcast %c5_i32_1 : i32 to vector<128x128xi32>
    %15 = arith.shrsi %11, %14 : vector<128x128xi32>
    %16 = arith.cmpi eq, %13, %15 : vector<128x128xi32>
    %17 = arith.extui %16 : vector<128x128xi1> to vector<128x128xi32>
    %18 = arith.sitofp %17 : vector<128x128xi32> to vector<128x128xf32>
    %19 = tpu.iota {dimensions = array<i32: 1>} : vector<1x128xi32>
    %c31_i32 = arith.constant 31 : i32
    %20 = vector.broadcast %c31_i32 : i32 to vector<1x128xi32>
    %21 = arith.andi %19, %20 : vector<1x128xi32>
    %c17_i32 = arith.constant 17 : i32
    %22 = vector.broadcast %c17_i32 : i32 to vector<1x128xi32>
    %23 = arith.cmpi slt, %21, %22 : vector<1x128xi32>
    %cst_2 = arith.constant 0.000000e+00 : f32
    %cst_3 = arith.constant -1.000000e+30 : f32
    %24 = vector.broadcast %cst_2 : f32 to vector<1x128xf32>
    %25 = vector.broadcast %cst_3 : f32 to vector<1x128xf32>
    %26 = arith.select %23, %24, %25 : vector<1x128xi1>, vector<1x128xf32>
    %c0 = arith.constant 0 : index
    %c0_4 = arith.constant 0 : index
    %27 = vector.load %arg1[%c0, %c0_4] : memref<48x48xf32, #tpu.memory_space<vmem>>, vector<48x48xf32>
    %28 = arith.truncf %27 : vector<48x48xf32> to vector<48x48xbf16>
    %c0_5 = arith.constant 0 : index
    %c0_6 = arith.constant 0 : index
    %29 = vector.load %arg3[%c0_5, %c0_6] : memref<48x32xbf16, #tpu.memory_space<vmem>>, vector<48x32xbf16>
    %cst_7 = arith.constant dense<0.000000e+00> : vector<48x32xf32>
    %30 = tpu.matmul %28, %29, %cst_7 {dimension_numbers = #tpu.dot_dimension_numbers<[1], [0], [0], [1], [0, 0, 1, 1], [], []>} : vector<48x48xbf16>, vector<48x32xbf16>, vector<48x32xf32> -> vector<48x32xf32>
    %c0_8 = arith.constant 0 : index
    %c0_9 = arith.constant 0 : index
    %31 = vector.load %arg2[%c0_8, %c0_9] : memref<48x32xf32, #tpu.memory_space<vmem>>, vector<48x32xf32>
    %32 = arith.addf %30, %31 : vector<48x32xf32>
    %cst_10 = arith.constant 0.000000e+00 : f32
    %33 = vector.broadcast %cst_10 : f32 to vector<2x8x32xf32>
    %c0_i32 = arith.constant 0 : i32
    %c0_i32_11 = arith.constant 0 : i32
    %c0_i32_12 = arith.constant 0 : i32
    %34 = tpu.memref_slice %arg4[%c0_i32, %c0_i32_11, %c0_i32_12] : memref<2x224x128xbf16, #tpu.memory_space<vmem>> -> memref<1x224x128xbf16, #tpu.memory_space<vmem>>
    %35 = tpu.memref_squeeze %34 : memref<1x224x128xbf16, #tpu.memory_space<vmem>> -> memref<224x128xbf16, #tpu.memory_space<vmem>>
    %c0_13 = arith.constant 0 : index
    %c0_14 = arith.constant 0 : index
    %36 = vector.load %35[%c0_13, %c0_14] : memref<224x128xbf16, #tpu.memory_space<vmem>>, vector<32x96xbf16>
    %c0_i32_15 = arith.constant 0 : i32
    %c0_i32_16 = arith.constant 0 : i32
    %c0_i32_17 = arith.constant 0 : i32
    %37 = tpu.memref_slice %arg4[%c0_i32_15, %c0_i32_16, %c0_i32_17] : memref<2x224x128xbf16, #tpu.memory_space<vmem>> -> memref<1x224x128xbf16, #tpu.memory_space<vmem>>
    %38 = tpu.memref_squeeze %37 : memref<1x224x128xbf16, #tpu.memory_space<vmem>> -> memref<224x128xbf16, #tpu.memory_space<vmem>>
    %c32 = arith.constant 32 : index
    %c0_18 = arith.constant 0 : index
    %39 = vector.load %38[%c32, %c0_18] : memref<224x128xbf16, #tpu.memory_space<vmem>>, vector<32x32xbf16>
    %c0_i32_19 = arith.constant 0 : i32
    %c0_i32_20 = arith.constant 0 : i32
    %c0_i32_21 = arith.constant 0 : i32
    %40 = tpu.memref_slice %arg4[%c0_i32_19, %c0_i32_20, %c0_i32_21] : memref<2x224x128xbf16, #tpu.memory_space<vmem>> -> memref<1x224x128xbf16, #tpu.memory_space<vmem>>
    %41 = tpu.memref_squeeze %40 : memref<1x224x128xbf16, #tpu.memory_space<vmem>> -> memref<224x128xbf16, #tpu.memory_space<vmem>>
    %c64 = arith.constant 64 : index
    %c0_22 = arith.constant 0 : index
    %42 = vector.load %41[%c64, %c0_22] : memref<224x128xbf16, #tpu.memory_space<vmem>>, vector<32x128xbf16>
    %c0_i32_23 = arith.constant 0 : i32
    %c0_i32_24 = arith.constant 0 : i32
    %c0_i32_25 = arith.constant 0 : i32
    %43 = tpu.memref_slice %arg4[%c0_i32_23, %c0_i32_24, %c0_i32_25] : memref<2x224x128xbf16, #tpu.memory_space<vmem>> -> memref<1x224x128xbf16, #tpu.memory_space<vmem>>
    %44 = tpu.memref_squeeze %43 : memref<1x224x128xbf16, #tpu.memory_space<vmem>> -> memref<224x128xbf16, #tpu.memory_space<vmem>>
    %c96 = arith.constant 96 : index
    %c0_26 = arith.constant 0 : index
    %45 = vector.load %44[%c96, %c0_26] : memref<224x128xbf16, #tpu.memory_space<vmem>>, vector<128x32xbf16>
    %c0_i32_27 = arith.constant 0 : i32
    %c0_i32_28 = arith.constant 0 : i32
    %c0_i32_29 = arith.constant 0 : i32
    %46 = tpu.memref_slice %arg5[%c0_i32_27, %c0_i32_28, %c0_i32_29] : memref<2x8x128xf32, #tpu.memory_space<vmem>> -> memref<1x8x128xf32, #tpu.memory_space<vmem>>
    %47 = tpu.memref_squeeze %46 : memref<1x8x128xf32, #tpu.memory_space<vmem>> -> memref<8x128xf32, #tpu.memory_space<vmem>>
    %c0_30 = arith.constant 0 : index
    %c0_31 = arith.constant 0 : index
    %48 = vector.load %47[%c0_30, %c0_31] : memref<8x128xf32, #tpu.memory_space<vmem>>, vector<1x32xf32>
    %c0_i32_32 = arith.constant 0 : i32
    %c0_i32_33 = arith.constant 0 : i32
    %c0_i32_34 = arith.constant 0 : i32
    %49 = tpu.memref_slice %arg5[%c0_i32_32, %c0_i32_33, %c0_i32_34] : memref<2x8x128xf32, #tpu.memory_space<vmem>> -> memref<1x8x128xf32, #tpu.memory_space<vmem>>
    %50 = tpu.memref_squeeze %49 : memref<1x8x128xf32, #tpu.memory_space<vmem>> -> memref<8x128xf32, #tpu.memory_space<vmem>>
    %c1 = arith.constant 1 : index
    %c0_35 = arith.constant 0 : index
    %51 = vector.load %50[%c1, %c0_35] : memref<8x128xf32, #tpu.memory_space<vmem>>, vector<1x32xf32>
    %c0_i32_36 = arith.constant 0 : i32
    %c0_i32_37 = arith.constant 0 : i32
    %c0_i32_38 = arith.constant 0 : i32
    %52 = tpu.memref_slice %arg5[%c0_i32_36, %c0_i32_37, %c0_i32_38] : memref<2x8x128xf32, #tpu.memory_space<vmem>> -> memref<1x8x128xf32, #tpu.memory_space<vmem>>
    %53 = tpu.memref_squeeze %52 : memref<1x8x128xf32, #tpu.memory_space<vmem>> -> memref<8x128xf32, #tpu.memory_space<vmem>>
    %c2 = arith.constant 2 : index
    %c0_39 = arith.constant 0 : index
    %54 = vector.load %53[%c2, %c0_39] : memref<8x128xf32, #tpu.memory_space<vmem>>, vector<1x96xf32>
    %c0_i32_40 = arith.constant 0 : i32
    %c0_i32_41 = arith.constant 0 : i32
    %c0_i32_42 = arith.constant 0 : i32
    %55 = tpu.memref_slice %arg5[%c0_i32_40, %c0_i32_41, %c0_i32_42] : memref<2x8x128xf32, #tpu.memory_space<vmem>> -> memref<1x8x128xf32, #tpu.memory_space<vmem>>
    %56 = tpu.memref_squeeze %55 : memref<1x8x128xf32, #tpu.memory_space<vmem>> -> memref<8x128xf32, #tpu.memory_space<vmem>>
    %c3 = arith.constant 3 : index
    %c0_43 = arith.constant 0 : index
    %57 = vector.load %56[%c3, %c0_43] : memref<8x128xf32, #tpu.memory_space<vmem>>, vector<1x32xf32>
    %c0_i32_44 = arith.constant 0 : i32
    %c0_i32_45 = arith.constant 0 : i32
    %c0_i32_46 = arith.constant 0 : i32
    %58 = tpu.memref_slice %arg5[%c0_i32_44, %c0_i32_45, %c0_i32_46] : memref<2x8x128xf32, #tpu.memory_space<vmem>> -> memref<1x8x128xf32, #tpu.memory_space<vmem>>
    %59 = tpu.memref_squeeze %58 : memref<1x8x128xf32, #tpu.memory_space<vmem>> -> memref<8x128xf32, #tpu.memory_space<vmem>>
    %c4 = arith.constant 4 : index
    %c0_47 = arith.constant 0 : index
    %60 = vector.load %59[%c4, %c0_47] : memref<8x128xf32, #tpu.memory_space<vmem>>, vector<1x32xf32>
    %c0_i32_48 = arith.constant 0 : i32
    %c0_i32_49 = arith.constant 0 : i32
    %c0_i32_50 = arith.constant 0 : i32
    %61 = tpu.memref_slice %arg5[%c0_i32_48, %c0_i32_49, %c0_i32_50] : memref<2x8x128xf32, #tpu.memory_space<vmem>> -> memref<1x8x128xf32, #tpu.memory_space<vmem>>
    %62 = tpu.memref_squeeze %61 : memref<1x8x128xf32, #tpu.memory_space<vmem>> -> memref<8x128xf32, #tpu.memory_space<vmem>>
    %c5 = arith.constant 5 : index
    %c0_51 = arith.constant 0 : index
    %63 = vector.load %62[%c5, %c0_51] : memref<8x128xf32, #tpu.memory_space<vmem>>, vector<1x32xf32>
    %c0_i32_52 = arith.constant 0 : i32
    %c0_i32_53 = arith.constant 0 : i32
    %c0_i32_54 = arith.constant 0 : i32
    %64 = tpu.memref_slice %arg5[%c0_i32_52, %c0_i32_53, %c0_i32_54] : memref<2x8x128xf32, #tpu.memory_space<vmem>> -> memref<1x8x128xf32, #tpu.memory_space<vmem>>
    %65 = tpu.memref_squeeze %64 : memref<1x8x128xf32, #tpu.memory_space<vmem>> -> memref<8x128xf32, #tpu.memory_space<vmem>>
    %c6 = arith.constant 6 : index
    %c0_55 = arith.constant 0 : index
    %66 = vector.load %65[%c6, %c0_55] : memref<8x128xf32, #tpu.memory_space<vmem>>, vector<1x128xf32>
    %c0_i32_56 = arith.constant 0 : i32
    %c0_i32_57 = arith.constant 0 : i32
    %c0_i32_58 = arith.constant 0 : i32
    %67 = tpu.memref_slice %arg5[%c0_i32_56, %c0_i32_57, %c0_i32_58] : memref<2x8x128xf32, #tpu.memory_space<vmem>> -> memref<1x8x128xf32, #tpu.memory_space<vmem>>
    %68 = tpu.memref_squeeze %67 : memref<1x8x128xf32, #tpu.memory_space<vmem>> -> memref<8x128xf32, #tpu.memory_space<vmem>>
    %c7 = arith.constant 7 : index
    %c0_59 = arith.constant 0 : index
    %69 = vector.load %68[%c7, %c0_59] : memref<8x128xf32, #tpu.memory_space<vmem>>, vector<1x32xf32>
    %cst_60 = arith.constant dense<0.000000e+00> : vector<48x1xf32>
    %70 = tpu.matmul %32, %0, %cst_60 {dimension_numbers = #tpu.dot_dimension_numbers<[1], [0], [0], [1], [0, 0, 1, 1], [], []>} : vector<48x32xf32>, vector<32x1xf32>, vector<48x1xf32> -> vector<48x1xf32>
    %71 = arith.mulf %32, %32 : vector<48x32xf32>
    %cst_61 = arith.constant dense<0.000000e+00> : vector<48x1xf32>
    %72 = tpu.matmul %71, %0, %cst_61 {dimension_numbers = #tpu.dot_dimension_numbers<[1], [0], [0], [1], [0, 0, 1, 1], [], []>} : vector<48x32xf32>, vector<32x1xf32>, vector<48x1xf32> -> vector<48x1xf32>
    %cst_62 = arith.constant 3.125000e-02 : f32
    %73 = vector.broadcast %cst_62 : f32 to vector<48x1xf32>
    %74 = arith.mulf %70, %73 : vector<48x1xf32>
    %cst_63 = arith.constant 3.125000e-02 : f32
    %75 = vector.broadcast %cst_63 : f32 to vector<48x1xf32>
    %76 = arith.mulf %72, %75 : vector<48x1xf32>
    %77 = arith.mulf %74, %74 : vector<48x1xf32>
    %78 = arith.subf %76, %77 : vector<48x1xf32>
    %79 = vector.broadcast %74 : vector<48x1xf32> to vector<48x32xf32>
    %80 = arith.subf %32, %79 : vector<48x32xf32>
    %cst_64 = arith.constant 9.99999974E-6 : f32
    %81 = vector.broadcast %cst_64 : f32 to vector<48x1xf32>
    %82 = arith.addf %78, %81 : vector<48x1xf32>
    %83 = math.rsqrt %82 : vector<48x1xf32>
    %84 = vector.broadcast %83 : vector<48x1xf32> to vector<48x32xf32>
    %85 = arith.mulf %80, %84 : vector<48x32xf32>
    %86 = vector.broadcast %48 : vector<1x32xf32> to vector<48x32xf32>
    %87 = arith.mulf %85, %86 : vector<48x32xf32>
    %88 = vector.broadcast %51 : vector<1x32xf32> to vector<48x32xf32>
    %89 = arith.addf %87, %88 : vector<48x32xf32>
    %90 = arith.truncf %89 : vector<48x32xf32> to vector<48x32xbf16>
    %cst_65 = arith.constant dense<0.000000e+00> : vector<48x96xf32>
    %91 = tpu.matmul %90, %36, %cst_65 {dimension_numbers = #tpu.dot_dimension_numbers<[1], [0], [0], [1], [0, 0, 1, 1], [], []>} : vector<48x32xbf16>, vector<32x96xbf16>, vector<48x96xf32> -> vector<48x96xf32>
    %92 = vector.broadcast %54 : vector<1x96xf32> to vector<48x96xf32>
    %93 = arith.addf %91, %92 : vector<48x96xf32>
    %94 = vector.extract_strided_slice %93 {offsets = [0, 0], sizes = [48, 32], strides = [1, 1]} : vector<48x96xf32> to vector<48x32xf32>
    %cst_66 = arith.constant 0.353553385 : f32
    %95 = vector.broadcast %cst_66 : f32 to vector<48x32xf32>
    %96 = arith.mulf %94, %95 : vector<48x32xf32>
    %97 = vector.shape_cast %96 : vector<48x32xf32> to vector<2x24x32xf32>
    %98 = vector.extract_strided_slice %93 {offsets = [0, 32], sizes = [48, 32], strides = [1, 1]} : vector<48x96xf32> to vector<48x32xf32>
    %99 = vector.shape_cast %98 : vector<48x32xf32> to vector<2x24x32xf32>
    %100 = vector.extract_strided_slice %93 {offsets = [0, 64], sizes = [48, 32], strides = [1, 1]} : vector<48x96xf32> to vector<48x32xf32>
    %101 = vector.shape_cast %100 : vector<48x32xf32> to vector<2x24x32xf32>
    %102 = tpu.concatenate %99, %33 in 1 : vector<2x24x32xf32>, vector<2x8x32xf32> -> vector<2x32x32xf32>
    %103 = tpu.concatenate %101, %33 in 1 : vector<2x24x32xf32>, vector<2x8x32xf32> -> vector<2x32x32xf32>
    %104 = tpu.concatenate %102, %102, %102, %102 in 1 : vector<2x32x32xf32>, vector<2x32x32xf32>, vector<2x32x32xf32>, vector<2x32x32xf32> -> vector<2x128x32xf32>
    %105 = vector.shape_cast %9 : vector<128x32xf32> to vector<1x128x32xf32>
    %106 = vector.broadcast %105 : vector<1x128x32xf32> to vector<2x128x32xf32>
    %107 = arith.mulf %104, %106 : vector<2x128x32xf32>
    %108 = tpu.concatenate %103, %103, %103, %103 in 1 : vector<2x32x32xf32>, vector<2x32x32xf32>, vector<2x32x32xf32>, vector<2x32x32xf32> -> vector<2x128x32xf32>
    %109 = vector.shape_cast %9 : vector<128x32xf32> to vector<1x128x32xf32>
    %110 = vector.broadcast %109 : vector<1x128x32xf32> to vector<2x128x32xf32>
    %111 = arith.mulf %108, %110 : vector<2x128x32xf32>
    %112 = arith.truncf %97 : vector<2x24x32xf32> to vector<2x24x32xbf16>
    %113 = arith.truncf %107 : vector<2x128x32xf32> to vector<2x128x32xbf16>
    "tpu.trace_start"() <{level = 10 : i32, message = "bqc,bkc->bqk"}> : () -> ()
    %cst_67 = arith.constant dense<0.000000e+00> : vector<2x24x128xf32>
    %114 = tpu.matmul %112, %113, %cst_67 {dimension_numbers = #tpu.dot_dimension_numbers<[2], [2], [1], [1], [0, 0, 0, 1, 1, 1], [0], [0]>} : vector<2x24x32xbf16>, vector<2x128x32xbf16>, vector<2x24x128xf32> -> vector<2x24x128xf32>
    "tpu.trace_stop"() : () -> ()
    %115 = vector.shape_cast %114 : vector<2x24x128xf32> to vector<48x128xf32>
    %116 = vector.broadcast %26 : vector<1x128xf32> to vector<48x128xf32>
    %117 = arith.addf %115, %116 : vector<48x128xf32>
    %cst_68 = arith.constant dense<0xFF800000> : vector<48xf32>
    %118 = vector.multi_reduction <maximumf>, %117, %cst_68 [1] : vector<48x128xf32> to vector<48xf32>
    %119 = vector.shape_cast %118 : vector<48xf32> to vector<48x1xf32>
    %120 = vector.broadcast %119 : vector<48x1xf32> to vector<48x128xf32>
    %121 = arith.subf %117, %120 : vector<48x128xf32>
    %122 = math.exp %121 : vector<48x128xf32>
    %cst_69 = arith.constant dense<0.000000e+00> : vector<48x128xf32>
    %123 = tpu.matmul %122, %18, %cst_69 {dimension_numbers = #tpu.dot_dimension_numbers<[1], [0], [0], [1], [0, 0, 1, 1], [], []>} : vector<48x128xf32>, vector<128x128xf32>, vector<48x128xf32> -> vector<48x128xf32>
    %124 = tpu.reciprocal %123 {approx = true} : vector<48x128xf32> -> vector<48x128xf32>
    %125 = arith.mulf %122, %124 : vector<48x128xf32>
    %126 = vector.shape_cast %125 : vector<48x128xf32> to vector<2x24x128xf32>
    %127 = arith.truncf %126 : vector<2x24x128xf32> to vector<2x24x128xbf16>
    %128 = arith.truncf %111 : vector<2x128x32xf32> to vector<2x128x32xbf16>
    "tpu.trace_start"() <{level = 10 : i32, message = "bqk,bkc->bqc"}> : () -> ()
    %cst_70 = arith.constant dense<0.000000e+00> : vector<2x24x32xf32>
    %129 = tpu.matmul %127, %128, %cst_70 {dimension_numbers = #tpu.dot_dimension_numbers<[2], [1], [1], [2], [0, 0, 0, 1, 1, 2], [0], [0]>} : vector<2x24x128xbf16>, vector<2x128x32xbf16>, vector<2x24x32xf32> -> vector<2x24x32xf32>
    "tpu.trace_stop"() : () -> ()
    %130 = vector.shape_cast %129 : vector<2x24x32xf32> to vector<48x32xf32>
    %131 = arith.truncf %130 : vector<48x32xf32> to vector<48x32xbf16>
    %cst_71 = arith.constant dense<0.000000e+00> : vector<48x32xf32>
    %132 = tpu.matmul %131, %39, %cst_71 {dimension_numbers = #tpu.dot_dimension_numbers<[1], [0], [0], [1], [0, 0, 1, 1], [], []>} : vector<48x32xbf16>, vector<32x32xbf16>, vector<48x32xf32> -> vector<48x32xf32>
    %133 = vector.broadcast %57 : vector<1x32xf32> to vector<48x32xf32>
    %134 = arith.addf %132, %133 : vector<48x32xf32>
    %135 = arith.addf %32, %134 : vector<48x32xf32>
    %cst_72 = arith.constant dense<0.000000e+00> : vector<48x1xf32>
    %136 = tpu.matmul %135, %0, %cst_72 {dimension_numbers = #tpu.dot_dimension_numbers<[1], [0], [0], [1], [0, 0, 1, 1], [], []>} : vector<48x32xf32>, vector<32x1xf32>, vector<48x1xf32> -> vector<48x1xf32>
    %137 = arith.mulf %135, %135 : vector<48x32xf32>
    %cst_73 = arith.constant dense<0.000000e+00> : vector<48x1xf32>
    %138 = tpu.matmul %137, %0, %cst_73 {dimension_numbers = #tpu.dot_dimension_numbers<[1], [0], [0], [1], [0, 0, 1, 1], [], []>} : vector<48x32xf32>, vector<32x1xf32>, vector<48x1xf32> -> vector<48x1xf32>
    %cst_74 = arith.constant 3.125000e-02 : f32
    %139 = vector.broadcast %cst_74 : f32 to vector<48x1xf32>
    %140 = arith.mulf %136, %139 : vector<48x1xf32>
    %cst_75 = arith.constant 3.125000e-02 : f32
    %141 = vector.broadcast %cst_75 : f32 to vector<48x1xf32>
    %142 = arith.mulf %138, %141 : vector<48x1xf32>
    %143 = arith.mulf %140, %140 : vector<48x1xf32>
    %144 = arith.subf %142, %143 : vector<48x1xf32>
    %145 = vector.broadcast %140 : vector<48x1xf32> to vector<48x32xf32>
    %146 = arith.subf %135, %145 : vector<48x32xf32>
    %cst_76 = arith.constant 9.99999974E-6 : f32
    %147 = vector.broadcast %cst_76 : f32 to vector<48x1xf32>
    %148 = arith.addf %144, %147 : vector<48x1xf32>
    %149 = math.rsqrt %148 : vector<48x1xf32>
    %150 = vector.broadcast %149 : vector<48x1xf32> to vector<48x32xf32>
    %151 = arith.mulf %146, %150 : vector<48x32xf32>
    %152 = vector.broadcast %60 : vector<1x32xf32> to vector<48x32xf32>
    %153 = arith.mulf %151, %152 : vector<48x32xf32>
    %154 = vector.broadcast %63 : vector<1x32xf32> to vector<48x32xf32>
    %155 = arith.addf %153, %154 : vector<48x32xf32>
    %156 = arith.truncf %155 : vector<48x32xf32> to vector<48x32xbf16>
    %cst_77 = arith.constant dense<0.000000e+00> : vector<48x128xf32>
    %157 = tpu.matmul %156, %42, %cst_77 {dimension_numbers = #tpu.dot_dimension_numbers<[1], [0], [0], [1], [0, 0, 1, 1], [], []>} : vector<48x32xbf16>, vector<32x128xbf16>, vector<48x128xf32> -> vector<48x128xf32>
    %158 = vector.broadcast %66 : vector<1x128xf32> to vector<48x128xf32>
    %159 = arith.addf %157, %158 : vector<48x128xf32>
    %cst_78 = arith.constant 5.000000e-01 : f32
    %160 = vector.broadcast %cst_78 : f32 to vector<48x128xf32>
    %161 = arith.mulf %160, %159 : vector<48x128xf32>
    %cst_79 = arith.constant 4.471500e-02 : f32
    %162 = vector.broadcast %cst_79 : f32 to vector<48x128xf32>
    %163 = arith.mulf %162, %159 : vector<48x128xf32>
    %164 = arith.mulf %163, %159 : vector<48x128xf32>
    %165 = arith.mulf %164, %159 : vector<48x128xf32>
    %166 = arith.addf %159, %165 : vector<48x128xf32>
    %cst_80 = arith.constant 0.797884583 : f32
    %167 = vector.broadcast %cst_80 : f32 to vector<48x128xf32>
    %168 = arith.mulf %167, %166 : vector<48x128xf32>
    %169 = math.tanh %168 : vector<48x128xf32>
    %cst_81 = arith.constant 1.000000e+00 : f32
    %170 = vector.broadcast %cst_81 : f32 to vector<48x128xf32>
    %171 = arith.addf %170, %169 : vector<48x128xf32>
    %172 = arith.mulf %161, %171 : vector<48x128xf32>
    %173 = arith.truncf %172 : vector<48x128xf32> to vector<48x128xbf16>
    %cst_82 = arith.constant dense<0.000000e+00> : vector<48x32xf32>
    %174 = tpu.matmul %173, %45, %cst_82 {dimension_numbers = #tpu.dot_dimension_numbers<[1], [0], [0], [1], [0, 0, 1, 1], [], []>} : vector<48x128xbf16>, vector<128x32xbf16>, vector<48x32xf32> -> vector<48x32xf32>
    %175 = vector.broadcast %69 : vector<1x32xf32> to vector<48x32xf32>
    %176 = arith.addf %174, %175 : vector<48x32xf32>
    %177 = arith.addf %135, %176 : vector<48x32xf32>
    %c1_i32 = arith.constant 1 : i32
    %c0_i32_83 = arith.constant 0 : i32
    %c0_i32_84 = arith.constant 0 : i32
    %178 = tpu.memref_slice %arg4[%c1_i32, %c0_i32_83, %c0_i32_84] : memref<2x224x128xbf16, #tpu.memory_space<vmem>> -> memref<1x224x128xbf16, #tpu.memory_space<vmem>>
    %179 = tpu.memref_squeeze %178 : memref<1x224x128xbf16, #tpu.memory_space<vmem>> -> memref<224x128xbf16, #tpu.memory_space<vmem>>
    %c0_85 = arith.constant 0 : index
    %c0_86 = arith.constant 0 : index
    %180 = vector.load %179[%c0_85, %c0_86] : memref<224x128xbf16, #tpu.memory_space<vmem>>, vector<32x96xbf16>
    %c1_i32_87 = arith.constant 1 : i32
    %c0_i32_88 = arith.constant 0 : i32
    %c0_i32_89 = arith.constant 0 : i32
    %181 = tpu.memref_slice %arg4[%c1_i32_87, %c0_i32_88, %c0_i32_89] : memref<2x224x128xbf16, #tpu.memory_space<vmem>> -> memref<1x224x128xbf16, #tpu.memory_space<vmem>>
    %182 = tpu.memref_squeeze %181 : memref<1x224x128xbf16, #tpu.memory_space<vmem>> -> memref<224x128xbf16, #tpu.memory_space<vmem>>
    %c32_90 = arith.constant 32 : index
    %c0_91 = arith.constant 0 : index
    %183 = vector.load %182[%c32_90, %c0_91] : memref<224x128xbf16, #tpu.memory_space<vmem>>, vector<32x32xbf16>
    %c1_i32_92 = arith.constant 1 : i32
    %c0_i32_93 = arith.constant 0 : i32
    %c0_i32_94 = arith.constant 0 : i32
    %184 = tpu.memref_slice %arg4[%c1_i32_92, %c0_i32_93, %c0_i32_94] : memref<2x224x128xbf16, #tpu.memory_space<vmem>> -> memref<1x224x128xbf16, #tpu.memory_space<vmem>>
    %185 = tpu.memref_squeeze %184 : memref<1x224x128xbf16, #tpu.memory_space<vmem>> -> memref<224x128xbf16, #tpu.memory_space<vmem>>
    %c64_95 = arith.constant 64 : index
    %c0_96 = arith.constant 0 : index
    %186 = vector.load %185[%c64_95, %c0_96] : memref<224x128xbf16, #tpu.memory_space<vmem>>, vector<32x128xbf16>
    %c1_i32_97 = arith.constant 1 : i32
    %c0_i32_98 = arith.constant 0 : i32
    %c0_i32_99 = arith.constant 0 : i32
    %187 = tpu.memref_slice %arg4[%c1_i32_97, %c0_i32_98, %c0_i32_99] : memref<2x224x128xbf16, #tpu.memory_space<vmem>> -> memref<1x224x128xbf16, #tpu.memory_space<vmem>>
    %188 = tpu.memref_squeeze %187 : memref<1x224x128xbf16, #tpu.memory_space<vmem>> -> memref<224x128xbf16, #tpu.memory_space<vmem>>
    %c96_100 = arith.constant 96 : index
    %c0_101 = arith.constant 0 : index
    %189 = vector.load %188[%c96_100, %c0_101] : memref<224x128xbf16, #tpu.memory_space<vmem>>, vector<128x32xbf16>
    %c1_i32_102 = arith.constant 1 : i32
    %c0_i32_103 = arith.constant 0 : i32
    %c0_i32_104 = arith.constant 0 : i32
    %190 = tpu.memref_slice %arg5[%c1_i32_102, %c0_i32_103, %c0_i32_104] : memref<2x8x128xf32, #tpu.memory_space<vmem>> -> memref<1x8x128xf32, #tpu.memory_space<vmem>>
    %191 = tpu.memref_squeeze %190 : memref<1x8x128xf32, #tpu.memory_space<vmem>> -> memref<8x128xf32, #tpu.memory_space<vmem>>
    %c0_105 = arith.constant 0 : index
    %c0_106 = arith.constant 0 : index
    %192 = vector.load %191[%c0_105, %c0_106] : memref<8x128xf32, #tpu.memory_space<vmem>>, vector<1x32xf32>
    %c1_i32_107 = arith.constant 1 : i32
    %c0_i32_108 = arith.constant 0 : i32
    %c0_i32_109 = arith.constant 0 : i32
    %193 = tpu.memref_slice %arg5[%c1_i32_107, %c0_i32_108, %c0_i32_109] : memref<2x8x128xf32, #tpu.memory_space<vmem>> -> memref<1x8x128xf32, #tpu.memory_space<vmem>>
    %194 = tpu.memref_squeeze %193 : memref<1x8x128xf32, #tpu.memory_space<vmem>> -> memref<8x128xf32, #tpu.memory_space<vmem>>
    %c1_110 = arith.constant 1 : index
    %c0_111 = arith.constant 0 : index
    %195 = vector.load %194[%c1_110, %c0_111] : memref<8x128xf32, #tpu.memory_space<vmem>>, vector<1x32xf32>
    %c1_i32_112 = arith.constant 1 : i32
    %c0_i32_113 = arith.constant 0 : i32
    %c0_i32_114 = arith.constant 0 : i32
    %196 = tpu.memref_slice %arg5[%c1_i32_112, %c0_i32_113, %c0_i32_114] : memref<2x8x128xf32, #tpu.memory_space<vmem>> -> memref<1x8x128xf32, #tpu.memory_space<vmem>>
    %197 = tpu.memref_squeeze %196 : memref<1x8x128xf32, #tpu.memory_space<vmem>> -> memref<8x128xf32, #tpu.memory_space<vmem>>
    %c2_115 = arith.constant 2 : index
    %c0_116 = arith.constant 0 : index
    %198 = vector.load %197[%c2_115, %c0_116] : memref<8x128xf32, #tpu.memory_space<vmem>>, vector<1x96xf32>
    %c1_i32_117 = arith.constant 1 : i32
    %c0_i32_118 = arith.constant 0 : i32
    %c0_i32_119 = arith.constant 0 : i32
    %199 = tpu.memref_slice %arg5[%c1_i32_117, %c0_i32_118, %c0_i32_119] : memref<2x8x128xf32, #tpu.memory_space<vmem>> -> memref<1x8x128xf32, #tpu.memory_space<vmem>>
    %200 = tpu.memref_squeeze %199 : memref<1x8x128xf32, #tpu.memory_space<vmem>> -> memref<8x128xf32, #tpu.memory_space<vmem>>
    %c3_120 = arith.constant 3 : index
    %c0_121 = arith.constant 0 : index
    %201 = vector.load %200[%c3_120, %c0_121] : memref<8x128xf32, #tpu.memory_space<vmem>>, vector<1x32xf32>
    %c1_i32_122 = arith.constant 1 : i32
    %c0_i32_123 = arith.constant 0 : i32
    %c0_i32_124 = arith.constant 0 : i32
    %202 = tpu.memref_slice %arg5[%c1_i32_122, %c0_i32_123, %c0_i32_124] : memref<2x8x128xf32, #tpu.memory_space<vmem>> -> memref<1x8x128xf32, #tpu.memory_space<vmem>>
    %203 = tpu.memref_squeeze %202 : memref<1x8x128xf32, #tpu.memory_space<vmem>> -> memref<8x128xf32, #tpu.memory_space<vmem>>
    %c4_125 = arith.constant 4 : index
    %c0_126 = arith.constant 0 : index
    %204 = vector.load %203[%c4_125, %c0_126] : memref<8x128xf32, #tpu.memory_space<vmem>>, vector<1x32xf32>
    %c1_i32_127 = arith.constant 1 : i32
    %c0_i32_128 = arith.constant 0 : i32
    %c0_i32_129 = arith.constant 0 : i32
    %205 = tpu.memref_slice %arg5[%c1_i32_127, %c0_i32_128, %c0_i32_129] : memref<2x8x128xf32, #tpu.memory_space<vmem>> -> memref<1x8x128xf32, #tpu.memory_space<vmem>>
    %206 = tpu.memref_squeeze %205 : memref<1x8x128xf32, #tpu.memory_space<vmem>> -> memref<8x128xf32, #tpu.memory_space<vmem>>
    %c5_130 = arith.constant 5 : index
    %c0_131 = arith.constant 0 : index
    %207 = vector.load %206[%c5_130, %c0_131] : memref<8x128xf32, #tpu.memory_space<vmem>>, vector<1x32xf32>
    %c1_i32_132 = arith.constant 1 : i32
    %c0_i32_133 = arith.constant 0 : i32
    %c0_i32_134 = arith.constant 0 : i32
    %208 = tpu.memref_slice %arg5[%c1_i32_132, %c0_i32_133, %c0_i32_134] : memref<2x8x128xf32, #tpu.memory_space<vmem>> -> memref<1x8x128xf32, #tpu.memory_space<vmem>>
    %209 = tpu.memref_squeeze %208 : memref<1x8x128xf32, #tpu.memory_space<vmem>> -> memref<8x128xf32, #tpu.memory_space<vmem>>
    %c6_135 = arith.constant 6 : index
    %c0_136 = arith.constant 0 : index
    %210 = vector.load %209[%c6_135, %c0_136] : memref<8x128xf32, #tpu.memory_space<vmem>>, vector<1x128xf32>
    %c1_i32_137 = arith.constant 1 : i32
    %c0_i32_138 = arith.constant 0 : i32
    %c0_i32_139 = arith.constant 0 : i32
    %211 = tpu.memref_slice %arg5[%c1_i32_137, %c0_i32_138, %c0_i32_139] : memref<2x8x128xf32, #tpu.memory_space<vmem>> -> memref<1x8x128xf32, #tpu.memory_space<vmem>>
    %212 = tpu.memref_squeeze %211 : memref<1x8x128xf32, #tpu.memory_space<vmem>> -> memref<8x128xf32, #tpu.memory_space<vmem>>
    %c7_140 = arith.constant 7 : index
    %c0_141 = arith.constant 0 : index
    %213 = vector.load %212[%c7_140, %c0_141] : memref<8x128xf32, #tpu.memory_space<vmem>>, vector<1x32xf32>
    %cst_142 = arith.constant dense<0.000000e+00> : vector<48x1xf32>
    %214 = tpu.matmul %177, %0, %cst_142 {dimension_numbers = #tpu.dot_dimension_numbers<[1], [0], [0], [1], [0, 0, 1, 1], [], []>} : vector<48x32xf32>, vector<32x1xf32>, vector<48x1xf32> -> vector<48x1xf32>
    %215 = arith.mulf %177, %177 : vector<48x32xf32>
    %cst_143 = arith.constant dense<0.000000e+00> : vector<48x1xf32>
    %216 = tpu.matmul %215, %0, %cst_143 {dimension_numbers = #tpu.dot_dimension_numbers<[1], [0], [0], [1], [0, 0, 1, 1], [], []>} : vector<48x32xf32>, vector<32x1xf32>, vector<48x1xf32> -> vector<48x1xf32>
    %cst_144 = arith.constant 3.125000e-02 : f32
    %217 = vector.broadcast %cst_144 : f32 to vector<48x1xf32>
    %218 = arith.mulf %214, %217 : vector<48x1xf32>
    %cst_145 = arith.constant 3.125000e-02 : f32
    %219 = vector.broadcast %cst_145 : f32 to vector<48x1xf32>
    %220 = arith.mulf %216, %219 : vector<48x1xf32>
    %221 = arith.mulf %218, %218 : vector<48x1xf32>
    %222 = arith.subf %220, %221 : vector<48x1xf32>
    %223 = vector.broadcast %218 : vector<48x1xf32> to vector<48x32xf32>
    %224 = arith.subf %177, %223 : vector<48x32xf32>
    %cst_146 = arith.constant 9.99999974E-6 : f32
    %225 = vector.broadcast %cst_146 : f32 to vector<48x1xf32>
    %226 = arith.addf %222, %225 : vector<48x1xf32>
    %227 = math.rsqrt %226 : vector<48x1xf32>
    %228 = vector.broadcast %227 : vector<48x1xf32> to vector<48x32xf32>
    %229 = arith.mulf %224, %228 : vector<48x32xf32>
    %230 = vector.broadcast %192 : vector<1x32xf32> to vector<48x32xf32>
    %231 = arith.mulf %229, %230 : vector<48x32xf32>
    %232 = vector.broadcast %195 : vector<1x32xf32> to vector<48x32xf32>
    %233 = arith.addf %231, %232 : vector<48x32xf32>
    %234 = arith.truncf %233 : vector<48x32xf32> to vector<48x32xbf16>
    %cst_147 = arith.constant dense<0.000000e+00> : vector<48x96xf32>
    %235 = tpu.matmul %234, %180, %cst_147 {dimension_numbers = #tpu.dot_dimension_numbers<[1], [0], [0], [1], [0, 0, 1, 1], [], []>} : vector<48x32xbf16>, vector<32x96xbf16>, vector<48x96xf32> -> vector<48x96xf32>
    %236 = vector.broadcast %198 : vector<1x96xf32> to vector<48x96xf32>
    %237 = arith.addf %235, %236 : vector<48x96xf32>
    %238 = vector.extract_strided_slice %237 {offsets = [0, 0], sizes = [48, 32], strides = [1, 1]} : vector<48x96xf32> to vector<48x32xf32>
    %cst_148 = arith.constant 0.353553385 : f32
    %239 = vector.broadcast %cst_148 : f32 to vector<48x32xf32>
    %240 = arith.mulf %238, %239 : vector<48x32xf32>
    %241 = vector.shape_cast %240 : vector<48x32xf32> to vector<2x24x32xf32>
    %242 = vector.extract_strided_slice %237 {offsets = [0, 32], sizes = [48, 32], strides = [1, 1]} : vector<48x96xf32> to vector<48x32xf32>
    %243 = vector.shape_cast %242 : vector<48x32xf32> to vector<2x24x32xf32>
    %244 = vector.extract_strided_slice %237 {offsets = [0, 64], sizes = [48, 32], strides = [1, 1]} : vector<48x96xf32> to vector<48x32xf32>
    %245 = vector.shape_cast %244 : vector<48x32xf32> to vector<2x24x32xf32>
    %246 = tpu.concatenate %243, %33 in 1 : vector<2x24x32xf32>, vector<2x8x32xf32> -> vector<2x32x32xf32>
    %247 = tpu.concatenate %245, %33 in 1 : vector<2x24x32xf32>, vector<2x8x32xf32> -> vector<2x32x32xf32>
    %248 = tpu.concatenate %246, %246, %246, %246 in 1 : vector<2x32x32xf32>, vector<2x32x32xf32>, vector<2x32x32xf32>, vector<2x32x32xf32> -> vector<2x128x32xf32>
    %249 = vector.shape_cast %9 : vector<128x32xf32> to vector<1x128x32xf32>
    %250 = vector.broadcast %249 : vector<1x128x32xf32> to vector<2x128x32xf32>
    %251 = arith.mulf %248, %250 : vector<2x128x32xf32>
    %252 = tpu.concatenate %247, %247, %247, %247 in 1 : vector<2x32x32xf32>, vector<2x32x32xf32>, vector<2x32x32xf32>, vector<2x32x32xf32> -> vector<2x128x32xf32>
    %253 = vector.shape_cast %9 : vector<128x32xf32> to vector<1x128x32xf32>
    %254 = vector.broadcast %253 : vector<1x128x32xf32> to vector<2x128x32xf32>
    %255 = arith.mulf %252, %254 : vector<2x128x32xf32>
    %256 = arith.truncf %241 : vector<2x24x32xf32> to vector<2x24x32xbf16>
    %257 = arith.truncf %251 : vector<2x128x32xf32> to vector<2x128x32xbf16>
    "tpu.trace_start"() <{level = 10 : i32, message = "bqc,bkc->bqk"}> : () -> ()
    %cst_149 = arith.constant dense<0.000000e+00> : vector<2x24x128xf32>
    %258 = tpu.matmul %256, %257, %cst_149 {dimension_numbers = #tpu.dot_dimension_numbers<[2], [2], [1], [1], [0, 0, 0, 1, 1, 1], [0], [0]>} : vector<2x24x32xbf16>, vector<2x128x32xbf16>, vector<2x24x128xf32> -> vector<2x24x128xf32>
    "tpu.trace_stop"() : () -> ()
    %259 = vector.shape_cast %258 : vector<2x24x128xf32> to vector<48x128xf32>
    %260 = vector.broadcast %26 : vector<1x128xf32> to vector<48x128xf32>
    %261 = arith.addf %259, %260 : vector<48x128xf32>
    %cst_150 = arith.constant dense<0xFF800000> : vector<48xf32>
    %262 = vector.multi_reduction <maximumf>, %261, %cst_150 [1] : vector<48x128xf32> to vector<48xf32>
    %263 = vector.shape_cast %262 : vector<48xf32> to vector<48x1xf32>
    %264 = vector.broadcast %263 : vector<48x1xf32> to vector<48x128xf32>
    %265 = arith.subf %261, %264 : vector<48x128xf32>
    %266 = math.exp %265 : vector<48x128xf32>
    %cst_151 = arith.constant dense<0.000000e+00> : vector<48x128xf32>
    %267 = tpu.matmul %266, %18, %cst_151 {dimension_numbers = #tpu.dot_dimension_numbers<[1], [0], [0], [1], [0, 0, 1, 1], [], []>} : vector<48x128xf32>, vector<128x128xf32>, vector<48x128xf32> -> vector<48x128xf32>
    %268 = tpu.reciprocal %267 {approx = true} : vector<48x128xf32> -> vector<48x128xf32>
    %269 = arith.mulf %266, %268 : vector<48x128xf32>
    %270 = vector.shape_cast %269 : vector<48x128xf32> to vector<2x24x128xf32>
    %271 = arith.truncf %270 : vector<2x24x128xf32> to vector<2x24x128xbf16>
    %272 = arith.truncf %255 : vector<2x128x32xf32> to vector<2x128x32xbf16>
    "tpu.trace_start"() <{level = 10 : i32, message = "bqk,bkc->bqc"}> : () -> ()
    %cst_152 = arith.constant dense<0.000000e+00> : vector<2x24x32xf32>
    %273 = tpu.matmul %271, %272, %cst_152 {dimension_numbers = #tpu.dot_dimension_numbers<[2], [1], [1], [2], [0, 0, 0, 1, 1, 2], [0], [0]>} : vector<2x24x128xbf16>, vector<2x128x32xbf16>, vector<2x24x32xf32> -> vector<2x24x32xf32>
    "tpu.trace_stop"() : () -> ()
    %274 = vector.shape_cast %273 : vector<2x24x32xf32> to vector<48x32xf32>
    %275 = arith.truncf %274 : vector<48x32xf32> to vector<48x32xbf16>
    %cst_153 = arith.constant dense<0.000000e+00> : vector<48x32xf32>
    %276 = tpu.matmul %275, %183, %cst_153 {dimension_numbers = #tpu.dot_dimension_numbers<[1], [0], [0], [1], [0, 0, 1, 1], [], []>} : vector<48x32xbf16>, vector<32x32xbf16>, vector<48x32xf32> -> vector<48x32xf32>
    %277 = vector.broadcast %201 : vector<1x32xf32> to vector<48x32xf32>
    %278 = arith.addf %276, %277 : vector<48x32xf32>
    %279 = arith.addf %177, %278 : vector<48x32xf32>
    %cst_154 = arith.constant dense<0.000000e+00> : vector<48x1xf32>
    %280 = tpu.matmul %279, %0, %cst_154 {dimension_numbers = #tpu.dot_dimension_numbers<[1], [0], [0], [1], [0, 0, 1, 1], [], []>} : vector<48x32xf32>, vector<32x1xf32>, vector<48x1xf32> -> vector<48x1xf32>
    %281 = arith.mulf %279, %279 : vector<48x32xf32>
    %cst_155 = arith.constant dense<0.000000e+00> : vector<48x1xf32>
    %282 = tpu.matmul %281, %0, %cst_155 {dimension_numbers = #tpu.dot_dimension_numbers<[1], [0], [0], [1], [0, 0, 1, 1], [], []>} : vector<48x32xf32>, vector<32x1xf32>, vector<48x1xf32> -> vector<48x1xf32>
    %cst_156 = arith.constant 3.125000e-02 : f32
    %283 = vector.broadcast %cst_156 : f32 to vector<48x1xf32>
    %284 = arith.mulf %280, %283 : vector<48x1xf32>
    %cst_157 = arith.constant 3.125000e-02 : f32
    %285 = vector.broadcast %cst_157 : f32 to vector<48x1xf32>
    %286 = arith.mulf %282, %285 : vector<48x1xf32>
    %287 = arith.mulf %284, %284 : vector<48x1xf32>
    %288 = arith.subf %286, %287 : vector<48x1xf32>
    %289 = vector.broadcast %284 : vector<48x1xf32> to vector<48x32xf32>
    %290 = arith.subf %279, %289 : vector<48x32xf32>
    %cst_158 = arith.constant 9.99999974E-6 : f32
    %291 = vector.broadcast %cst_158 : f32 to vector<48x1xf32>
    %292 = arith.addf %288, %291 : vector<48x1xf32>
    %293 = math.rsqrt %292 : vector<48x1xf32>
    %294 = vector.broadcast %293 : vector<48x1xf32> to vector<48x32xf32>
    %295 = arith.mulf %290, %294 : vector<48x32xf32>
    %296 = vector.broadcast %204 : vector<1x32xf32> to vector<48x32xf32>
    %297 = arith.mulf %295, %296 : vector<48x32xf32>
    %298 = vector.broadcast %207 : vector<1x32xf32> to vector<48x32xf32>
    %299 = arith.addf %297, %298 : vector<48x32xf32>
    %300 = arith.truncf %299 : vector<48x32xf32> to vector<48x32xbf16>
    %cst_159 = arith.constant dense<0.000000e+00> : vector<48x128xf32>
    %301 = tpu.matmul %300, %186, %cst_159 {dimension_numbers = #tpu.dot_dimension_numbers<[1], [0], [0], [1], [0, 0, 1, 1], [], []>} : vector<48x32xbf16>, vector<32x128xbf16>, vector<48x128xf32> -> vector<48x128xf32>
    %302 = vector.broadcast %210 : vector<1x128xf32> to vector<48x128xf32>
    %303 = arith.addf %301, %302 : vector<48x128xf32>
    %cst_160 = arith.constant 5.000000e-01 : f32
    %304 = vector.broadcast %cst_160 : f32 to vector<48x128xf32>
    %305 = arith.mulf %304, %303 : vector<48x128xf32>
    %cst_161 = arith.constant 4.471500e-02 : f32
    %306 = vector.broadcast %cst_161 : f32 to vector<48x128xf32>
    %307 = arith.mulf %306, %303 : vector<48x128xf32>
    %308 = arith.mulf %307, %303 : vector<48x128xf32>
    %309 = arith.mulf %308, %303 : vector<48x128xf32>
    %310 = arith.addf %303, %309 : vector<48x128xf32>
    %cst_162 = arith.constant 0.797884583 : f32
    %311 = vector.broadcast %cst_162 : f32 to vector<48x128xf32>
    %312 = arith.mulf %311, %310 : vector<48x128xf32>
    %313 = math.tanh %312 : vector<48x128xf32>
    %cst_163 = arith.constant 1.000000e+00 : f32
    %314 = vector.broadcast %cst_163 : f32 to vector<48x128xf32>
    %315 = arith.addf %314, %313 : vector<48x128xf32>
    %316 = arith.mulf %305, %315 : vector<48x128xf32>
    %317 = arith.truncf %316 : vector<48x128xf32> to vector<48x128xbf16>
    %cst_164 = arith.constant dense<0.000000e+00> : vector<48x32xf32>
    %318 = tpu.matmul %317, %189, %cst_164 {dimension_numbers = #tpu.dot_dimension_numbers<[1], [0], [0], [1], [0, 0, 1, 1], [], []>} : vector<48x128xbf16>, vector<128x32xbf16>, vector<48x32xf32> -> vector<48x32xf32>
    %319 = vector.broadcast %213 : vector<1x32xf32> to vector<48x32xf32>
    %320 = arith.addf %318, %319 : vector<48x32xf32>
    %321 = arith.addf %279, %320 : vector<48x32xf32>
    %c0_165 = arith.constant 0 : index
    %c0_166 = arith.constant 0 : index
    %322 = vector.load %arg7[%c0_165, %c0_166] : memref<8x128xf32, #tpu.memory_space<vmem>>, vector<1x32xf32>
    %c1_167 = arith.constant 1 : index
    %c0_168 = arith.constant 0 : index
    %323 = vector.load %arg7[%c1_167, %c0_168] : memref<8x128xf32, #tpu.memory_space<vmem>>, vector<1x32xf32>
    %c2_169 = arith.constant 2 : index
    %c0_170 = arith.constant 0 : index
    %324 = vector.load %arg7[%c2_169, %c0_170] : memref<8x128xf32, #tpu.memory_space<vmem>>, vector<1x128xf32>
    %c3_171 = arith.constant 3 : index
    %c0_172 = arith.constant 0 : index
    %325 = vector.load %arg7[%c3_171, %c0_172] : memref<8x128xf32, #tpu.memory_space<vmem>>, vector<1x128xf32>
    %c0_173 = arith.constant 0 : index
    %c0_174 = arith.constant 0 : index
    %326 = vector.load %arg6[%c0_173, %c0_174] : memref<64x128xbf16, #tpu.memory_space<vmem>>, vector<32x128xbf16>
    %c32_175 = arith.constant 32 : index
    %c0_176 = arith.constant 0 : index
    %327 = vector.load %arg6[%c32_175, %c0_176] : memref<64x128xbf16, #tpu.memory_space<vmem>>, vector<32x128xbf16>
    %328 = vector.shape_cast %321 : vector<48x32xf32> to vector<2x24x32xf32>
    %329 = vector.extract_strided_slice %328 {offsets = [0, 0, 0], sizes = [2, 1, 32], strides = [1, 1, 1]} : vector<2x24x32xf32> to vector<2x1x32xf32>
    %330 = vector.shape_cast %329 : vector<2x1x32xf32> to vector<2x32xf32>
    %cst_177 = arith.constant dense<0.000000e+00> : vector<2x1xf32>
    %331 = tpu.matmul %330, %0, %cst_177 {dimension_numbers = #tpu.dot_dimension_numbers<[1], [0], [0], [1], [0, 0, 1, 1], [], []>} : vector<2x32xf32>, vector<32x1xf32>, vector<2x1xf32> -> vector<2x1xf32>
    %332 = arith.mulf %330, %330 : vector<2x32xf32>
    %cst_178 = arith.constant dense<0.000000e+00> : vector<2x1xf32>
    %333 = tpu.matmul %332, %0, %cst_178 {dimension_numbers = #tpu.dot_dimension_numbers<[1], [0], [0], [1], [0, 0, 1, 1], [], []>} : vector<2x32xf32>, vector<32x1xf32>, vector<2x1xf32> -> vector<2x1xf32>
    %cst_179 = arith.constant 3.125000e-02 : f32
    %334 = vector.broadcast %cst_179 : f32 to vector<2x1xf32>
    %335 = arith.mulf %331, %334 : vector<2x1xf32>
    %cst_180 = arith.constant 3.125000e-02 : f32
    %336 = vector.broadcast %cst_180 : f32 to vector<2x1xf32>
    %337 = arith.mulf %333, %336 : vector<2x1xf32>
    %338 = arith.mulf %335, %335 : vector<2x1xf32>
    %339 = arith.subf %337, %338 : vector<2x1xf32>
    %340 = vector.broadcast %335 : vector<2x1xf32> to vector<2x32xf32>
    %341 = arith.subf %330, %340 : vector<2x32xf32>
    %cst_181 = arith.constant 9.99999974E-6 : f32
    %342 = vector.broadcast %cst_181 : f32 to vector<2x1xf32>
    %343 = arith.addf %339, %342 : vector<2x1xf32>
    %344 = math.rsqrt %343 : vector<2x1xf32>
    %345 = vector.broadcast %344 : vector<2x1xf32> to vector<2x32xf32>
    %346 = arith.mulf %341, %345 : vector<2x32xf32>
    %347 = vector.broadcast %322 : vector<1x32xf32> to vector<2x32xf32>
    %348 = arith.mulf %346, %347 : vector<2x32xf32>
    %349 = vector.broadcast %323 : vector<1x32xf32> to vector<2x32xf32>
    %350 = arith.addf %348, %349 : vector<2x32xf32>
    %351 = arith.truncf %350 : vector<2x32xf32> to vector<2x32xbf16>
    %cst_182 = arith.constant dense<0.000000e+00> : vector<2x128xf32>
    %352 = tpu.matmul %351, %326, %cst_182 {dimension_numbers = #tpu.dot_dimension_numbers<[1], [0], [0], [1], [0, 0, 1, 1], [], []>} : vector<2x32xbf16>, vector<32x128xbf16>, vector<2x128xf32> -> vector<2x128xf32>
    %353 = vector.broadcast %324 : vector<1x128xf32> to vector<2x128xf32>
    %354 = arith.addf %352, %353 : vector<2x128xf32>
    %355 = math.tanh %354 : vector<2x128xf32>
    %356 = vector.extract_strided_slice %355 {offsets = [0, 0], sizes = [2, 32], strides = [1, 1]} : vector<2x128xf32> to vector<2x32xf32>
    %357 = arith.truncf %356 : vector<2x32xf32> to vector<2x32xbf16>
    %cst_183 = arith.constant dense<0.000000e+00> : vector<2x128xf32>
    %358 = tpu.matmul %357, %327, %cst_183 {dimension_numbers = #tpu.dot_dimension_numbers<[1], [0], [0], [1], [0, 0, 1, 1], [], []>} : vector<2x32xbf16>, vector<32x128xbf16>, vector<2x128xf32> -> vector<2x128xf32>
    %359 = vector.broadcast %325 : vector<1x128xf32> to vector<2x128xf32>
    %360 = arith.addf %358, %359 : vector<2x128xf32>
    %c0_184 = arith.constant 0 : index
    %c0_185 = arith.constant 0 : index
    %361 = vector.load %arg8[%c0_184, %c0_185] : memref<2x128xf32, #tpu.memory_space<vmem>>, vector<2x128xf32>
    tpu.vector_store %arg8[%c0_184, %c0_185], %360 {strides = array<i32>} : memref<2x128xf32, #tpu.memory_space<vmem>>, vector<2x128xf32>,
    return
  }
  func.func @transform_0(%arg0: i32) -> (i32, i32) {
    %c0_i32 = arith.constant 0 : i32
    %c0_i32_0 = arith.constant 0 : i32
    %c0_i32_1 = arith.constant 0 : i32
    return %c0_i32, %c0_i32_0 : i32, i32
  }
  func.func @transform_1(%arg0: i32) -> (i32, i32) {
    %c0_i32 = arith.constant 0 : i32
    %c0_i32_0 = arith.constant 0 : i32
    %c0_i32_1 = arith.constant 0 : i32
    return %c0_i32, %c0_i32_0 : i32, i32
  }
  func.func @transform_2(%arg0: i32) -> (i32, i32) {
    %c0_i32 = arith.constant 0 : i32
    %c0_i32_0 = arith.constant 0 : i32
    %c0_i32_1 = arith.constant 0 : i32
    return %c0_i32, %c0_i32_0 : i32, i32
  }
  func.func @transform_3(%arg0: i32) -> (i32, i32, i32) {
    %c0_i32 = arith.constant 0 : i32
    %c0_i32_0 = arith.constant 0 : i32
    %c0_i32_1 = arith.constant 0 : i32
    %c0_i32_2 = arith.constant 0 : i32
    return %c0_i32, %c0_i32_0, %c0_i32_1 : i32, i32, i32
  }
  func.func @transform_4(%arg0: i32) -> (i32, i32, i32) {
    %c0_i32 = arith.constant 0 : i32
    %c0_i32_0 = arith.constant 0 : i32
    %c0_i32_1 = arith.constant 0 : i32
    %c0_i32_2 = arith.constant 0 : i32
    return %c0_i32, %c0_i32_0, %c0_i32_1 : i32, i32, i32
  }
  func.func @transform_5(%arg0: i32) -> (i32, i32) {
    %c0_i32 = arith.constant 0 : i32
    %c0_i32_0 = arith.constant 0 : i32
    %c0_i32_1 = arith.constant 0 : i32
    return %c0_i32, %c0_i32_0 : i32, i32
  }
  func.func @transform_6(%arg0: i32) -> (i32, i32) {
    %c0_i32 = arith.constant 0 : i32
    %c0_i32_0 = arith.constant 0 : i32
    %c0_i32_1 = arith.constant 0 : i32
    return %c0_i32, %c0_i32_0 : i32, i32
  }
  func.func @transform_7(%arg0: i32) -> (i32, i32) {
    %c0_i32 = arith.constant 0 : i32
    %c0_i32_0 = arith.constant 0 : i32
    %c0_i32_1 = arith.constant 0 : i32
    return %c0_i32, %c0_i32_0 : i32, i32
  }
}

</mosaic_0001>

<bundles_post_ra>
// kernel: vit_classification_forward.1
= control target key start
LH: loop header
LB: loop body
LE: loop exit
PB: predicated region body
PF: predicated region fallthrough
CT: control target
= control target key end

     0   :  { %v7383_v1 = vmov 0.0   ;;  %vm5824_vm0 = vmmov 0   ;;  %v7392_v5 = vmov 1.0|1.0   ;;  %vm203_vm1 = vcmask 392192   ;;  %s7370_s0 = inlined_call_operand.vmem [shape: f32[48,48], index: 0, kind: input, shape index: {}]   ;;  %s7371_s1 = inlined_call_operand.vmem [shape: f32[48,32], index: 1, kind: input, shape index: {}]   ;;  %s7372_s2 = inlined_call_operand.vmem [shape: bf16[48,32], index: 2, kind: input, shape index: {}]   ;;  %s7373_s3 = inlined_call_operand.vmem [shape: bf16[2,224,128], index: 3, kind: input, shape index: {}]   ;;  %s7374_s4 = inlined_call_operand.vmem [shape: f32[2,8,128], index: 4, kind: input, shape index: {}]   ;;  %s7375_s5 = inlined_call_operand.vmem [shape: bf16[64,128], index: 5, kind: input, shape index: {}]   ;;  %s7376_s6 = inlined_call_operand.vmem [shape: f32[8,128], index: 6, kind: input, shape index: {}]   ;;  %s7377_s7 = inlined_call_operand.hbm [shape: f32[2,128], index: 7, kind: output, shape index: {}]  }
   0x1   :  { %v5640_v0 = vld [vmem:[%s7372_s2] sm:$0xff]   ;;  %4826 = vmatprep.subr.bf16.mxu0 %v7383_v1  ;;  %v5641_v2 = vld [vmem:[%s7372_s2 + $0x8] sm:$0xff]   ;;  %4832 = vmatprep.mubr.msk.bf16.mxu0 %vm5824_vm0, %v7383_v1  ;;  %v5642_v3 = vld [vmem:[%s7372_s2 + $0x10] sm:$0xff]  }
   0x2   :  { %4827 = vmatpush3.bf16.msra.mxu0 %v5640_v0  ;;  %v164_v4 = vld [vmem:[%s7370_s0] sm:$0xff]  ;;  %5412 = vmatprep.subr.bf16.mxu1 %v7392_v5  ;;  %v165_v6 = vld [vmem:[%s7370_s0 + $0x8] sm:$0xff]  ;;  %v166_v8 = vld [vmem:[%s7370_s0 + $0x10] sm:$0xff] }
   0x3   :  { %4828 = vmatprep.subr.bf16.mxu0 %v7383_v1  ;;  %5413 = vmatpush3.bf16.msra.mxu1 %v7392_v5  ;;  %v170_v7 = vpack.c.bf16 %v165_v6, %v164_v4  ;;  %v167_v9 = vld [vmem:[%s7370_s0 + $0x18] sm:$0xff]  ;;  %v168_v11 = vld [vmem:[%s7370_s0 + $0x20] sm:$0xff]  ;;  %v169_v12 = vld [vmem:[%s7370_s0 + $0x28] sm:$0xff] }
   0x4   :  { %5414 = vmatprep.subr.bf16.mxu1 %v7392_v5  ;;  %v171_v10 = vpack.c.bf16 %v167_v9, %v166_v8  ;;  %v172_v13 = vpack.c.bf16 %v169_v12, %v168_v11 }
   0x6   :  { %4829 = vmatpush3.bf16.msra.mxu0 %v5641_v2 }
   0x7   :  { %4830 = vmatprep.subr.bf16.mxu0 %v7383_v1  ;;  %5415 = vmatpush3.bf16.msra.mxu1 %v7392_v5 }
   0x8   :  { %5416 = vmatprep.subr.bf16.mxu1 %v7392_v5 }
   0xa   :  { %4831 = vmatpush3.bf16.msra.mxu0 %v5642_v3 }
   0xd   :  { %4833 = vmatmul.mubr.msk.bf16.vlgmr.msra.gmra.mrb[0].mxu0 %vm203_vm1, %v170_v7 }
   0xe   :  { %4836 = vmatprep.mubr.msk.bf16.mxu0 %vm5824_vm0, %v7383_v1 }
  0x15   :  { %4837 = vmatmul.mubr.msk.bf16.gmra.mrb[4].mxu0 %vm203_vm1, %v171_v10 }
  0x16   :  { %4840 = vmatprep.mubr.msk.bf16.mxu0 %vm5824_vm0, %v7383_v1 }
  0x17   :  { %12 = vsyncpa [#allocation3], 0  ;;  %v179_v14 = vld [vmem:[%s7371_s1] sm:$0xff]  ;;  %v180_v16 = vld [vmem:[%s7371_s1 + $0x8] sm:$0xff]  ;;  %vm306_vm2 = vcmask 261120   ;;  %v5826_v44 = vmov 0  }
  0x18   :  { %v181_v22 = vld [vmem:[%s7371_s1 + $0x10] sm:$0xff]  ;;  %v182_v24 = vld [vmem:[%s7371_s1 + $0x18] sm:$0xff]  ;;  %v183_v30 = vld [vmem:[%s7371_s1 + $0x20] sm:$0xff]  ;;  %5558 = vset.pattern.permute.xlu0 %v5826_v44  ;;  %5559 = vset.pattern.permute.xlu1 %v5826_v44  ;;  %s5827_s9 = smov 32   ;;  %s5828_s15 = smov 96  }
  0x19   :  { %v184_v32 = vld [vmem:[%s7371_s1 + $0x28] sm:$0xff]  ;;  %s5830_s16 = smov 64  }
  0x1d   :  { %4841 = vmatmul.mubr.msk.bf16.gmra.mrb[8].mxu0 %vm203_vm1, %v172_v13 }
  0xe0   :  { %v247_v15 = vpop.f32.mrb[0].mxu0 }
  0xe1   :  { %v5923_v17 = vadd.f32 %v247_v15, %v179_v14  ;;  %v4834_v18 = vpop.f32.mrb[1].mxu0 }
  0xe2   :  { %v250_v19 = vpop.f32.mrb[2].mxu0 }
  0xe3   :  { %v5925_v20 = vadd.f32 %v250_v19, %v180_v16  ;;  %v4835_v21 = vpop.f32.mrb[3].mxu0  ;;  %4852 = vmatprep.mubr.msk.f32.mxu1 %vm306_vm2, %v5923_v17  ;;  %v420_v38 = vmul.f32 %v5923_v17, %v5923_v17 }
  0xe5   :  { %4853 = vmatmul.mubr.msk.f32.vlgmr.msra.gmra.mrb[0].mxu1 %vm306_vm2, %v5925_v20  ;;  %v421_v39 = vmul.f32 %v5925_v20, %v5925_v20 }
  0xe6   :  { %5417 = vmatpush3.bf16.msra.mxu1 %v7392_v5 }
  0xe7   :  { %5418 = vmatprep.subr.bf16.mxu1 %v7392_v5 }
  0xe8   :  { %v255_v23 = vpop.f32.mrb[4].mxu0 }
  0xe9   :  { %v5939_v25 = vadd.f32 %v255_v23, %v181_v22  ;;  %v4838_v26 = vpop.f32.mrb[5].mxu0 }
  0xea   :  { %v258_v27 = vpop.f32.mrb[6].mxu0  ;;  %5419 = vmatpush3.bf16.msra.mxu1 %v7392_v5 }
  0xeb   :  { %v5942_v28 = vadd.f32 %v258_v27, %v182_v24  ;;  %v4839_v29 = vpop.f32.mrb[7].mxu0  ;;  %4855 = vmatprep.mubr.msk.f32.mxu1 %vm306_vm2, %v5939_v25  ;;  %4878 = vmatprep.subr.bf16.mxu1 %v7383_v1  ;;  %v422_v40 = vmul.f32 %v5939_v25, %v5939_v25 }
  0xed   :  { %4856 = vmatmul.mubr.msk.f32.gmra.mrb[2].mxu1 %vm306_vm2, %v5942_v28  ;;  %v423_v41 = vmul.f32 %v5942_v28, %v5942_v28 }
  0xf0   :  { %v263_v31 = vpop.f32.mrb[8].mxu0 }
  0xf1   :  { %v5955_v33 = vadd.f32 %v263_v31, %v183_v30  ;;  %v4842_v34 = vpop.f32.mrb[9].mxu0  ;;  %v5643_v30 = vld [vmem:[%s7373_s3] sm:$0xff]  }
  0xf2   :  { %v266_v35 = vpop.f32.mrb[10].mxu0  ;;  %v5644_v34 = vld [vmem:[%s7373_s3 + $0x8] sm:$0xff]  }
  0xf3   :  { %v5957_v36 = vadd.f32 %v266_v35, %v184_v32  ;;  %v4843_v37 = vpop.f32.mrb[11].mxu0  ;;  %4858 = vmatprep.mubr.msk.f32.mxu1 %vm306_vm2, %v5955_v33  ;;  %v424_v42 = vmul.f32 %v5955_v33, %v5955_v33 }
  0xf5   :  { %4859 = vmatmul.mubr.msk.f32.gmra.mrb[4].mxu1 %vm306_vm2, %v5957_v36  ;;  %v425_v43 = vmul.f32 %v5957_v36, %v5957_v36 }
  0xf6   :  { %4869 = vmatprep.mubr.msk.f32.mxu1 %vm306_vm2, %v420_v38 }
  0xf9   :  { %4870 = vmatmul.mubr.msk.f32.vlgmr.msra.gmra.mrb[6].mxu1 %vm306_vm2, %v421_v39  ;;  %v28_v39 = vlaneseq }
  0xfa   :  { %4872 = vmatprep.mubr.msk.f32.mxu1 %vm306_vm2, %v422_v40  ;;  %4879 = vmatpush3.bf16.msra.mxu1 %v5643_v30 }
  0xfb   :  { %4880 = vmatprep.subr.bf16.mxu1 %v7383_v1  ;;  %v5990_v40 = vshrl.u32 %v28_v39, 7 }
  0xfd   :  { %4873 = vmatmul.mubr.msk.f32.gmra.mrb[8].mxu1 %vm306_vm2, %v423_v41  ;;  %v5992_v41 = vand.u32 127, %v28_v39 }
  0xfe   :  { %4875 = vmatprep.mubr.msk.f32.mxu1 %vm306_vm2, %v424_v42  ;;  %4881 = vmatpush3.bf16.msra.mxu1 %v5644_v34  ;;  %v5995_v42 = vadd.s32 8, %v5990_v40 }
  0xff   :  { %v5999_v44 = vshra.s32 %v5992_v41, 3 }
 0x101   :  { %4876 = vmatmul.mubr.msk.f32.gmra.mrb[10].mxu1 %vm306_vm2, %v425_v43  ;;  %v7397_v43 = vshra.s32 %v5990_v40, 5 }
 0x102   :  { %4882 = vmatprep.mubr.msk.bf16.mxu1 %vm5824_vm0, %v7383_v1 }
 0x103   :  { %vm64_vm3 = vcmp.eq.s32.totalorder %v7397_v43, %v5999_v44 }
 0x1b8   :  { %v4854_v45 = vpop.f32.mrb[0].mxu1 }
 0x1b9   :  { %v391_v46 = vpop.f32.mrb[1].mxu1  ;;  %v540_v48 = vmul.f32 0.03125, %v4854_v45  ;;  %v6002_v45 = vadd.s32 32, %v5990_v40 }
 0x1ba   :  { %v539_v47 = vmul.f32 0.03125, %v391_v46  ;;  %v6005_v46 = vadd.s32 40, %v5990_v40 }
 0x1bb   :  { %v552_v55 = vmul.f32 %v540_v48, %v540_v48 }
 0x1bc   :  { %565 = vperm.xlu0 %5558, %v539_v47   ;;  %v551_v59 = vmul.f32 %v539_v47, %v539_v47  ;;  %v6008_v47 = vadd.s32 16, %v5990_v40 }
 0x1c0   :  { %570 = vperm.xlu0 %5558, %v540_v48   ;;  %v4857_v49 = vpop.f32.mrb[2].mxu1  ;;  %v6011_v48 = vadd.s32 24, %v5990_v40 }
 0x1c1   :  { %v401_v50 = vpop.f32.mrb[3].mxu1  ;;  %v542_v56 = vmul.f32 0.03125, %v4857_v49  ;;  %v6014_v49 = vadd.s32 64, %v5990_v40 }
 0x1c2   :  { %v541_v51 = vmul.f32 0.03125, %v401_v50  ;;  %v7396_v50 = vshra.s32 %v5995_v42, 5 }
 0x1c3   :  { %v554_v0 = vmul.f32 %v542_v56, %v542_v56 }
 0x1c4   :  { %575 = vperm.xlu0 %5558, %v541_v51   ;;  %v553_v7 = vmul.f32 %v541_v51, %v541_v51  ;;  %v7391_v51 = vshra.s32 %v6002_v45, 5  ;;  %vm65_vm4 = vcmp.eq.s32.totalorder %v7396_v50, %v5999_v44 }
 0x1c6   :  { %vm68_vm5 = vcmp.eq.s32.totalorder %v7391_v51, %v5999_v44 }
 0x1c8   :  { %v4860_v52 = vpop.f32.mrb[4].mxu1 }
 0x1c9   :  { %v411_v53 = vpop.f32.mrb[5].mxu1  ;;  %v544_v2 = vmul.f32 0.03125, %v4860_v52  ;;  %v6022_v52 = vadd.s32 72, %v5990_v40 }
 0x1ca   :  { %v543_v8 = vmul.f32 0.03125, %v411_v53  ;;  %v4312_v53 = vsel %vm64_vm3, 1.0, %v7383_v1 }
 0x1cb   :  { %v556_v14 = vmul.f32 %v544_v2, %v544_v2 }
 0x1cc   :  { %v4871_v54 = vpop.f32.mrb[6].mxu1  ;;  %v555_v18 = vmul.f32 %v543_v8, %v543_v8 }
 0x1cd   :  { %v546_v57 = vmul.f32 0.03125, %v4871_v54  ;;  %v510_v58 = vpop.f32.mrb[7].mxu1  ;;  %v7390_v54 = vshra.s32 %v6005_v46, 5 }
 0x1ce   :  { %v545_v60 = vmul.f32 0.03125, %v510_v58  ;;  %v7386_v58 = vshra.s32 %v6022_v52, 5 }
 0x1cf   :  { %v558_v61 = vsub.f32 %v546_v57, %v552_v55  ;;  %v7395_v55 = vshra.s32 %v6008_v47, 5  ;;  %v7387_v57 = vshra.s32 %v6014_v49, 5  ;;  %vm69_vm6 = vcmp.eq.s32.totalorder %v7390_v54, %v5999_v44 }
 0x1d0   :  { %v557_v62 = vsub.f32 %v545_v60, %v551_v59  ;;  %v4874_v63 = vpop.f32.mrb[8].mxu1  ;;  %v4313_v59 = vsel %vm65_vm4, 1.0, %v7383_v1  ;;  %v4316_v60 = vsel %vm68_vm5, 1.0, %v7383_v1  ;;  %vm73_vm10 = vcmp.eq.s32.totalorder %v7386_v58, %v5999_v44 }
 0x1d1   :  { %v600_v3 = vadd.f32 1e-05, %v558_v61  ;;  %v548_v4 = vmul.f32 0.03125, %v4874_v63  ;;  %v520_v6 = vpop.f32.mrb[9].mxu1  ;;  %vm66_vm7 = vcmp.eq.s32.totalorder %v7395_v55, %v5999_v44  ;;  %v6044_v61 = vpack.i.bf16 %v4313_v59, %v4312_v53 }
 0x1d2   :  { %v547_v9 = vmul.f32 0.03125, %v520_v6  ;;  %v599_v10 = vadd.f32 1e-05, %v557_v62  ;;  %v4317_v62 = vsel %vm69_vm6, 1.0, %v7383_v1  ;;  %v4314_v63 = vsel %vm66_vm7, 1.0, %v7383_v1 }
 0x1d3   :  { %5675 = vrsqrt.f32 %v600_v3  ;;  %v560_v11 = vsub.f32 %v548_v4, %v554_v0  ;;  %v6051_v0 = vpack.i.bf16 %v4317_v62, %v4316_v60  ;;  %vm72_vm9 = vcmp.eq.s32.totalorder %v7387_v57, %v5999_v44 }
 0x1d4   :  { %v559_v12 = vsub.f32 %v547_v9, %v553_v7  ;;  %v4877_v13 = vpop.f32.mrb[10].mxu1  ;;  %5677 = vrsqrt.f32 %v599_v10  ;;  %v4320_v4 = vsel %vm72_vm9, 1.0, %v7383_v1  ;;  %v4321_v6 = vsel %vm73_vm10, 1.0, %v7383_v1 }
 0x1d5   :  { %v550_v15 = vmul.f32 0.03125, %v4877_v13  ;;  %v530_v16 = vpop.f32.mrb[11].mxu1  ;;  %v602_v24 = vadd.f32 1e-05, %v560_v11  ;;  %v6067_v7 = vadd.s32 48, %v5990_v40  ;;  %v6072_v9 = vadd.s32 56, %v5990_v40 }
 0x1d6   :  { %v601_v19 = vadd.f32 1e-05, %v559_v12  ;;  %v549_v21 = vmul.f32 0.03125, %v530_v16  ;;  %v6075_v10 = vadd.s32 96, %v5990_v40  ;;  %v6078_v11 = vadd.s32 104, %v5990_v40 }
 0x1d7   :  { %v562_v22 = vsub.f32 %v550_v15, %v556_v14  ;;  %v7389_v12 = vshra.s32 %v6067_v7, 5  ;;  %v6084_v13 = vadd.s32 80, %v5990_v40  ;;  %v6087_v14 = vadd.s32 88, %v5990_v40 }
 0x1d8   :  { %5679 = vrsqrt.f32 %v601_v19  ;;  %v561_v23 = vsub.f32 %v549_v21, %v555_v18  ;;  %v6090_v15 = vadd.s32 112, %v5990_v40  ;;  %v7388_v16 = vshra.s32 %v6072_v9, 5 }
 0x1d9   :  { %5681 = vrsqrt.f32 %v602_v24  ;;  %v604_v32 = vadd.f32 1e-05, %v562_v22  ;;  %v7381_v18 = vshra.s32 %v6075_v10, 5  ;;  %v7380_v19 = vshra.s32 %v6078_v11, 5 }
 0x1da   :  { %v603_v26 = vadd.f32 1e-05, %v561_v23  ;;  %v6096_v21 = vadd.s32 120, %v5990_v40  ;;  %vm70_vm11 = vcmp.eq.s32.totalorder %v7389_v12, %v5999_v44  ;;  %v7385_v22 = vshra.s32 %v6084_v13, 5 }
 0x1db   :  { %v7382_v23 = vshra.s32 %v6087_v14, 5  ;;  %v7379_v24 = vshra.s32 %v6090_v15, 5  ;;  %vm71_vm12 = vcmp.eq.s32.totalorder %v7388_v16, %v5999_v44  ;;  %vm76_vm13 = vcmp.eq.s32.totalorder %v7381_v18, %v5999_v44 }
 0x1dc   :  { %5683 = vrsqrt.f32 %v603_v26  ;;  %v4318_v26 = vsel %vm70_vm11, 1.0, %v7383_v1  ;;  %vm77_vm14 = vcmp.eq.s32.totalorder %v7380_v19, %v5999_v44  ;;  %vm74_vm15 = vcmp.eq.s32.totalorder %v7385_v22, %v5999_v44 }
 0x1dd   :  { %v5676_v27 = vpop.eup %5675  ;;  %5685 = vrsqrt.f32 %v604_v32  ;;  %v4325_v30 = vsel %vm77_vm14, 1.0, %v7383_v1  ;;  %vm75_vm1 = vcmp.eq.s32.totalorder %v7382_v23, %v5999_v44  ;;  %v4322_v32 = vsel %vm74_vm15, 1.0, %v7383_v1 }
 0x1de   :  { %618 = vperm.xlu1 %5559, %v5676_v27   ;;  %v5678_v29 = vpop.eup %5677  ;;  %v4319_v27 = vsel %vm71_vm12, 1.0, %v7383_v1  ;;  %vm78_vm3 = vcmp.eq.s32.totalorder %v7379_v24, %v5999_v44 }
 0x1df   :  { %v4326_v39 = vsel %vm78_vm3, 1.0, %v7383_v1 }
 0x1e2   :  { %v5680_v31 = vpop.eup %5679  ;;  %613 = vperm.xlu1 %5559, %v5678_v29   ;;  %v4324_v29 = vsel %vm76_vm13, 1.0, %v7383_v1 }
 0x1e3   :  { %623 = vperm.xlu0 %5558, %v5680_v31   ;;  %v5682_v35 = vpop.eup %5681  ;;  %v6122_v31 = vpack.i.bf16 %v4319_v27, %v4318_v26  ;;  %v6130_v34 = vpack.i.bf16 %v4325_v30, %v4324_v29 }
 0x1e6   :  { %580 = vperm.xlu1 %5559, %v542_v56   ;;  %v5684_v37 = vpop.eup %5683  ;;  %v7394_v56 = vshra.s32 %v6011_v48, 5 }
 0x1e7   :  { %585 = vperm.xlu0 %5558, %v543_v8   ;;  %v5686_v38 = vpop.eup %5685  ;;  %v6069_v8 = vpack.i.bf16 %v4321_v6, %v4320_v4  ;;  %v4362_v6 = vld [vmem:[%s7374_s4] ss:$0 sm:$0xff] }
 0x1e8   :  { %vm67_vm8 = vcmp.eq.s32.totalorder %v7394_v56, %v5999_v44 }
 0x1ea   :  { %628 = vperm.xlu1 %5559, %v5682_v35   ;;  %v4323_v35 = vsel %vm75_vm1, 1.0, %v7383_v1 }
 0x1eb   :  { %633 = vperm.xlu0 %5558, %v5684_v37   ;;  %v7378_v37 = vshra.s32 %v6096_v21, 5 }
 0x1ed   :  { %vm79_vm4 = vcmp.eq.s32.totalorder %v7378_v37, %v5999_v44 }
 0x1ee   :  { %590 = vperm.xlu1 %5559, %v544_v2   ;;  %v4315_v2 = vsel %vm67_vm8, 1.0, %v7383_v1  ;;  %v4327_v53 = vsel %vm79_vm4, 1.0, %v7383_v1 }
 0x1ef   :  { %5561 = vrot.lane.b32.xlu0 %v6044_v61, %s5827_s9  ;;  %v6062_v3 = vpack.i.bf16 %v4315_v2, %v4314_v63  ;;  %v6150_v59 = vpack.i.bf16 %v4327_v53, %v4326_v39 }
 0x1f2   :  { %638 = vperm.xlu1 %5559, %v5686_v38   ;;  %v6139_v38 = vpack.i.bf16 %v4323_v35, %v4322_v32  ;;  %v4363_v35 = vld [vmem:[%s7374_s4 + $0x1] ss:$0 sm:$0xff] }
 0x1f3   :  { %5571 = vrot.lane.b32.xlu0 %v6051_v0, %s5827_s9 }
 0x1f6   :  { %5566 = vrot.lane.b32.xlu1 %v6062_v3, %s5827_s9 }
 0x1f7   :  { %5581 = vrot.lane.b32.xlu0 %v6069_v8, %s5827_s9 }
 0x1fa   :  { %5576 = vrot.lane.b32.xlu1 %v6122_v31, %s5827_s9 }
 0x1fb   :  { %5591 = vrot.lane.b32.xlu0 %v6130_v34, %s5827_s9 }
 0x1fe   :  { %5586 = vrot.lane.b32.xlu1 %v6139_v38, %s5827_s9 }
 0x202   :  { %5596 = vrot.lane.b32.xlu1 %v6150_v59, %s5827_s9 }
 0x23b   :  { %v566_v60 = vpop.permute.xlu0 %565 }
 0x23c   :  { %v593_v26 = vsub.f32 %v5923_v17, %v566_v60 }
 0x23f   :  { %v571_v62 = vpop.permute.xlu0 %570 }
 0x240   :  { %v594_v63 = vsub.f32 %v5925_v20, %v571_v62 }
 0x243   :  { %v576_v2 = vpop.permute.xlu0 %575 }
 0x244   :  { %v595_v39 = vsub.f32 %v5939_v25, %v576_v2 }
 0x25d   :  { %v619_v44 = vpop.permute.xlu1 %618 }
 0x25e   :  { %v642_v4 = vmul.f32 %v619_v44, %v594_v63 }
 0x260   :  { %v652_v29 = vmul.f32 %v4362_v6, %v642_v4 }
 0x261   :  { %v614_v27 = vpop.permute.xlu1 %613 }
 0x262   :  { %v641_v30 = vmul.f32 %v614_v27, %v593_v26  ;;  %v624_v32 = vpop.permute.xlu0 %623  ;;  %v662_v37 = vadd.f32 %v4363_v35, %v652_v29 }
 0x263   :  { %v643_v44 = vmul.f32 %v624_v32, %v595_v39 }
 0x264   :  { %v651_v53 = vmul.f32 %v4362_v6, %v641_v30 }
 0x265   :  { %v581_v62 = vpop.permute.xlu1 %580  ;;  %v653_v23 = vmul.f32 %v4362_v6, %v643_v44 }
 0x266   :  { %v661_v63 = vadd.f32 %v4363_v35, %v651_v53  ;;  %v586_v24 = vpop.permute.xlu0 %585  ;;  %v596_v18 = vsub.f32 %v5942_v28, %v581_v62 }
 0x267   :  { %v597_v2 = vsub.f32 %v5955_v33, %v586_v24  ;;  %v663_v29 = vadd.f32 %v4363_v35, %v653_v23  ;;  %v4364_v23 = vld [vmem:[%s7374_s4 + $0x2] ss:$0 sm:$0xff] }
 0x268   :  { %v667_v19 = vpack.c.bf16 %v662_v37, %v661_v63 }
 0x269   :  { %v629_v60 = vpop.permute.xlu1 %628 }
 0x26a   :  { %v644_v4 = vmul.f32 %v629_v60, %v596_v18  ;;  %4883 = vmatmul.mubr.msk.bf16.vlgmr.msra.gmra.mrb[12].mxu1 %vm306_vm2, %v667_v19  ;;  %v634_v26 = vpop.permute.xlu0 %633 }
 0x26b   :  { %4886 = vmatprep.mubr.msk.bf16.mxu1 %vm5824_vm0, %v7383_v1  ;;  %v645_v32 = vmul.f32 %v634_v26, %v597_v2 }
 0x26c   :  { %v654_v27 = vmul.f32 %v4362_v6, %v644_v4 }
 0x26d   :  { %v591_v30 = vpop.permute.xlu1 %590  ;;  %v655_v63 = vmul.f32 %v4362_v6, %v645_v32 }
 0x26e   :  { %v664_v53 = vadd.f32 %v4363_v35, %v654_v27  ;;  %v598_v37 = vsub.f32 %v5957_v36, %v591_v30  ;;  %v5562_v4 = vpop.permute.xlu0 %5561 }
 0x26f   :  { %v665_v19 = vadd.f32 %v4363_v35, %v655_v63  ;;  %v6176_v2 = vunpack.i.h.bf16 %v5562_v4  ;;  %v6178_v27 = vunpack.i.l.bf16 %v5562_v4 }
 0x270   :  { %v668_v39 = vpack.c.bf16 %v664_v53, %v663_v29 }
 0x271   :  { %v639_v62 = vpop.permute.xlu1 %638 }
 0x272   :  { %v646_v44 = vmul.f32 %v639_v62, %v598_v37  ;;  %4887 = vmatmul.mubr.msk.bf16.gmra.mrb[16].mxu1 %vm306_vm2, %v668_v39 }
 0x273   :  { %4890 = vmatprep.mubr.msk.bf16.mxu1 %vm5824_vm0, %v7383_v1 }
 0x274   :  { %v656_v18 = vmul.f32 %v4362_v6, %v646_v44 }
 0x275   :  { %v5567_v6 = vpop.permute.xlu1 %5566 }
 0x276   :  { %v666_v60 = vadd.f32 %v4363_v35, %v656_v18  ;;  %v5569_v37 = vunpack.i.h.bf16 %v5567_v6  ;;  %v6190_v18 = vunpack.i.l.bf16 %v5567_v6 }
 0x278   :  { %v669_v24 = vpack.c.bf16 %v666_v60, %v665_v19 }
 0x27a   :  { %4891 = vmatmul.mubr.msk.bf16.gmra.mrb[20].mxu1 %vm306_vm2, %v669_v24  ;;  %v5572_v24 = vpop.permute.xlu0 %5571 }
 0x27b   :  { %v6200_v22 = vunpack.i.l.bf16 %v5572_v24 }
 0x33d   :  { %v729_v26 = vpop.f32.mrb[12].mxu1 }
 0x33e   :  { %v6180_v30 = vadd.f32 %v4364_v23, %v729_v26  ;;  %v4884_v29 = vpop.f32.mrb[13].mxu1  ;;  %v6192_v26 = vunpack.i.h.bf16 %v5572_v24 }
 0x33f   :  { %v732_v53 = vpop.f32.mrb[14].mxu1  ;;  %v6194_v29 = vmul.f32 0.0, %v5569_v37 }
 0x340   :  { %v6182_v32 = vadd.f32 %v4364_v23, %v732_v53  ;;  %v4885_v35 = vpop.f32.mrb[15].mxu1  ;;  %v752_v39 = vmul.f32 0.35355338, %v6180_v30  ;;  %v822_v63 = vmul.f32 %v6178_v27, %v6180_v30 }
 0x342   :  { %v753_v62 = vmul.f32 0.35355338, %v6182_v32  ;;  %v823_v44 = vmul.f32 %v6176_v2, %v6182_v32  ;;  %v827_v37 = vmul.f32 %v6192_v26, %v6182_v32 }
 0x344   :  { %v926_v19 = vpack.c.bf16 %v753_v62, %v752_v39  ;;  %v930_v60 = vpack.c.bf16 %v823_v44, %v822_v63  ;;  %v5577_v62 = vpop.permute.xlu1 %5576 }
 0x345   :  { %v737_v4 = vpop.f32.mrb[16].mxu1  ;;  %v5579_v44 = vunpack.i.h.bf16 %v5577_v62 }
 0x346   :  { %v6196_v53 = vadd.f32 %v4364_v23, %v737_v4  ;;  %v4888_v35 = vpop.f32.mrb[17].mxu1  ;;  %4910 = vmatprep.mubr.msk.bf16.mxu0 %vm306_vm2, %v926_v19  ;;  %954 = vrot.lane.b32.xlu0 %v930_v60, %s5828_s15  ;;  %v6207_v4 = vunpack.i.l.bf16 %v5577_v62  ;;  %v826_v60 = vmul.f32 %v6200_v22, %v6180_v30 }
 0x347   :  { %v740_v1 = vpop.f32.mrb[18].mxu1  ;;  %v5582_v35 = vpop.permute.xlu0 %5581  ;;  %v6218_v16 = vmul.f32 0.0, %v5579_v44 }
 0x348   :  { %v4889_v6 = vpop.f32.mrb[19].mxu1  ;;  %v824_v39 = vmul.f32 %v6190_v18, %v6196_v53  ;;  %v6209_v19 = vadd.f32 %v4364_v23, %v740_v1  ;;  %v932_v57 = vpack.c.bf16 %v827_v37, %v826_v60  ;;  %v828_v1 = vmul.f32 %v6207_v4, %v6196_v53  ;;  %v5587_v60 = vpop.permute.xlu1 %5586 }
 0x349   :  { %v6231_v44 = vunpack.i.l.bf16 %v5582_v35 }
 0x34a   :  { %v931_v63 = vpack.c.bf16 %v6194_v29, %v824_v39  ;;  %v6216_v39 = vunpack.i.h.bf16 %v5582_v35  ;;  %v755_v62 = vmul.f32 0.35355338, %v6209_v19 }
 0x34b   :  { %v830_v35 = vmul.f32 %v6231_v44, %v6180_v30 }
 0x34c   :  { %956 = vrot.lane.b32.xlu0 %v931_v63, %s5828_s15  ;;  %v831_v56 = vmul.f32 %v6216_v39, %v6182_v32 }
 0x34d   :  { %v745_v24 = vpop.f32.mrb[20].mxu1 }
 0x34e   :  { %v6214_v6 = vadd.f32 %v4364_v23, %v745_v24  ;;  %v4892_v58 = vpop.f32.mrb[21].mxu1 }
 0x34f   :  { %v748_v12 = vpop.f32.mrb[22].mxu1  ;;  %v838_v58 = vmul.f32 %v6178_v27, %v6209_v19 }
 0x350   :  { %v6223_v63 = vadd.f32 %v4364_v23, %v748_v12  ;;  %v4893_v54 = vpop.f32.mrb[23].mxu1  ;;  %958 = vrot.lane.b32.xlu0 %v932_v57, %s5828_s15  ;;  %v756_v24 = vmul.f32 0.35355338, %v6214_v6  ;;  %v839_v37 = vmul.f32 %v6176_v2, %v6214_v6  ;;  %v5589_v23 = vunpack.i.h.bf16 %v5587_v60 }
 0x351   :  { %v6235_v54 = vunpack.i.l.bf16 %v5587_v60  ;;  %v933_v57 = vpack.c.bf16 %v6218_v16, %v828_v1  ;;  %v934_v60 = vpack.c.bf16 %v831_v56, %v830_v35 }
 0x352   :  { %v928_v51 = vpack.c.bf16 %v756_v24, %v755_v62  ;;  %v938_v5 = vpack.c.bf16 %v839_v37, %v838_v58  ;;  %v840_v12 = vmul.f32 %v6190_v18, %v6223_v63  ;;  %v5592_v62 = vpop.permute.xlu0 %5591  ;;  %v842_v58 = vmul.f32 %v6192_v26, %v6214_v6 }
 0x353   :  { %v6248_v37 = vunpack.i.h.bf16 %v5592_v62  ;;  %v6250_v1 = vmul.f32 0.0, %v5589_v23  ;;  %v6257_v55 = vunpack.i.l.bf16 %v5592_v62  ;;  %v843_v50 = vmul.f32 %v6207_v4, %v6223_v63 }
 0x354   :  { %4930 = vmatprep.mubr.msk.bf16.mxu1 %vm306_vm2, %v928_v51  ;;  %1056 = vrot.lane.b32.xlu1 %v938_v5, %s5828_s15  ;;  %v939_v24 = vpack.c.bf16 %v6194_v29, %v840_v12  ;;  %v832_v51 = vmul.f32 %v6235_v54, %v6196_v53  ;;  %v5597_v5 = vpop.permute.xlu1 %5596 }
 0x355   :  { %960 = vrot.lane.b32.xlu0 %v933_v57, %s5828_s15  ;;  %v841_v57 = vmul.f32 %v6200_v22, %v6209_v19  ;;  %v5599_v23 = vunpack.i.h.bf16 %v5597_v5  ;;  %v6262_v43 = vunpack.i.l.bf16 %v5597_v5  ;;  %v835_v35 = vmul.f32 %v6248_v37, %v6182_v32 }
 0x356   :  { %v935_v56 = vpack.c.bf16 %v6250_v1, %v832_v51  ;;  %v834_v62 = vmul.f32 %v6257_v55, %v6180_v30 }
 0x357   :  { %v940_v12 = vpack.c.bf16 %v842_v58, %v841_v57  ;;  %v845_v58 = vmul.f32 %v6216_v39, %v6214_v6  ;;  %v836_v51 = vmul.f32 %v6262_v43, %v6196_v53  ;;  %v844_v57 = vmul.f32 %v6231_v44, %v6209_v19 }
 0x358   :  { %1058 = vrot.lane.b32.xlu1 %v939_v24, %s5828_s15  ;;  %v941_v24 = vpack.c.bf16 %v6218_v16, %v843_v50  ;;  %v936_v5 = vpack.c.bf16 %v835_v35, %v834_v62  ;;  %v846_v50 = vmul.f32 %v6235_v54, %v6223_v63  ;;  %v848_v35 = vmul.f32 %v6248_v37, %v6214_v6 }
 0x359   :  { %962 = vrot.lane.b32.xlu0 %v934_v60, %s5828_s15  ;;  %v6274_v60 = vmul.f32 0.0, %v5599_v23  ;;  %v847_v62 = vmul.f32 %v6257_v55, %v6209_v19 }
 0x35a   :  { %v943_v23 = vpack.c.bf16 %v6250_v1, %v846_v50 }
 0x35c   :  { %1060 = vrot.lane.b32.xlu1 %v940_v12, %s5828_s15  ;;  %v942_v12 = vpack.c.bf16 %v845_v58, %v844_v57  ;;  %v849_v58 = vmul.f32 %v6262_v43, %v6223_v63 }
 0x35d   :  { %964 = vrot.lane.b32.xlu0 %v935_v56, %s5828_s15  ;;  %v937_v56 = vpack.c.bf16 %v6274_v60, %v836_v51 }
 0x360   :  { %1062 = vrot.lane.b32.xlu1 %v941_v24, %s5828_s15  ;;  %v944_v24 = vpack.c.bf16 %v848_v35, %v847_v62 }
 0x361   :  { %966 = vrot.lane.b32.xlu0 %v936_v5, %s5828_s15  ;;  %v945_v5 = vpack.c.bf16 %v6274_v60, %v849_v58 }
 0x364   :  { %1064 = vrot.lane.b32.xlu1 %v942_v12, %s5828_s15 }
 0x365   :  { %968 = vrot.lane.b32.xlu0 %v937_v56, %s5828_s15 }
 0x368   :  { %1066 = vrot.lane.b32.xlu1 %v943_v23, %s5828_s15 }
 0x36c   :  { %1068 = vrot.lane.b32.xlu1 %v944_v24, %s5828_s15 }
 0x370   :  { %1070 = vrot.lane.b32.xlu1 %v945_v5, %s5828_s15 }
 0x3b8   :  { %v955_v51 = vpop.permute.xlu0 %954 }
 0x3b9   :  { %5516 = vmatprep.subr.msk.bf16.mxu0 %vm306_vm2, %v955_v51  ;;  %v977_v57 = vsel %vm306_vm2, %v955_v51, 0 }
 0x3ba   :  { %4895 = vmatpush3.bf16.xpose.msra.mxu0 %v977_v57 }
 0x3be   :  { %v957_v12 = vpop.permute.xlu0 %956 }
 0x3bf   :  { %5517 = vmatprep.subr.msk.bf16.mxu0 %vm306_vm2, %v957_v12  ;;  %v980_v50 = vsel %vm306_vm2, %v957_v12, 0 }
 0x3c2   :  { %4897 = vmatpush3.bf16.xpose.msra.mxu0 %v980_v50  ;;  %v959_v56 = vpop.permute.xlu0 %958 }
 0x3c3   :  { %5518 = vmatprep.subr.msk.bf16.mxu0 %vm306_vm2, %v959_v56  ;;  %v983_v62 = vsel %vm306_vm2, %v959_v56, 0 }
 0x3c6   :  { %v1057_v23 = vpop.permute.xlu1 %1056 }
 0x3c7   :  { %5524 = vmatprep.subr.msk.bf16.mxu1 %vm306_vm2, %v1057_v23  ;;  %v1079_v35 = vsel %vm306_vm2, %v1057_v23, 0  ;;  %v961_v24 = vpop.permute.xlu0 %960 }
 0x3c8   :  { %4915 = vmatpush3.bf16.xpose.msra.mxu1 %v1079_v35  ;;  %v986_v57 = vsel %vm306_vm2, %v961_v24, 0 }
 0x3ca   :  { %v1059_v58 = vpop.permute.xlu1 %1058  ;;  %4899 = vmatpush3.bf16.xpose.msra.mxu0 %v983_v62 }
 0x3cb   :  { %5519 = vmatprep.subr.msk.bf16.mxu0 %vm306_vm2, %v961_v24  ;;  %5525 = vmatprep.subr.msk.bf16.mxu1 %vm306_vm2, %v1059_v58  ;;  %v1082_v5 = vsel %vm306_vm2, %v1059_v58, 0  ;;  %v963_v12 = vpop.permute.xlu0 %962 }
 0x3cc   :  { %v989_v23 = vsel %vm306_vm2, %v963_v12, 0 }
 0x3ce   :  { %v1061_v51 = vpop.permute.xlu1 %1060 }
 0x3cf   :  { %v1085_v50 = vsel %vm306_vm2, %v1061_v51, 0  ;;  %v965_v35 = vpop.permute.xlu0 %964 }
 0x3d0   :  { %4917 = vmatpush3.bf16.xpose.msra.mxu1 %v1082_v5  ;;  %v992_v24 = vsel %vm306_vm2, %v965_v35, 0 }
 0x3d1   :  { %5526 = vmatprep.subr.msk.bf16.mxu1 %vm306_vm2, %v1061_v51 }
 0x3d2   :  { %4901 = vmatpush3.bf16.xpose.msra.mxu0 %v986_v57  ;;  %v1063_v56 = vpop.permute.xlu1 %1062 }
 0x3d3   :  { %5520 = vmatprep.subr.msk.bf16.mxu0 %vm306_vm2, %v963_v12  ;;  %v1088_v62 = vsel %vm306_vm2, %v1063_v56, 0  ;;  %v967_v5 = vpop.permute.xlu0 %966 }
 0x3d4   :  { %v995_v12 = vsel %vm306_vm2, %v967_v5, 0 }
 0x3d6   :  { %v1065_v58 = vpop.permute.xlu1 %1064 }
 0x3d7   :  { %v1091_v51 = vsel %vm306_vm2, %v1065_v58, 0 }
 0x3d8   :  { %4919 = vmatpush3.bf16.xpose.msra.mxu1 %v1085_v50  ;;  %v969_v50 = vpop.permute.xlu0 %968 }
 0x3d9   :  { %5527 = vmatprep.subr.msk.bf16.mxu1 %vm306_vm2, %v1063_v56 }
 0x3da   :  { %4903 = vmatpush3.bf16.xpose.msra.mxu0 %v989_v23  ;;  %v1067_v57 = vpop.permute.xlu1 %1066 }
 0x3db   :  { %5521 = vmatprep.subr.msk.bf16.mxu0 %vm306_vm2, %v965_v35  ;;  %v1094_v56 = vsel %vm306_vm2, %v1067_v57, 0  ;;  %v998_v35 = vsel %vm306_vm2, %v969_v50, 0 }
 0x3de   :  { %v1069_v23 = vpop.permute.xlu1 %1068 }
 0x3e0   :  { %4921 = vmatpush3.bf16.xpose.msra.mxu1 %v1088_v62  ;;  %v754_v62 = vmul.f32 0.35355338, %v6196_v53 }
 0x3e1   :  { %5528 = vmatprep.subr.msk.bf16.mxu1 %vm306_vm2, %v1065_v58  ;;  %v1097_v58 = vsel %vm306_vm2, %v1069_v23, 0 }
 0x3e2   :  { %4905 = vmatpush3.bf16.xpose.msra.mxu0 %v992_v24  ;;  %v927_v24 = vpack.c.bf16 %v754_v62, %v754_v62  ;;  %v7428_v62 = vshra.s32 %v6011_v48, 5 }
 0x3e3   :  { %5522 = vmatprep.subr.msk.bf16.mxu0 %vm306_vm2, %v967_v5 }
 0x3e8   :  { %4923 = vmatpush3.bf16.xpose.msra.mxu1 %v1091_v51  ;;  %v1071_v51 = vpop.permute.xlu1 %1070 }
 0x3e9   :  { %5529 = vmatprep.subr.msk.bf16.mxu1 %vm306_vm2, %v1067_v57  ;;  %v1100_v5 = vsel %vm306_vm2, %v1071_v51, 0  ;;  %v757_v57 = vmul.f32 0.35355338, %v6223_v63 }
 0x3ea   :  { %4907 = vmatpush3.bf16.xpose.msra.mxu0 %v995_v12 }
 0x3eb   :  { %5523 = vmatprep.subr.msk.bf16.mxu0 %vm306_vm2, %v969_v50  ;;  %v929_v12 = vpack.c.bf16 %v757_v57, %v757_v57  ;;  %v112_v50 = vshra.s32 %v5992_v41, 5 }
 0x3ed   :  { %vm116_vm8 = vcmp.eq.s32.totalorder %v7428_v62, %v112_v50 }
 0x3f0   :  { %4925 = vmatpush3.bf16.xpose.msra.mxu1 %v1094_v56  ;;  %v7425_v56 = vshra.s32 %v5990_v40, 5 }
 0x3f1   :  { %5530 = vmatprep.subr.msk.bf16.mxu1 %vm306_vm2, %v1069_v23  ;;  %v7426_v23 = vshra.s32 %v5995_v42, 5  ;;  %v7434_v42 = vshra.s32 %v6002_v45, 5  ;;  %v7439_v45 = vshra.s32 %v6072_v9, 5  ;;  %v5829_v9 = vmov -1e+30  }
 0x3f2   :  { %4909 = vmatpush3.bf16.xpose.msra.mxu0 %v998_v35  ;;  %vm113_vm5 = vcmp.eq.s32.totalorder %v7425_v56, %v112_v50  ;;  %v7427_v35 = vshra.s32 %v6008_v47, 5  ;;  %v7435_v47 = vshra.s32 %v6005_v46, 5 }
 0x3f3   :  { %vm114_vm6 = vcmp.eq.s32.totalorder %v7426_v23, %v112_v50  ;;  %vm117_vm11 = vcmp.eq.s32.totalorder %v7434_v42, %v112_v50  ;;  %vm120_vm15 = vcmp.eq.s32.totalorder %v7439_v45, %v112_v50 }
 0x3f4   :  { %vm115_vm7 = vcmp.eq.s32.totalorder %v7427_v35, %v112_v50  ;;  %vm6343_vm9 = vmpackc.low %vm114_vm6, %vm113_vm5  ;;  %vm118_vm12 = vcmp.eq.s32.totalorder %v7435_v47, %v112_v50 }
 0x3f5   :  { %vm6350_vm10 = vmpackc.low %vm116_vm8, %vm115_vm7 }
 0x3f6   :  { %vm6364_vm13 = vmpackc.low %vm118_vm12, %vm117_vm11 }
 0x3f8   :  { %4927 = vmatpush3.bf16.xpose.msra.mxu1 %v1097_v58 }
 0x3f9   :  { %4911 = vmatmul.mubr.msk.bf16.vlgmr.msra.gmra.mrb[12].mxu0 %vm306_vm2, %v927_v24  ;;  %5531 = vmatprep.subr.msk.bf16.mxu1 %vm306_vm2, %v1071_v51  ;;  %v7431_v24 = vmov 1.0|1.0   ;;  %v7438_v51 = vshra.s32 %v6067_v7, 5  ;;  %v161_v7 = vand.u32 31, %v5992_v41 }
 0x3fa   :  { %5421 = vmatprep.subr.msk.bf16.mxu0 %vm6343_vm9, %v7431_v24 }
 0x3fb   :  { %5423 = vmatpush3.bf16.msk.msra.mxu0 %vm6343_vm9, %v7431_v24  ;;  %vm119_vm14 = vcmp.eq.s32.totalorder %v7438_v51, %v112_v50  ;;  %vm162_vm3 = vcmp.lt.s32.totalorder %v161_v7, 17 }
 0x3fc   :  { %5425 = vmatprep.subr.msk.bf16.mxu0 %vm6350_vm10, %v7431_v24  ;;  %vm6378_vm1 = vmpackc.low %vm120_vm15, %vm119_vm14 }
 0x3ff   :  { %5427 = vmatpush3.bf16.msk.msra.mxu0 %vm6350_vm10, %v7431_v24 }
 0x400   :  { %4929 = vmatpush3.bf16.xpose.msra.mxu1 %v1100_v5  ;;  %5429 = vmatprep.subr.msk.bf16.mxu0 %vm6364_vm13, %v7431_v24  ;;  %v6392_v5 = vsel %vm162_vm3, 0.0, %v5829_v9 }
 0x401   :  { %7442 = vst [vmem:[#allocation5_spill] sm:$0xff] %v6392_v5 }
 0x403   :  { %5431 = vmatpush3.bf16.msk.msra.mxu0 %vm6364_vm13, %v7431_v24 }
 0x404   :  { %5433 = vmatprep.subr.msk.bf16.mxu0 %vm6378_vm1, %v7431_v24 }
 0x407   :  { %4931 = vmatmul.mubr.msk.bf16.vlgmr.msra.gmra.mrb[24].mxu1 %vm306_vm2, %v929_v12  ;;  %5435 = vmatpush3.bf16.msk.msra.mxu0 %vm6378_vm1, %v7431_v24 }
 0x4cc   :  { %v4912_v57 = vpop.f32.mrb[12].mxu0 }
 0x4cd   :  { %v1034_v12 = vpop.f32.mrb[13].mxu0  ;;  %v1152_v42 = vadd.f32 %v4912_v57, %v6392_v5  ;;  %v7445_v57 = vmov 0 }
 0x4ce   :  { %v1150_v56 = vadd.f32 %v1034_v12, %v6392_v5  ;;  %v4913_v23 = vpop.f32.mrb[14].mxu0  ;;  %v7443_v12 = vshra.s32 %v6014_v49, 5  ;;  %v7448_v49 = vshra.s32 %v6084_v13, 5  ;;  %v7454_v13 = vshra.s32 %v6078_v11, 5 }
 0x4cf   :  { %v1037_v35 = vpop.f32.mrb[15].mxu0  ;;  %v7444_v23 = vshra.s32 %v6022_v52, 5  ;;  %v7449_v52 = vshra.s32 %v6087_v14, 5  ;;  %v7455_v14 = vshra.s32 %v6090_v15, 5 }
 0x4d0   :  { %v1151_v62 = vadd.f32 %v1037_v35, %v6392_v5  ;;  %1156 = vmax.xlane.f32.xlu0 %v1150_v56  ;;  %vm121_vm4 = vcmp.eq.s32.totalorder %v7443_v12, %v112_v50  ;;  %vm123_vm7 = vcmp.eq.s32.totalorder %v7448_v49, %v112_v50  ;;  %vm126_vm14 = vcmp.eq.s32.totalorder %v7454_v13, %v112_v50 }
 0x4d1   :  { %vm122_vm5 = vcmp.eq.s32.totalorder %v7444_v23, %v112_v50  ;;  %vm124_vm8 = vcmp.eq.s32.totalorder %v7449_v52, %v112_v50  ;;  %vm127_vm15 = vcmp.eq.s32.totalorder %v7455_v14, %v112_v50 }
 0x4d2   :  { %1158 = vmax.xlane.f32.xlu1 %v1151_v62  ;;  %vm6404_vm6 = vmpackc.low %vm122_vm5, %vm121_vm4 }
 0x4d3   :  { %v7446_v57 = vsel %vm6404_vm6, 4294967295, %v7445_v57  ;;  %5437 = vmatprep.subr.msk.bf16.mxu0 %vm6404_vm6, %v7431_v24  ;;  %vm6418_vm11 = vmpackc.low %vm124_vm8, %vm123_vm7 }
 0x4d4   :  { %1160 = vmax.xlane.f32.xlu0 %v1152_v42  ;;  %7447 = vst [vmem:[#allocation6_spill] sm:$0xff] %v7446_v57  ;;  %5439 = vmatpush3.bf16.msk.msra.mxu0 %vm6404_vm6, %v7431_v24 }
 0x4d5   :  { %5441 = vmatprep.subr.msk.bf16.mxu0 %vm6418_vm11, %v7431_v24 }
 0x4d8   :  { %5443 = vmatpush3.bf16.msk.msra.mxu0 %vm6418_vm11, %v7431_v24 }
 0x4da   :  { %v4932_v47 = vpop.f32.mrb[24].mxu1 }
 0x4db   :  { %v1136_v51 = vpop.f32.mrb[25].mxu1  ;;  %v1155_v35 = vadd.f32 %v4932_v47, %v6392_v5  ;;  %v7450_v47 = vmov 0 }
 0x4dc   :  { %v1153_v41 = vadd.f32 %v1136_v51, %v6392_v5  ;;  %v4933_v45 = vpop.f32.mrb[26].mxu1  ;;  %v7451_v47 = vsel %vm6418_vm11, 4294967295, %v7450_v47  ;;  %v7453_v51 = vshra.s32 %v6075_v10, 5  ;;  %v7460_v10 = vmov 0 }
 0x4dd   :  { %v1139_v7 = vpop.f32.mrb[27].mxu1  ;;  %7452 = vst [vmem:[#allocation7_spill] sm:$0xff] %v7451_v47  ;;  %v7456_v45 = vshra.s32 %v6096_v21, 5 }
 0x4de   :  { %v1154_v9 = vadd.f32 %v1139_v7, %v6392_v5  ;;  %1162 = vmax.xlane.f32.xlu0 %v1153_v41  ;;  %vm125_vm12 = vcmp.eq.s32.totalorder %v7453_v51, %v112_v50  ;;  %v7457_v7 = vmov 0 }
 0x4df   :  { %vm128_vm3 = vcmp.eq.s32.totalorder %v7456_v45, %v112_v50  ;;  %vm6436_vm4 = vmpackc.low %vm126_vm14, %vm125_vm12 }
 0x4e0   :  { %1164 = vmax.xlane.f32.xlu1 %v1154_v9  ;;  %v7458_v7 = vsel %vm6436_vm4, 4294967295, %v7457_v7  ;;  %5445 = vmatprep.subr.msk.bf16.mxu0 %vm6436_vm4, %v7431_v24  ;;  %vm6443_vm5 = vmpackc.low %vm128_vm3, %vm127_vm15 }
 0x4e1   :  { %7459 = vst [vmem:[#allocation8_spill] sm:$0xff] %v7458_v7  ;;  %v7461_v10 = vsel %vm6443_vm5, 4294967295, %v7460_v10  ;;  %5447 = vmatpush3.bf16.msk.msra.mxu0 %vm6436_vm4, %v7431_v24 }
 0x4e2   :  { %1166 = vmax.xlane.f32.xlu0 %v1155_v35  ;;  %7462 = vst [vmem:[#allocation9_spill] sm:$0xff] %v7461_v10  ;;  %5449 = vmatprep.subr.msk.bf16.mxu0 %vm6443_vm5, %v7431_v24 }
 0x4e5   :  { %5451 = vmatpush3.bf16.msk.msra.mxu0 %vm6443_vm5, %v7431_v24 }
 0x4f1   :  { %5601 = vrot.lane.b32.xlu1 %v6044_v61, %s5830_s16 }
 0x4f5   :  { %5611 = vrot.lane.b32.xlu1 %v6051_v0, %s5830_s16 }
 0x4f8   :  { %5606 = vrot.lane.b32.xlu0 %v6062_v3, %s5830_s16 }
 0x4f9   :  { %5616 = vrot.lane.b32.xlu1 %v6122_v31, %s5830_s16 }
 0x4fc   :  { %5621 = vrot.lane.b32.xlu0 %v6069_v8, %s5830_s16 }
 0x4fd   :  { %5626 = vrot.lane.b32.xlu1 %v6139_v38, %s5830_s16 }
 0x500   :  { %5631 = vrot.lane.b32.xlu0 %v6130_v34, %s5830_s16 }
 0x501   :  { %5636 = vrot.lane.b32.xlu1 %v6150_v59, %s5830_s16 }
 0x55d   :  { %v1157_v61 = vpop.xlane.xlu0 %1156 }
 0x55e   :  { %v1168_v0 = vsub.f32 %v1150_v56, %v1157_v61 }
 0x55f   :  { %v1159_v11 = vpop.xlane.xlu1 %1158 }
 0x560   :  { %v1174_v15 = vmul.f32 1.442695, %v1168_v0  ;;  %v1169_v3 = vsub.f32 %v1151_v62, %v1159_v11 }
 0x561   :  { %v1161_v21 = vpop.xlane.xlu0 %1160 }
 0x562   :  { %5687 = vpow2.f32 %v1174_v15  ;;  %v1176_v31 = vmul.f32 1.442695, %v1169_v3  ;;  %v1170_v50 = vsub.f32 %v1152_v42, %v1161_v21 }
 0x564   :  { %5689 = vpow2.f32 %v1176_v31  ;;  %v1178_v8 = vmul.f32 1.442695, %v1170_v50 }
 0x566   :  { %5691 = vpow2.f32 %v1178_v8 }
 0x56b   :  { %v1163_v12 = vpop.xlane.xlu0 %1162 }
 0x56c   :  { %v6472_v38 = vpop.eup %5687  ;;  %v1171_v23 = vsub.f32 %v1153_v41, %v1163_v12 }
 0x56d   :  { %4966 = vmatprep.mubr.f32.mxu0 %v6472_v38  ;;  %v1165_v34 = vpop.xlane.xlu1 %1164 }
 0x56e   :  { %v6475_v59 = vpop.eup %5689  ;;  %v1180_v56 = vmul.f32 1.442695, %v1171_v23  ;;  %v1172_v49 = vsub.f32 %v1154_v9, %v1165_v34 }
 0x56f   :  { %v1167_v52 = vpop.xlane.xlu0 %1166  ;;  %4967 = vmatmul.mubr.f32.vlgmr.msra.gmra.mrb[16].mxu0 %v6475_v59 }
 0x570   :  { %v6478_v62 = vpop.eup %5691  ;;  %5693 = vpow2.f32 %v1180_v56  ;;  %v1182_v42 = vmul.f32 1.442695, %v1172_v49  ;;  %v1173_v51 = vsub.f32 %v1155_v35, %v1167_v52 }
 0x571   :  { %4969 = vmatprep.mubr.f32.mxu0 %v6478_v62  ;;  %v5602_v13 = vpop.permute.xlu1 %5601 }
 0x572   :  { %5695 = vpow2.f32 %v1182_v42  ;;  %v1184_v41 = vmul.f32 1.442695, %v1173_v51  ;;  %v6481_v14 = vunpack.i.h.bf16 %v5602_v13  ;;  %v6483_v45 = vunpack.i.l.bf16 %v5602_v13 }
 0x573   :  { %v5607_v61 = vpop.permute.xlu0 %5606 }
 0x574   :  { %5697 = vpow2.f32 %v1184_v41  ;;  %v5609_v9 = vunpack.i.h.bf16 %v5607_v61  ;;  %v6485_v0 = vunpack.i.l.bf16 %v5607_v61  ;;  %v898_v11 = vmul.f32 %v6483_v45, %v6180_v30 }
 0x575   :  { %v5612_v15 = vpop.permute.xlu1 %5611  ;;  %v899_v35 = vmul.f32 %v6481_v14, %v6182_v32  ;;  %v914_v56 = vmul.f32 %v6483_v45, %v6209_v19  ;;  %v915_v49 = vmul.f32 %v6481_v14, %v6214_v6 }
 0x576   :  { %7463 = vst [vmem:[#allocation10_spill] sm:$0xff] %v6485_v0  ;;  %v6491_v3 = vmul.f32 0.0, %v5609_v9  ;;  %v6493_v21 = vunpack.i.h.bf16 %v5612_v15  ;;  %v6495_v31 = vunpack.i.l.bf16 %v5612_v15  ;;  %v900_v50 = vmul.f32 %v6485_v0, %v6196_v53 }
 0x577   :  { %v1297_v8 = vpack.c.bf16 %v899_v35, %v898_v11  ;;  %v5622_v12 = vpop.permute.xlu0 %5621 }
 0x578   :  { %7464 = vst [vmem:[#allocation11_spill] sm:$0xff] %v6491_v3  ;;  %v1298_v23 = vpack.c.bf16 %v6491_v3, %v900_v50  ;;  %v902_v34 = vmul.f32 %v6495_v31, %v6180_v30  ;;  %v903_v42 = vmul.f32 %v6493_v21, %v6182_v32  ;;  %v6514_v61 = vunpack.i.h.bf16 %v5622_v12 }
 0x579   :  { %1321 = vrot.lane.b32.xlu0 %v1297_v8, %s5830_s16  ;;  %v5617_v52 = vpop.permute.xlu1 %5616  ;;  %v6516_v9 = vunpack.i.l.bf16 %v5622_v12  ;;  %v1305_v50 = vpack.c.bf16 %v915_v49, %v914_v56  ;;  %v917_v5 = vmul.f32 %v6495_v31, %v6209_v19 }
 0x57a   :  { %v6509_v51 = vpop.eup %5693  ;;  %v5619_v13 = vunpack.i.h.bf16 %v5617_v52  ;;  %v6511_v41 = vunpack.i.l.bf16 %v5617_v52  ;;  %1323 = vrot.lane.b32.xlu1 %v1298_v23, %s5830_s16  ;;  %v1299_v11 = vpack.c.bf16 %v903_v42, %v902_v34  ;;  %v916_v52 = vmul.f32 %v6485_v0, %v6223_v63 }
 0x57b   :  { %4970 = vmatmul.mubr.f32.gmra.mrb[18].mxu0 %v6509_v51  ;;  %v5632_v42 = vpop.permute.xlu0 %5631  ;;  %v906_v49 = vmul.f32 %v6516_v9, %v6180_v30 }
 0x57c   :  { %7465 = vst [vmem:[#allocation12_spill] sm:$0xff] %v6511_v41  ;;  %v6519_v15 = vpop.eup %5695  ;;  %v6521_v35 = vmul.f32 0.0, %v5619_v13  ;;  %v904_v8 = vmul.f32 %v6511_v41, %v6196_v53  ;;  %v1306_v0 = vpack.c.bf16 %v6491_v3, %v916_v52  ;;  %v919_v57 = vmul.f32 %v6511_v41, %v6223_v63 }
 0x57d   :  { %1325 = vrot.lane.b32.xlu0 %v1299_v11, %s5830_s16  ;;  %4972 = vmatprep.mubr.f32.mxu0 %v6519_v15  ;;  %v5627_v12 = vpop.permute.xlu1 %5626  ;;  %v907_v11 = vmul.f32 %v6514_v61, %v6182_v32 }
 0x57e   :  { %7466 = vst [vmem:[#allocation13_spill] sm:$0xff] %v6521_v35  ;;  %v6529_v23 = vpop.eup %5697  ;;  %1401 = vrot.lane.b32.xlu1 %v1305_v50, %s5830_s16  ;;  %v1300_v34 = vpack.c.bf16 %v6521_v35, %v904_v8  ;;  %v5629_v13 = vunpack.i.h.bf16 %v5627_v12  ;;  %v6533_v56 = vunpack.i.l.bf16 %v5627_v12  ;;  %v918_v50 = vmul.f32 %v6493_v21, %v6214_v6 }
 0x57f   :  { %4973 = vmatmul.mubr.f32.gmra.mrb[20].mxu0 %v6529_v23  ;;  %v6546_v8 = vunpack.i.l.bf16 %v5632_v42  ;;  %v6549_v12 = vunpack.i.h.bf16 %v5632_v42  ;;  %v1301_v7 = vpack.c.bf16 %v907_v11, %v906_v49  ;;  %v920_v11 = vmul.f32 %v6516_v9, %v6209_v19 }
 0x580   :  { %7467 = vst [vmem:[#allocation14_spill] sm:$0xff] %v6533_v56  ;;  %v6551_v10 = vmul.f32 0.0, %v5629_v13  ;;  %v908_v52 = vmul.f32 %v6533_v56, %v6196_v53  ;;  %v1307_v47 = vpack.c.bf16 %v918_v50, %v917_v5  ;;  %v1308_v5 = vpack.c.bf16 %v6521_v35, %v919_v57 }
 0x581   :  { %1327 = vrot.lane.b32.xlu0 %v1300_v34, %s5830_s16  ;;  %v5637_v3 = vpop.permute.xlu1 %5636  ;;  %v911_v49 = vmul.f32 %v6549_v12, %v6182_v32  ;;  %v922_v32 = vmul.f32 %v6533_v56, %v6223_v63 }
 0x582   :  { %1403 = vrot.lane.b32.xlu1 %v1306_v0, %s5830_s16  ;;  %7468 = vst [vmem:[#allocation15_spill] sm:$0xff] %v6551_v10  ;;  %v910_v0 = vmul.f32 %v6546_v8, %v6180_v30  ;;  %v5639_v34 = vunpack.i.h.bf16 %v5637_v3  ;;  %v6561_v42 = vunpack.i.l.bf16 %v5637_v3  ;;  %v1302_v13 = vpack.c.bf16 %v6551_v10, %v908_v52 }
 0x583   :  { %v923_v52 = vmul.f32 %v6546_v8, %v6209_v19 }
 0x584   :  { %7469 = vst [vmem:[#allocation16_spill] sm:$0xff] %v6561_v42  ;;  %v6573_v30 = vmul.f32 0.0, %v5639_v34  ;;  %v912_v3 = vmul.f32 %v6561_v42, %v6196_v53  ;;  %v924_v34 = vmul.f32 %v6549_v12, %v6214_v6  ;;  %v925_v53 = vmul.f32 %v6561_v42, %v6223_v63 }
 0x585   :  { %1329 = vrot.lane.b32.xlu0 %v1301_v7, %s5830_s16  ;;  %v921_v7 = vmul.f32 %v6514_v61, %v6214_v6 }
 0x586   :  { %1405 = vrot.lane.b32.xlu1 %v1307_v47, %s5830_s16  ;;  %7470 = vst [vmem:[#allocation17_spill] sm:$0xff] %v6573_v30  ;;  %v1303_v47 = vpack.c.bf16 %v911_v49, %v910_v0  ;;  %v1304_v57 = vpack.c.bf16 %v6573_v30, %v912_v3  ;;  %v1310_v0 = vpack.c.bf16 %v6551_v10, %v922_v32 }
 0x587   :  { %v1309_v50 = vpack.c.bf16 %v921_v7, %v920_v11  ;;  %v1312_v49 = vpack.c.bf16 %v6573_v30, %v925_v53 }
 0x589   :  { %1331 = vrot.lane.b32.xlu0 %v1302_v13, %s5830_s16  ;;  %v1311_v13 = vpack.c.bf16 %v924_v34, %v923_v52 }
 0x58a   :  { %1407 = vrot.lane.b32.xlu1 %v1308_v5, %s5830_s16 }
 0x58d   :  { %1333 = vrot.lane.b32.xlu0 %v1303_v47, %s5830_s16 }
 0x58e   :  { %1409 = vrot.lane.b32.xlu1 %v1309_v50, %s5830_s16 }
 0x591   :  { %1335 = vrot.lane.b32.xlu0 %v1304_v57, %s5830_s16 }
 0x592   :  { %1411 = vrot.lane.b32.xlu1 %v1310_v0, %s5830_s16 }
 0x595   :  { %1413 = vrot.lane.b32.xlu0 %v1311_v13, %s5830_s16 }
 0x596   :  { %1415 = vrot.lane.b32.xlu1 %v1312_v49, %s5830_s16  ;;  %v7471_v49 = vmov 0.0  }
 0x5eb   :  { %v1322_v19 = vpop.permute.xlu0 %1321 }
 0x5ec   :  { %4975 = vmatprep.subr.bf16.mxu1 %v1322_v19  ;;  %v1324_v5 = vpop.permute.xlu1 %1323 }
 0x5ed   :  { %4976 = vmatpush3.bf16.msra.mxu1 %v1322_v19 }
 0x5ee   :  { %4977 = vmatprep.subr.bf16.mxu1 %v1324_v5 }
 0x5ef   :  { %v1326_v6 = vpop.permute.xlu0 %1325 }
 0x5f0   :  { %v1402_v11 = vpop.permute.xlu1 %1401 }
 0x5f1   :  { %4978 = vmatpush3.bf16.msra.mxu1 %v1324_v5  ;;  %4995 = vmatprep.subr.bf16.mxu0 %v1402_v11 }
 0x5f2   :  { %4979 = vmatprep.subr.bf16.mxu1 %v1326_v6  ;;  %4996 = vmatpush3.bf16.msra.mxu0 %v1402_v11 }
 0x5f3   :  { %v1328_v63 = vpop.permute.xlu0 %1327 }
 0x5f4   :  { %v1404_v7 = vpop.permute.xlu1 %1403 }
 0x5f5   :  { %4980 = vmatpush3.bf16.msra.mxu1 %v1326_v6  ;;  %4997 = vmatprep.subr.bf16.mxu0 %v1404_v7 }
 0x5f6   :  { %4981 = vmatprep.subr.bf16.mxu1 %v1328_v63  ;;  %4998 = vmatpush3.bf16.msra.mxu0 %v1404_v7 }
 0x5f7   :  { %v1330_v47 = vpop.permute.xlu0 %1329 }
 0x5f8   :  { %v1406_v3 = vpop.permute.xlu1 %1405 }
 0x5f9   :  { %4982 = vmatpush3.bf16.msra.mxu1 %v1328_v63  ;;  %4999 = vmatprep.subr.bf16.mxu0 %v1406_v3 }
 0x5fa   :  { %4983 = vmatprep.subr.bf16.mxu1 %v1330_v47  ;;  %5000 = vmatpush3.bf16.msra.mxu0 %v1406_v3 }
 0x5fb   :  { %v1332_v50 = vpop.permute.xlu0 %1331 }
 0x5fc   :  { %v1408_v32 = vpop.permute.xlu1 %1407 }
 0x5fd   :  { %4984 = vmatpush3.bf16.msra.mxu1 %v1330_v47  ;;  %5001 = vmatprep.subr.bf16.mxu0 %v1408_v32 }
 0x5fe   :  { %4985 = vmatprep.subr.bf16.mxu1 %v1332_v50  ;;  %5002 = vmatpush3.bf16.msra.mxu0 %v1408_v32 }
 0x5ff   :  { %v1334_v57 = vpop.permute.xlu0 %1333 }
 0x600   :  { %v1410_v52 = vpop.permute.xlu1 %1409 }
 0x601   :  { %4986 = vmatpush3.bf16.msra.mxu1 %v1332_v50  ;;  %5003 = vmatprep.subr.bf16.mxu0 %v1410_v52 }
 0x602   :  { %4987 = vmatprep.subr.bf16.mxu1 %v1334_v57  ;;  %5004 = vmatpush3.bf16.msra.mxu0 %v1410_v52 }
 0x603   :  { %v1336_v34 = vpop.permute.xlu0 %1335 }
 0x604   :  { %v1412_v0 = vpop.permute.xlu1 %1411 }
 0x605   :  { %4988 = vmatpush3.bf16.msra.mxu1 %v1334_v57  ;;  %5005 = vmatprep.subr.bf16.mxu0 %v1412_v0 }
 0x606   :  { %4989 = vmatprep.subr.bf16.mxu1 %v1336_v34  ;;  %5006 = vmatpush3.bf16.msra.mxu0 %v1412_v0 }
 0x607   :  { %v1414_v53 = vpop.permute.xlu0 %1413 }
 0x608   :  { %5007 = vmatprep.subr.bf16.mxu0 %v1414_v53  ;;  %v1416_v13 = vpop.permute.xlu1 %1415 }
 0x609   :  { %4990 = vmatpush3.bf16.msra.mxu1 %v1336_v34 }
 0x60a   :  { %5008 = vmatpush3.bf16.msra.mxu0 %v1414_v53  ;;  %5015 = vmatprep.subr.bf16.mxu1 %v7471_v49  ;;  %v5645_v53 = vld [vmem:[%s7373_s3 + $0x10] sm:$0xff]  }
 0x60b   :  { %5009 = vmatprep.subr.bf16.mxu0 %v1416_v13 }
 0x60e   :  { %5010 = vmatpush3.bf16.msra.mxu0 %v1416_v13 }
 0x60f   :  { %5452 = vmatprep.subr.bf16.mxu0 %v7431_v24 }
 0x642   :  { %v4968_v19 = vpop.f32.mrb[16].mxu0 }
 0x643   :  { %5699 = vrcp.f32 %v4968_v19  ;;  %v1252_v5 = vpop.f32.mrb[17].mxu0 }
 0x644   :  { %5701 = vrcp.f32 %v1252_v5 }
 0x64d   :  { %v5700_v6 = vpop.eup %5699 }
 0x64e   :  { %v5702_v11 = vpop.eup %5701  ;;  %v4971_v63 = vpop.f32.mrb[18].mxu0  ;;  %v1288_v7 = vmul.f32 %v5700_v6, %v6475_v59 }
 0x64f   :  { %v1262_v47 = vpop.f32.mrb[19].mxu0  ;;  %v1287_v3 = vmul.f32 %v5702_v11, %v6472_v38 }
 0x650   :  { %5703 = vrcp.f32 %v1262_v47 }
 0x651   :  { %v1293_v50 = vpack.c.bf16 %v1288_v7, %v1287_v3  ;;  %5705 = vrcp.f32 %v4971_v63 }
 0x652   :  { %v4974_v32 = vpop.f32.mrb[20].mxu0 }
 0x653   :  { %5707 = vrcp.f32 %v4974_v32  ;;  %v1272_v57 = vpop.f32.mrb[21].mxu0  ;;  %4991 = vmatprep.mubr.bf16.mxu1 %v1293_v50 }
 0x654   :  { %5709 = vrcp.f32 %v1272_v57 }
 0x65a   :  { %v5704_v52 = vpop.eup %5703 }
 0x65b   :  { %v1289_v34 = vmul.f32 %v5704_v52, %v6478_v62  ;;  %v5706_v0 = vpop.eup %5705 }
 0x65c   :  { %v1290_v5 = vmul.f32 %v5706_v0, %v6509_v51  ;;  %v5646_v51 = vld [vmem:[%s7373_s3 + $0x18] sm:$0xff]   ;;  %v4390_v0 = vld [vmem:[%s7374_s4 + $0x3] ss:$0 sm:$0xff] }
 0x65d   :  { %v5708_v59 = vpop.eup %5707  ;;  %v1294_v13 = vpack.c.bf16 %v1289_v34, %v1289_v34 }
 0x65e   :  { %v5710_v19 = vpop.eup %5709  ;;  %v1292_v38 = vmul.f32 %v5708_v59, %v6529_v23 }
 0x65f   :  { %4992 = vmatmul.mubr.bf16.vlgmr.msra.gmra.mrb[28].mxu1 %v1294_v13  ;;  %v1291_v6 = vmul.f32 %v5710_v19, %v6519_v15 }
 0x660   :  { %5016 = vmatpush3.bf16.msra.mxu1 %v5645_v53  ;;  %5019 = vmatprep.mubr.msk.bf16.mxu1 %vm5824_vm0, %v7471_v49  ;;  %v1296_v11 = vpack.c.bf16 %v1292_v38, %v1292_v38 }
 0x661   :  { %v1295_v62 = vpack.c.bf16 %v1291_v6, %v1290_v5  ;;  %5017 = vmatprep.subr.bf16.mxu1 %v7471_v49 }
 0x663   :  { %5011 = vmatprep.mubr.bf16.mxu0 %v1295_v62 }
 0x664   :  { %5012 = vmatmul.mubr.bf16.vlgmr.msra.gmra.mrb[24].mxu0 %v1296_v11  ;;  %5018 = vmatpush3.bf16.msra.mxu1 %v5646_v51 }
 0x665   :  { %5453 = vmatpush3.bf16.msra.mxu0 %v7431_v24  ;;  %5065 = vmatprep.subr.bf16.mxu1 %v7471_v49 }
 0x666   :  { %5454 = vmatprep.subr.bf16.mxu0 %v7431_v24 }
 0x669   :  { %5455 = vmatpush3.bf16.msra.mxu0 %v7431_v24 }
 0x66a   :  { %5456 = vmatprep.subr.bf16.mxu0 %v7431_v24 }
 0x732   :  { %v4993_v15 = vpop.f32.mrb[28].mxu1 }
 0x733   :  { %v1379_v23 = vpop.f32.mrb[29].mxu1 }
 0x734   :  { %v4994_v63 = vpop.f32.mrb[30].mxu1 }
 0x735   :  { %v1382_v7 = vpop.f32.mrb[31].mxu1 }
 0x736   :  { %v1473_v47 = vpack.c.bf16 %v1382_v7, %v1379_v23 }
 0x737   :  { %v5013_v3 = vpop.f32.mrb[24].mxu0 }
 0x738   :  { %v1459_v50 = vpop.f32.mrb[25].mxu0  ;;  %5020 = vmatmul.mubr.msk.bf16.vlgmr.msra.gmra.mrb[32].mxu1 %vm306_vm2, %v1473_v47 }
 0x739   :  { %v1474_v32 = vpack.c.bf16 %v1459_v50, %v4993_v15  ;;  %v5014_v57 = vpop.f32.mrb[26].mxu0  ;;  %5023 = vmatprep.mubr.msk.bf16.mxu1 %vm5824_vm0, %v7471_v49 }
 0x73a   :  { %v1462_v52 = vpop.f32.mrb[27].mxu0 }
 0x73b   :  { %v1475_v34 = vpack.c.bf16 %v5013_v3, %v1462_v52 }
 0x740   :  { %5024 = vmatmul.mubr.msk.bf16.gmra.mrb[36].mxu1 %vm306_vm2, %v1474_v32 }
 0x741   :  { %5027 = vmatprep.mubr.msk.bf16.mxu1 %vm5824_vm0, %v7471_v49 }
 0x748   :  { %5028 = vmatmul.mubr.msk.bf16.gmra.mrb[40].mxu1 %vm306_vm2, %v1475_v34 }
 0x749   :  { %5069 = vmatprep.mubr.msk.bf16.mxu1 %vm5824_vm0, %v7471_v49 }
 0x80b   :  { %v1535_v53 = vpop.f32.mrb[32].mxu1 }
 0x80c   :  { %v1536_v59 = vadd.f32 %v4390_v0, %v1535_v53  ;;  %v5021_v13 = vpop.f32.mrb[33].mxu1 }
 0x80d   :  { %v1538_v19 = vpop.f32.mrb[34].mxu1 }
 0x80e   :  { %v6629_v38 = vadd.f32 %v1536_v59, %v5923_v17  ;;  %v1539_v5 = vadd.f32 %v4390_v0, %v1538_v19  ;;  %v5022_v6 = vpop.f32.mrb[35].mxu1 }
 0x810   :  { %v6632_v62 = vadd.f32 %v1539_v5, %v5925_v20  ;;  %5039 = vmatprep.mubr.msk.f32.mxu0 %vm306_vm2, %v6629_v38  ;;  %v1677_v34 = vmul.f32 %v6629_v38, %v6629_v38 }
 0x812   :  { %5040 = vmatmul.mubr.msk.f32.vlgmr.msra.gmra.mrb[22].mxu0 %vm306_vm2, %v6632_v62 }
 0x813   :  { %v1543_v11 = vpop.f32.mrb[36].mxu1  ;;  %5457 = vmatpush3.bf16.msra.mxu0 %v7431_v24 }
 0x814   :  { %v1544_v51 = vadd.f32 %v4390_v0, %v1543_v11  ;;  %v5025_v15 = vpop.f32.mrb[37].mxu1  ;;  %5458 = vmatprep.subr.bf16.mxu0 %v7431_v24  ;;  %v5647_v11 = vld [vmem:[%s7373_s3 + $0x20] sm:$0xff]  }
 0x815   :  { %v1546_v17 = vpop.f32.mrb[38].mxu1  ;;  %5066 = vmatpush3.bf16.msra.mxu1 %v5647_v11 }
 0x816   :  { %v6641_v23 = vadd.f32 %v1544_v51, %v5939_v25  ;;  %v1547_v63 = vadd.f32 %v4390_v0, %v1546_v17  ;;  %v5026_v20 = vpop.f32.mrb[39].mxu1  ;;  %v5648_v51 = vld [vmem:[%s7373_s3 + $0x28] sm:$0xff]   ;;  %5067 = vmatprep.subr.bf16.mxu1 %v7471_v49 }
 0x817   :  { %5459 = vmatpush3.bf16.msra.mxu0 %v7431_v24 }
 0x818   :  { %v6645_v7 = vadd.f32 %v1547_v63, %v5942_v28  ;;  %5042 = vmatprep.mubr.msk.f32.mxu0 %vm306_vm2, %v6641_v23  ;;  %5081 = vmatprep.subr.bf16.mxu0 %v7471_v49 }
 0x819   :  { %5068 = vmatpush3.bf16.msra.mxu1 %v5648_v51 }
 0x81a   :  { %5043 = vmatmul.mubr.msk.f32.gmra.mrb[28].mxu0 %vm306_vm2, %v6645_v7  ;;  %5460 = vmatprep.subr.bf16.mxu1 %v7431_v24 }
 0x81b   :  { %v1551_v47 = vpop.f32.mrb[40].mxu1 }
 0x81c   :  { %v1552_v3 = vadd.f32 %v4390_v0, %v1551_v47  ;;  %v5029_v50 = vpop.f32.mrb[41].mxu1 }
 0x81d   :  { %v1554_v25 = vpop.f32.mrb[42].mxu1 }
 0x81e   :  { %v6653_v32 = vadd.f32 %v1552_v3, %v5955_v33  ;;  %v1555_v57 = vadd.f32 %v4390_v0, %v1554_v25  ;;  %v5030_v52 = vpop.f32.mrb[43].mxu1  ;;  %v1678_v33 = vmul.f32 %v6632_v62, %v6632_v62  ;;  %v1679_v0 = vmul.f32 %v6641_v23, %v6641_v23 }
 0x820   :  { %v6656_v28 = vadd.f32 %v1555_v57, %v5957_v36  ;;  %5045 = vmatprep.mubr.msk.f32.mxu0 %vm306_vm2, %v6653_v32  ;;  %v1680_v36 = vmul.f32 %v6645_v7, %v6645_v7  ;;  %v1681_v53 = vmul.f32 %v6653_v32, %v6653_v32 }
 0x822   :  { %5046 = vmatmul.mubr.msk.f32.gmra.mrb[30].mxu0 %vm306_vm2, %v6656_v28  ;;  %v1682_v59 = vmul.f32 %v6656_v28, %v6656_v28 }
 0x823   :  { %5056 = vmatprep.mubr.msk.f32.mxu0 %vm306_vm2, %v1677_v34 }
 0x826   :  { %5057 = vmatmul.mubr.msk.f32.vlgmr.msra.gmra.mrb[32].mxu0 %vm306_vm2, %v1678_v33 }
 0x827   :  { %5059 = vmatprep.mubr.msk.f32.mxu0 %vm306_vm2, %v1679_v0 }
 0x82a   :  { %5060 = vmatmul.mubr.msk.f32.gmra.mrb[34].mxu0 %vm306_vm2, %v1680_v36 }
 0x82b   :  { %5062 = vmatprep.mubr.msk.f32.mxu0 %vm306_vm2, %v1681_v53 }
 0x82e   :  { %5063 = vmatmul.mubr.msk.f32.gmra.mrb[36].mxu0 %vm306_vm2, %v1682_v59 }
 0x82f   :  { %5097 = vmatprep.mubr.msk.bf16.mxu0 %vm5824_vm0, %v7471_v49 }
 0x8e5   :  { %v5041_v13 = vpop.f32.mrb[22].mxu0 }
 0x8e6   :  { %v1797_v19 = vmul.f32 0.03125, %v5041_v13  ;;  %v1648_v5 = vpop.f32.mrb[23].mxu0 }
 0x8e7   :  { %v1796_v6 = vmul.f32 0.03125, %v1648_v5 }
 0x8e8   :  { %1827 = vperm.xlu1 %5559, %v1797_v19   ;;  %v1809_v3 = vmul.f32 %v1797_v19, %v1797_v19 }
 0x8e9   :  { %1822 = vperm.xlu0 %5558, %v1796_v6   ;;  %v1808_v52 = vmul.f32 %v1796_v6, %v1796_v6 }
 0x8ed   :  { %v5044_v15 = vpop.f32.mrb[28].mxu0 }
 0x8ee   :  { %v1658_v17 = vpop.f32.mrb[29].mxu0  ;;  %v1799_v50 = vmul.f32 0.03125, %v5044_v15 }
 0x8ef   :  { %v1798_v34 = vmul.f32 0.03125, %v1658_v17 }
 0x8f0   :  { %v1811_v59 = vmul.f32 %v1799_v50, %v1799_v50 }
 0x8f1   :  { %v1810_v30 = vmul.f32 %v1798_v34, %v1798_v34 }
 0x8f5   :  { %v5047_v63 = vpop.f32.mrb[30].mxu0 }
 0x8f6   :  { %v1668_v20 = vpop.f32.mrb[31].mxu0  ;;  %v1801_v13 = vmul.f32 0.03125, %v5047_v63 }
 0x8f7   :  { %v1800_v42 = vmul.f32 0.03125, %v1668_v20 }
 0x8f8   :  { %v1813_v6 = vmul.f32 %v1801_v13, %v1801_v13 }
 0x8f9   :  { %v5058_v47 = vpop.f32.mrb[32].mxu0 }
 0x8fa   :  { %v1803_v25 = vmul.f32 0.03125, %v5058_v47  ;;  %v1767_v57 = vpop.f32.mrb[33].mxu0 }
 0x8fb   :  { %v1802_v33 = vmul.f32 0.03125, %v1767_v57 }
 0x8fc   :  { %v1815_v0 = vsub.f32 %v1803_v25, %v1809_v3  ;;  %v1812_v3 = vmul.f32 %v1800_v42, %v1800_v42 }
 0x8fd   :  { %v1814_v36 = vsub.f32 %v1802_v33, %v1808_v52  ;;  %v5061_v53 = vpop.f32.mrb[34].mxu0 }
 0x8fe   :  { %v1857_v5 = vadd.f32 1e-05, %v1815_v0  ;;  %v1805_v11 = vmul.f32 0.03125, %v5061_v53  ;;  %v1777_v51 = vpop.f32.mrb[35].mxu0 }
 0x8ff   :  { %v1856_v10 = vadd.f32 1e-05, %v1814_v36  ;;  %v1804_v56 = vmul.f32 0.03125, %v1777_v51 }
 0x900   :  { %5711 = vrsqrt.f32 %v1857_v5  ;;  %v1817_v19 = vsub.f32 %v1805_v11, %v1811_v59 }
 0x901   :  { %5713 = vrsqrt.f32 %v1856_v10  ;;  %v1816_v15 = vsub.f32 %v1804_v56, %v1810_v30  ;;  %v5064_v47 = vpop.f32.mrb[36].mxu0 }
 0x902   :  { %v1807_v17 = vmul.f32 0.03125, %v5064_v47  ;;  %v1787_v57 = vpop.f32.mrb[37].mxu0  ;;  %v1859_v52 = vadd.f32 1e-05, %v1817_v19 }
 0x903   :  { %v1806_v25 = vmul.f32 0.03125, %v1787_v57  ;;  %v1858_v63 = vadd.f32 1e-05, %v1816_v15 }
 0x904   :  { %v1819_v33 = vsub.f32 %v1807_v17, %v1813_v6  ;;  %5715 = vrsqrt.f32 %v1859_v52 }
 0x905   :  { %v1818_v0 = vsub.f32 %v1806_v25, %v1812_v3  ;;  %5717 = vrsqrt.f32 %v1858_v63 }
 0x906   :  { %v1861_v36 = vadd.f32 1e-05, %v1819_v33 }
 0x907   :  { %v1860_v59 = vadd.f32 1e-05, %v1818_v0 }
 0x908   :  { %5719 = vrsqrt.f32 %v1861_v36 }
 0x909   :  { %5721 = vrsqrt.f32 %v1860_v59 }
 0x90a   :  { %v5712_v53 = vpop.eup %5711 }
 0x90b   :  { %v5714_v20 = vpop.eup %5713  ;;  %1875 = vperm.xlu1 %5559, %v5712_v53  }
 0x90c   :  { %1870 = vperm.xlu0 %5558, %v5714_v20  }
 0x90e   :  { %v5716_v10 = vpop.eup %5715 }
 0x90f   :  { %1837 = vperm.xlu1 %5559, %v1799_v50   ;;  %v5718_v56 = vpop.eup %5717  ;;  %v4408_v50 = vld [vmem:[%s7374_s4 + $0x4] ss:$0 sm:$0xff] }
 0x910   :  { %1832 = vperm.xlu0 %5558, %v1798_v34  }
 0x912   :  { %v5720_v30 = vpop.eup %5719 }
 0x913   :  { %1885 = vperm.xlu1 %5559, %v5716_v10   ;;  %v5722_v5 = vpop.eup %5721 }
 0x914   :  { %1880 = vperm.xlu0 %5558, %v5718_v56  }
 0x917   :  { %1847 = vperm.xlu1 %5559, %v1801_v13  }
 0x918   :  { %1842 = vperm.xlu0 %5558, %v1800_v42   ;;  %v4409_v42 = vld [vmem:[%s7374_s4 + $0x5] ss:$0 sm:$0xff] }
 0x91b   :  { %1895 = vperm.xlu1 %5559, %v5720_v30  }
 0x91c   :  { %1890 = vperm.xlu0 %5558, %v5722_v5  }
 0x967   :  { %v1828_v11 = vpop.permute.xlu1 %1827 }
 0x968   :  { %v1823_v51 = vpop.permute.xlu0 %1822  ;;  %v1851_v19 = vsub.f32 %v6632_v62, %v1828_v11 }
 0x969   :  { %v1850_v15 = vsub.f32 %v6629_v38, %v1823_v51 }
 0x98a   :  { %v1876_v34 = vpop.permute.xlu1 %1875 }
 0x98b   :  { %v1899_v47 = vmul.f32 %v1876_v34, %v1851_v19  ;;  %v1871_v6 = vpop.permute.xlu0 %1870 }
 0x98c   :  { %v1898_v13 = vmul.f32 %v1871_v6, %v1850_v15 }
 0x98d   :  { %v1909_v17 = vmul.f32 %v4408_v50, %v1899_v47 }
 0x98e   :  { %v1908_v57 = vmul.f32 %v4408_v50, %v1898_v13  ;;  %v1838_v3 = vpop.permute.xlu1 %1837 }
 0x98f   :  { %v1919_v25 = vadd.f32 %v4409_v42, %v1909_v17  ;;  %v1833_v52 = vpop.permute.xlu0 %1832  ;;  %v1853_v63 = vsub.f32 %v6645_v7, %v1838_v3 }
 0x990   :  { %v1918_v33 = vadd.f32 %v4409_v42, %v1908_v57  ;;  %v1852_v53 = vsub.f32 %v6641_v23, %v1833_v52 }
 0x992   :  { %v1924_v0 = vpack.c.bf16 %v1919_v25, %v1918_v33  ;;  %v1886_v20 = vpop.permute.xlu1 %1885 }
 0x993   :  { %v1901_v36 = vmul.f32 %v1886_v20, %v1853_v63  ;;  %v1881_v59 = vpop.permute.xlu0 %1880  ;;  %v5653_v20 = vld [vmem:[%s7373_s3 + $0x50] sm:$0xff]  }
 0x994   :  { %v1900_v10 = vmul.f32 %v1881_v59, %v1852_v53  ;;  %5070 = vmatmul.mubr.msk.bf16.vlgmr.msra.gmra.mrb[44].mxu1 %vm306_vm2, %v1924_v0  ;;  %v5649_v0 = vld [vmem:[%s7373_s3 + $0x30] sm:$0xff]   ;;  %v5650_v53 = vld [vmem:[%s7373_s3 + $0x38] sm:$0xff]   ;;  %v5655_v59 = vld [vmem:[%s7373_s3 + $0x60] sm:$0xff]  }
 0x995   :  { %v1911_v56 = vmul.f32 %v4408_v50, %v1901_v36  ;;  %5073 = vmatprep.mubr.msk.bf16.mxu1 %vm5824_vm0, %v7471_v49  ;;  %5461 = vmatpush3.bf16.msra.mxu1 %v7431_v24  ;;  %v5654_v36 = vld [vmem:[%s7373_s3 + $0x58] sm:$0xff]  }
 0x996   :  { %v1910_v30 = vmul.f32 %v4408_v50, %v1900_v10  ;;  %v1848_v5 = vpop.permute.xlu1 %1847  ;;  %5462 = vmatprep.subr.bf16.mxu1 %v7431_v24  ;;  %5082 = vmatpush3.bf16.msra.mxu0 %v5649_v0  ;;  %v5656_v10 = vld [vmem:[%s7373_s3 + $0x68] sm:$0xff]  }
 0x997   :  { %v1921_v11 = vadd.f32 %v4409_v42, %v1911_v56  ;;  %v1843_v51 = vpop.permute.xlu0 %1842  ;;  %v1855_v15 = vsub.f32 %v6656_v28, %v1848_v5  ;;  %5083 = vmatprep.subr.bf16.mxu0 %v7471_v49  ;;  %v4410_v56 = vld [vmem:[%s7374_s4 + $0x6] ss:$0 sm:$0xff] }
 0x998   :  { %v1920_v19 = vadd.f32 %v4409_v42, %v1910_v30  ;;  %v1854_v47 = vsub.f32 %v6653_v32, %v1843_v51 }
 0x999   :  { %5463 = vmatpush3.bf16.msra.mxu1 %v7431_v24 }
 0x99a   :  { %v1925_v34 = vpack.c.bf16 %v1921_v11, %v1920_v19  ;;  %v1896_v6 = vpop.permute.xlu1 %1895  ;;  %5464 = vmatprep.subr.bf16.mxu1 %v7431_v24  ;;  %5084 = vmatpush3.bf16.msra.mxu0 %v5650_v53 }
 0x99b   :  { %v1903_v13 = vmul.f32 %v1896_v6, %v1855_v15  ;;  %v1891_v17 = vpop.permute.xlu0 %1890  ;;  %5085 = vmatprep.subr.bf16.mxu0 %v7471_v49 }
 0x99c   :  { %v1902_v57 = vmul.f32 %v1891_v17, %v1854_v47  ;;  %5074 = vmatmul.mubr.msk.bf16.gmra.mrb[48].mxu1 %vm306_vm2, %v1925_v34 }
 0x99d   :  { %v1913_v3 = vmul.f32 %v4408_v50, %v1903_v13  ;;  %5077 = vmatprep.mubr.msk.bf16.mxu1 %vm5824_vm0, %v7471_v49 }
 0x99e   :  { %v1912_v25 = vmul.f32 %v4408_v50, %v1902_v57  ;;  %v5651_v50 = vld [vmem:[%s7373_s3 + $0x40] sm:$0xff]  }
 0x99f   :  { %v1923_v52 = vadd.f32 %v4409_v42, %v1913_v3  ;;  %5086 = vmatpush3.bf16.msra.mxu0 %v5651_v50 }
 0x9a0   :  { %v1922_v33 = vadd.f32 %v4409_v42, %v1912_v25  ;;  %5087 = vmatprep.subr.bf16.mxu0 %v7471_v49  ;;  %v5652_v42 = vld [vmem:[%s7373_s3 + $0x48] sm:$0xff]  }
 0x9a2   :  { %v1926_v63 = vpack.c.bf16 %v1923_v52, %v1922_v33 }
 0x9a3   :  { %5088 = vmatpush3.bf16.msra.mxu0 %v5652_v42 }
 0x9a4   :  { %5078 = vmatmul.mubr.msk.bf16.gmra.mrb[52].mxu1 %vm306_vm2, %v1926_v63  ;;  %5089 = vmatprep.subr.bf16.mxu0 %v7471_v49 }
 0x9a7   :  { %5090 = vmatpush3.bf16.msra.mxu0 %v5653_v20 }
 0x9a8   :  { %5091 = vmatprep.subr.bf16.mxu0 %v7471_v49 }
 0x9ab   :  { %5092 = vmatpush3.bf16.msra.mxu0 %v5654_v36 }
 0x9ac   :  { %5093 = vmatprep.subr.bf16.mxu0 %v7471_v49 }
 0x9af   :  { %5094 = vmatpush3.bf16.msra.mxu0 %v5655_v59 }
 0x9b0   :  { %5095 = vmatprep.subr.bf16.mxu0 %v7471_v49 }
 0x9b3   :  { %5096 = vmatpush3.bf16.msra.mxu0 %v5656_v10 }
 0xa67   :  { %v1986_v30 = vpop.f32.mrb[44].mxu1 }
 0xa68   :  { %v1987_v5 = vadd.f32 %v4410_v56, %v1986_v30  ;;  %v5071_v11 = vpop.f32.mrb[45].mxu1 }
 0xa69   :  { %v1989_v51 = vpop.f32.mrb[46].mxu1 }
 0xa6a   :  { %v2015_v19 = vmul.f32 0.044715, %v1987_v5  ;;  %v1990_v15 = vadd.f32 %v4410_v56, %v1989_v51  ;;  %v5072_v34 = vpop.f32.mrb[47].mxu1 }
 0xa6c   :  { %v2021_v47 = vmul.f32 %v2015_v19, %v1987_v5  ;;  %v2016_v6 = vmul.f32 0.044715, %v1990_v15 }
 0xa6e   :  { %v2027_v13 = vmul.f32 %v2021_v47, %v1987_v5  ;;  %v2022_v17 = vmul.f32 %v2016_v6, %v1990_v15 }
 0xa6f   :  { %v1994_v57 = vpop.f32.mrb[48].mxu1 }
 0xa70   :  { %v2033_v3 = vadd.f32 %v2027_v13, %v1987_v5  ;;  %v2028_v25 = vmul.f32 %v2022_v17, %v1990_v15  ;;  %v1995_v52 = vadd.f32 %v4410_v56, %v1994_v57  ;;  %v5075_v33 = vpop.f32.mrb[49].mxu1 }
 0xa71   :  { %v1997_v63 = vpop.f32.mrb[50].mxu1 }
 0xa72   :  { %v2039_v0 = vmul.f32 0.7978846, %v2033_v3  ;;  %v2034_v53 = vadd.f32 %v2028_v25, %v1990_v15  ;;  %v2017_v50 = vmul.f32 0.044715, %v1995_v52  ;;  %v1998_v42 = vadd.f32 %v4410_v56, %v1997_v63  ;;  %v5076_v20 = vpop.f32.mrb[51].mxu1 }
 0xa74   :  { %5723 = vtanh.f32 %v2039_v0  ;;  %v2040_v36 = vmul.f32 0.7978846, %v2034_v53  ;;  %v2023_v59 = vmul.f32 %v2017_v50, %v1995_v52  ;;  %v2018_v10 = vmul.f32 0.044715, %v1998_v42 }
 0xa76   :  { %5725 = vtanh.f32 %v2040_v36  ;;  %v2029_v30 = vmul.f32 %v2023_v59, %v1995_v52  ;;  %v2024_v11 = vmul.f32 %v2018_v10, %v1998_v42 }
 0xa77   :  { %v2002_v51 = vpop.f32.mrb[52].mxu1 }
 0xa78   :  { %v2030_v19 = vmul.f32 %v2024_v11, %v1998_v42  ;;  %v2003_v34 = vadd.f32 %v4410_v56, %v2002_v51  ;;  %v5079_v47 = vpop.f32.mrb[53].mxu1  ;;  %v2035_v6 = vadd.f32 %v2029_v30, %v1995_v52  ;;  %v2010_v30 = vmul.f32 0.5, %v1990_v15 }
 0xa79   :  { %v2005_v13 = vpop.f32.mrb[54].mxu1  ;;  %v2009_v47 = vmul.f32 0.5, %v1987_v5 }
 0xa7a   :  { %v2019_v17 = vmul.f32 0.044715, %v2003_v34  ;;  %v2006_v57 = vadd.f32 %v4410_v56, %v2005_v13  ;;  %v5080_v3 = vpop.f32.mrb[55].mxu1  ;;  %v2036_v25 = vadd.f32 %v2030_v19, %v1998_v42  ;;  %v2041_v33 = vmul.f32 0.7978846, %v2035_v6 }
 0xa7c   :  { %v2025_v63 = vmul.f32 %v2019_v17, %v2003_v34  ;;  %v2020_v20 = vmul.f32 0.044715, %v2006_v57  ;;  %v2042_v0 = vmul.f32 0.7978846, %v2036_v25  ;;  %5727 = vtanh.f32 %v2041_v33 }
 0xa7e   :  { %v5724_v53 = vpop.eup %5723  ;;  %v2031_v50 = vmul.f32 %v2025_v63, %v2003_v34  ;;  %v2026_v36 = vmul.f32 %v2020_v20, %v2006_v57  ;;  %5729 = vtanh.f32 %v2042_v0  ;;  %v2011_v63 = vmul.f32 0.5, %v1995_v52  ;;  %v4416_v52 = vld [vmem:[%s7374_s4 + $0x7] ss:$0 sm:$0xff] }
 0xa7f   :  { %v2051_v59 = vadd.f32 1.0, %v5724_v53  ;;  %v2012_v20 = vmul.f32 0.5, %v1998_v42 }
 0xa80   :  { %v5726_v10 = vpop.eup %5725  ;;  %v2032_v11 = vmul.f32 %v2026_v36, %v2006_v57  ;;  %v2037_v51 = vadd.f32 %v2031_v50, %v2003_v34  ;;  %v2013_v36 = vmul.f32 0.5, %v2003_v34 }
 0xa81   :  { %v2052_v35 = vadd.f32 1.0, %v5726_v10  ;;  %v2057_v13 = vmul.f32 %v2051_v59, %v2009_v47  ;;  %v2014_v59 = vmul.f32 0.5, %v2006_v57 }
 0xa82   :  { %v2038_v41 = vadd.f32 %v2032_v11, %v2006_v57  ;;  %v2043_v56 = vmul.f32 0.7978846, %v2037_v51 }
 0xa83   :  { %v2058_v19 = vmul.f32 %v2052_v35, %v2010_v30 }
 0xa84   :  { %v2044_v6 = vmul.f32 0.7978846, %v2038_v41  ;;  %5731 = vtanh.f32 %v2043_v56 }
 0xa85   :  { %v2063_v17 = vpack.c.bf16 %v2058_v19, %v2057_v13 }
 0xa86   :  { %v5728_v3 = vpop.eup %5727  ;;  %5733 = vtanh.f32 %v2044_v6 }
 0xa87   :  { %5098 = vmatmul.mubr.bf16.vlgmr.msra.gmra.mrb[40].mxu0 %v2063_v17  ;;  %v2053_v25 = vadd.f32 1.0, %v5728_v3 }
 0xa88   :  { %v5730_v33 = vpop.eup %5729  ;;  %5101 = vmatprep.mubr.msk.bf16.mxu0 %vm5824_vm0, %v7471_v49 }
 0xa89   :  { %v2054_v5 = vadd.f32 1.0, %v5730_v33  ;;  %v2059_v15 = vmul.f32 %v2053_v25, %v2011_v63 }
 0xa8b   :  { %v2060_v0 = vmul.f32 %v2054_v5, %v2012_v20 }
 0xa8d   :  { %v2064_v53 = vpack.c.bf16 %v2060_v0, %v2059_v15 }
 0xa8e   :  { %v5732_v50 = vpop.eup %5731 }
 0xa8f   :  { %5102 = vmatmul.mubr.bf16.gmra.mrb[44].mxu0 %v2064_v53  ;;  %v2055_v35 = vadd.f32 1.0, %v5732_v50 }
 0xa90   :  { %v5734_v41 = vpop.eup %5733  ;;  %5105 = vmatprep.mubr.msk.bf16.mxu0 %vm5824_vm0, %v7471_v49 }
 0xa91   :  { %v2056_v10 = vadd.f32 1.0, %v5734_v41  ;;  %v2061_v11 = vmul.f32 %v2055_v35, %v2013_v36 }
 0xa93   :  { %v2062_v51 = vmul.f32 %v2056_v10, %v2014_v59 }
 0xa95   :  { %v2065_v47 = vpack.c.bf16 %v2062_v51, %v2061_v11 }
 0xa97   :  { %5106 = vmatmul.mubr.bf16.gmra.mrb[48].mxu0 %v2065_v47 }
 0xb5a   :  { %v2152_v42 = vpop.f32.mrb[40].mxu0 }
 0xb5b   :  { %v2153_v30 = vadd.f32 %v4416_v52, %v2152_v42  ;;  %v5099_v56 = vpop.f32.mrb[41].mxu0  ;;  %v5657_v42 = vld [vmem:[%s7373_s3 + $0x70] sm:$0xff]  }
 0xb5c   :  { %v2155_v13 = vpop.f32.mrb[42].mxu0 }
 0xb5d   :  { %v6755_v19 = vadd.f32 %v2153_v30, %v6629_v38  ;;  %v2156_v6 = vadd.f32 %v4416_v52, %v2155_v13  ;;  %v5100_v17 = vpop.f32.mrb[43].mxu0 }
 0xb5f   :  { %v6758_v34 = vadd.f32 %v2156_v6, %v6632_v62  ;;  %5117 = vmatprep.mubr.msk.f32.mxu1 %vm306_vm2, %v6755_v19  ;;  %v2332_v41 = vmul.f32 %v6755_v19, %v6755_v19 }
 0xb61   :  { %5118 = vmatmul.mubr.msk.f32.vlgmr.msra.gmra.mrb[56].mxu1 %vm306_vm2, %v6758_v34 }
 0xb62   :  { %v2160_v57 = vpop.f32.mrb[44].mxu0  ;;  %5465 = vmatpush3.bf16.msra.mxu1 %v7431_v24 }
 0xb63   :  { %v2161_v3 = vadd.f32 %v4416_v52, %v2160_v57  ;;  %v5103_v25 = vpop.f32.mrb[45].mxu0  ;;  %5466 = vmatprep.subr.bf16.mxu1 %v7431_v24 }
 0xb64   :  { %v2163_v38 = vpop.f32.mrb[46].mxu0 }
 0xb65   :  { %v6767_v33 = vadd.f32 %v2161_v3, %v6641_v23  ;;  %v2164_v63 = vadd.f32 %v4416_v52, %v2163_v38  ;;  %v5104_v62 = vpop.f32.mrb[47].mxu0 }
 0xb66   :  { %5467 = vmatpush3.bf16.msra.mxu1 %v7431_v24 }
 0xb67   :  { %v6771_v20 = vadd.f32 %v2164_v63, %v6645_v7  ;;  %5120 = vmatprep.mubr.msk.f32.mxu1 %vm306_vm2, %v6767_v33  ;;  %5143 = vmatprep.subr.bf16.mxu1 %v7471_v49  ;;  %v2334_v36 = vmul.f32 %v6767_v33, %v6767_v33 }
 0xb69   :  { %5121 = vmatmul.mubr.msk.f32.gmra.mrb[58].mxu1 %vm306_vm2, %v6771_v20 }
 0xb6a   :  { %v2168_v5 = vpop.f32.mrb[48].mxu0 }
 0xb6b   :  { %v2169_v15 = vadd.f32 %v4416_v52, %v2168_v5  ;;  %v5107_v0 = vpop.f32.mrb[49].mxu0 }
 0xb6c   :  { %v2171_v23 = vpop.f32.mrb[50].mxu0 }
 0xb6d   :  { %v6779_v53 = vadd.f32 %v2169_v15, %v6653_v32  ;;  %v2172_v50 = vadd.f32 %v4416_v52, %v2171_v23  ;;  %v5108_v35 = vpop.f32.mrb[51].mxu0  ;;  %v2333_v32 = vmul.f32 %v6758_v34, %v6758_v34 }
 0xb6f   :  { %v6782_v7 = vadd.f32 %v2172_v50, %v6656_v28  ;;  %5123 = vmatprep.mubr.msk.f32.mxu1 %vm306_vm2, %v6779_v53  ;;  %v2335_v28 = vmul.f32 %v6771_v20, %v6771_v20  ;;  %v2336_v59 = vmul.f32 %v6779_v53, %v6779_v53 }
 0xb71   :  { %7472 = vst [vmem:[#allocation18_spill] sm:$0xff] %v6782_v7  ;;  %5124 = vmatmul.mubr.msk.f32.gmra.mrb[60].mxu1 %vm306_vm2, %v6782_v7  ;;  %v2337_v10 = vmul.f32 %v6782_v7, %v6782_v7 }
 0xb72   :  { %5134 = vmatprep.mubr.msk.f32.mxu1 %vm306_vm2, %v2332_v41 }
 0xb75   :  { %5135 = vmatmul.mubr.msk.f32.vlgmr.msra.gmra.mrb[62].mxu1 %vm306_vm2, %v2333_v32 }
 0xb76   :  { %5137 = vmatprep.mubr.msk.f32.mxu1 %vm306_vm2, %v2334_v36  ;;  %5144 = vmatpush3.bf16.msra.mxu1 %v5657_v42 }
 0xb77   :  { %5145 = vmatprep.subr.bf16.mxu1 %v7471_v49 }
 0xb79   :  { %5138 = vmatmul.mubr.msk.f32.gmra.mrb[64].mxu1 %vm306_vm2, %v2335_v28 }
 0xb7a   :  { %5140 = vmatprep.mubr.msk.f32.mxu1 %vm306_vm2, %v2336_v59 }
 0xb7d   :  { %5141 = vmatmul.mubr.msk.f32.gmra.mrb[66].mxu1 %vm306_vm2, %v2337_v10 }
 0xb7e   :  { %5147 = vmatprep.mubr.msk.bf16.mxu1 %vm5824_vm0, %v7471_v49 }
 0xc34   :  { %v5119_v11 = vpop.f32.mrb[56].mxu1 }
 0xc35   :  { %v2452_v51 = vmul.f32 0.03125, %v5119_v11  ;;  %v2303_v47 = vpop.f32.mrb[57].mxu1 }
 0xc36   :  { %v2451_v52 = vmul.f32 0.03125, %v2303_v47 }
 0xc37   :  { %2482 = vperm.xlu1 %5559, %v2452_v51   ;;  %v2464_v57 = vmul.f32 %v2452_v51, %v2452_v51 }
 0xc38   :  { %2477 = vperm.xlu0 %5558, %v2451_v52   ;;  %v2463_v63 = vmul.f32 %v2451_v52, %v2451_v52 }
 0xc3c   :  { %v5122_v30 = vpop.f32.mrb[58].mxu1 }
 0xc3d   :  { %v2313_v56 = vpop.f32.mrb[59].mxu1  ;;  %v2454_v3 = vmul.f32 0.03125, %v5122_v30 }
 0xc3e   :  { %v2453_v62 = vmul.f32 0.03125, %v2313_v56 }
 0xc3f   :  { %v2466_v50 = vmul.f32 %v2454_v3, %v2454_v3 }
 0xc40   :  { %v2465_v28 = vmul.f32 %v2453_v62, %v2453_v62 }
 0xc44   :  { %v5125_v13 = vpop.f32.mrb[60].mxu1 }
 0xc45   :  { %v2323_v6 = vpop.f32.mrb[61].mxu1  ;;  %v2456_v35 = vmul.f32 0.03125, %v5125_v13 }
 0xc46   :  { %v2455_v59 = vmul.f32 0.03125, %v2323_v6 }
 0xc47   :  { %v2468_v52 = vmul.f32 %v2456_v35, %v2456_v35 }
 0xc48   :  { %v5136_v17 = vpop.f32.mrb[62].mxu1 }
 0xc49   :  { %v2458_v25 = vmul.f32 0.03125, %v5136_v17  ;;  %v2422_v38 = vpop.f32.mrb[63].mxu1  ;;  %v2467_v17 = vmul.f32 %v2455_v59, %v2455_v59 }
 0xc4a   :  { %v2457_v5 = vmul.f32 0.03125, %v2422_v38 }
 0xc4b   :  { %v2470_v15 = vsub.f32 %v2458_v25, %v2464_v57 }
 0xc4c   :  { %v2469_v0 = vsub.f32 %v2457_v5, %v2463_v63  ;;  %v5139_v23 = vpop.f32.mrb[64].mxu1 }
 0xc4d   :  { %v2512_v41 = vadd.f32 1e-05, %v2470_v15  ;;  %v2460_v32 = vmul.f32 0.03125, %v5139_v23  ;;  %v2432_v36 = vpop.f32.mrb[65].mxu1  ;;  %v5658_v23 = vld [vmem:[%s7373_s3 + $0x78] sm:$0xff]  }
 0xc4e   :  { %v2511_v10 = vadd.f32 1e-05, %v2469_v0  ;;  %v2459_v11 = vmul.f32 0.03125, %v2432_v36  ;;  %5146 = vmatpush3.bf16.msra.mxu1 %v5658_v23 }
 0xc4f   :  { %5735 = vrsqrt.f32 %v2512_v41  ;;  %v2472_v51 = vsub.f32 %v2460_v32, %v2466_v50 }
 0xc50   :  { %5737 = vrsqrt.f32 %v2511_v10  ;;  %v2471_v47 = vsub.f32 %v2459_v11, %v2465_v28  ;;  %v5142_v42 = vpop.f32.mrb[66].mxu1  ;;  %v4473_v11 = vld [vmem:[%s7374_s4 + $0x8] ss:$0 sm:$0xff] }
 0xc51   :  { %v2462_v30 = vmul.f32 0.03125, %v5142_v42  ;;  %v2442_v56 = vpop.f32.mrb[67].mxu1  ;;  %v2514_v25 = vadd.f32 1e-05, %v2472_v51 }
 0xc52   :  { %v2461_v57 = vmul.f32 0.03125, %v2442_v56  ;;  %v2513_v13 = vadd.f32 1e-05, %v2471_v47 }
 0xc53   :  { %v2474_v38 = vsub.f32 %v2462_v30, %v2468_v52  ;;  %5739 = vrsqrt.f32 %v2514_v25 }
 0xc54   :  { %v2473_v63 = vsub.f32 %v2461_v57, %v2467_v17  ;;  %5741 = vrsqrt.f32 %v2513_v13 }
 0xc55   :  { %v2516_v15 = vadd.f32 1e-05, %v2474_v38 }
 0xc56   :  { %v2515_v0 = vadd.f32 1e-05, %v2473_v63 }
 0xc57   :  { %5743 = vrsqrt.f32 %v2516_v15 }
 0xc58   :  { %5745 = vrsqrt.f32 %v2515_v0 }
 0xc59   :  { %v5736_v5 = vpop.eup %5735 }
 0xc5a   :  { %v5738_v6 = vpop.eup %5737  ;;  %2530 = vperm.xlu1 %5559, %v5736_v5  }
 0xc5b   :  { %2525 = vperm.xlu0 %5558, %v5738_v6  }
 0xc5d   :  { %v5740_v50 = vpop.eup %5739 }
 0xc5e   :  { %2492 = vperm.xlu1 %5559, %v2454_v3   ;;  %v5742_v41 = vpop.eup %5741 }
 0xc5f   :  { %2487 = vperm.xlu0 %5558, %v2453_v62  }
 0xc61   :  { %v5744_v32 = vpop.eup %5743 }
 0xc62   :  { %2540 = vperm.xlu1 %5559, %v5740_v50   ;;  %v5746_v36 = vpop.eup %5745 }
 0xc63   :  { %2535 = vperm.xlu0 %5558, %v5742_v41  }
 0xc66   :  { %2502 = vperm.xlu1 %5559, %v2456_v35   ;;  %v4474_v35 = vld [vmem:[%s7374_s4 + $0x9] ss:$0 sm:$0xff] }
 0xc67   :  { %2497 = vperm.xlu0 %5558, %v2455_v59  }
 0xc6a   :  { %2550 = vperm.xlu1 %5559, %v5744_v32  }
 0xc6b   :  { %2545 = vperm.xlu0 %5558, %v5746_v36  }
 0xcb6   :  { %v2483_v28 = vpop.permute.xlu1 %2482 }
 0xcb7   :  { %v2478_v3 = vpop.permute.xlu0 %2477  ;;  %v2506_v62 = vsub.f32 %v6758_v34, %v2483_v28 }
 0xcb8   :  { %v2505_v10 = vsub.f32 %v6755_v19, %v2478_v3 }
 0xcd9   :  { %v2531_v51 = vpop.permute.xlu1 %2530 }
 0xcda   :  { %v2554_v47 = vmul.f32 %v2531_v51, %v2506_v62  ;;  %v2526_v42 = vpop.permute.xlu0 %2525 }
 0xcdb   :  { %v2553_v59 = vmul.f32 %v2526_v42, %v2505_v10 }
 0xcdc   :  { %v2564_v52 = vmul.f32 %v4473_v11, %v2554_v47 }
 0xcdd   :  { %v2563_v30 = vmul.f32 %v4473_v11, %v2553_v59  ;;  %v2493_v56 = vpop.permute.xlu1 %2492 }
 0xcde   :  { %v2574_v17 = vadd.f32 %v4474_v35, %v2564_v52  ;;  %v2488_v57 = vpop.permute.xlu0 %2487  ;;  %v2508_v38 = vsub.f32 %v6771_v20, %v2493_v56 }
 0xcdf   :  { %v2573_v25 = vadd.f32 %v4474_v35, %v2563_v30  ;;  %v2507_v63 = vsub.f32 %v6767_v33, %v2488_v57 }
 0xce1   :  { %v2579_v13 = vpack.c.bf16 %v2574_v17, %v2573_v25  ;;  %v2541_v5 = vpop.permute.xlu1 %2540  ;;  %v4475_v25 = vld [vmem:[%s7374_s4 + $0xa] ss:$0 sm:$0xff] }
 0xce2   :  { %v2556_v6 = vmul.f32 %v2541_v5, %v2508_v38  ;;  %v2536_v15 = vpop.permute.xlu0 %2535 }
 0xce3   :  { %v2555_v0 = vmul.f32 %v2536_v15, %v2507_v63  ;;  %5148 = vmatmul.mubr.msk.bf16.vlgmr.msra.gmra.mrb[68].mxu1 %vm306_vm2, %v2579_v13 }
 0xce4   :  { %v2566_v23 = vmul.f32 %v4473_v11, %v2556_v6  ;;  %5151 = vmatprep.mubr.msk.bf16.mxu1 %vm5824_vm0, %v7471_v49 }
 0xce5   :  { %v2565_v50 = vmul.f32 %v4473_v11, %v2555_v0  ;;  %v2503_v41 = vpop.permute.xlu1 %2502 }
 0xce6   :  { %v2576_v32 = vadd.f32 %v4474_v35, %v2566_v23  ;;  %v2498_v36 = vpop.permute.xlu0 %2497  ;;  %v2510_v3 = vsub.f32 %v6782_v7, %v2503_v41 }
 0xce7   :  { %v2575_v28 = vadd.f32 %v4474_v35, %v2565_v50  ;;  %v2509_v10 = vsub.f32 %v6779_v53, %v2498_v36 }
 0xce9   :  { %v2580_v62 = vpack.c.bf16 %v2576_v32, %v2575_v28  ;;  %v2551_v51 = vpop.permute.xlu1 %2550 }
 0xcea   :  { %v2558_v47 = vmul.f32 %v2551_v51, %v2510_v3  ;;  %v2546_v42 = vpop.permute.xlu0 %2545 }
 0xceb   :  { %v2557_v59 = vmul.f32 %v2546_v42, %v2509_v10  ;;  %5152 = vmatmul.mubr.msk.bf16.gmra.mrb[72].mxu1 %vm306_vm2, %v2580_v62 }
 0xcec   :  { %v2568_v52 = vmul.f32 %v4473_v11, %v2558_v47  ;;  %5155 = vmatprep.mubr.msk.bf16.mxu1 %vm5824_vm0, %v7471_v49 }
 0xced   :  { %v2567_v30 = vmul.f32 %v4473_v11, %v2557_v59 }
 0xcee   :  { %v2578_v56 = vadd.f32 %v4474_v35, %v2568_v52 }
 0xcef   :  { %v2577_v17 = vadd.f32 %v4474_v35, %v2567_v30 }
 0xcf1   :  { %v2581_v57 = vpack.c.bf16 %v2578_v56, %v2577_v17 }
 0xcf3   :  { %5156 = vmatmul.mubr.msk.bf16.gmra.mrb[76].mxu1 %vm306_vm2, %v2581_v57 }
 0xdb6   :  { %v2641_v38 = vpop.f32.mrb[68].mxu1 }
 0xdb7   :  { %v2642_v13 = vadd.f32 %v4475_v25, %v2641_v38  ;;  %v5149_v63 = vpop.f32.mrb[69].mxu1 }
 0xdb8   :  { %v2644_v5 = vpop.f32.mrb[70].mxu1 }
 0xdb9   :  { %v2645_v6 = vadd.f32 %v4475_v25, %v2644_v5  ;;  %v5150_v15 = vpop.f32.mrb[71].mxu1  ;;  %v2664_v0 = vmul.f32 0.35355338, %v2642_v13  ;;  %v2670_v23 = vmul.f32 %v6178_v27, %v2642_v13  ;;  %v2673_v11 = vmul.f32 %v6200_v22, %v2642_v13 }
 0xdba   :  { %v6840_v35 = vmul.f32 %v6231_v44, %v2642_v13  ;;  %v6843_v50 = vmul.f32 %v6257_v55, %v2642_v13  ;;  %v6846_v41 = vmul.f32 %v6483_v45, %v2642_v13  ;;  %v6849_v32 = vmul.f32 %v6495_v31, %v2642_v13 }
 0xdbb   :  { %v2665_v36 = vmul.f32 0.35355338, %v2645_v6  ;;  %v2671_v28 = vmul.f32 %v6176_v2, %v2645_v6  ;;  %v2674_v3 = vmul.f32 %v6192_v26, %v2645_v6  ;;  %v6854_v62 = vmul.f32 %v6216_v39, %v2645_v6 }
 0xdbc   :  { %v6857_v10 = vmul.f32 %v6248_v37, %v2645_v6  ;;  %v6860_v51 = vmul.f32 %v6481_v14, %v2645_v6  ;;  %v6863_v47 = vmul.f32 %v6493_v21, %v2645_v6  ;;  %v6866_v42 = vmul.f32 %v6516_v9, %v2642_v13 }
 0xdbd   :  { %v2718_v59 = vpack.c.bf16 %v2665_v36, %v2664_v0  ;;  %v2722_v52 = vpack.c.bf16 %v2671_v28, %v2670_v23  ;;  %v2724_v30 = vpack.c.bf16 %v2674_v3, %v2673_v11  ;;  %v2726_v56 = vpack.c.bf16 %v6854_v62, %v6840_v35 }
 0xdbe   :  { %v2649_v17 = vpop.f32.mrb[72].mxu1  ;;  %v6877_v5 = vmul.f32 %v6514_v61, %v2645_v6  ;;  %v6888_v28 = vmul.f32 %v6549_v12, %v2645_v6 }
 0xdbf   :  { %v6879_v15 = vadd.f32 %v4475_v25, %v2649_v17  ;;  %v5153_v0 = vpop.f32.mrb[73].mxu1  ;;  %5175 = vmatprep.mubr.msk.bf16.mxu0 %vm306_vm2, %v2718_v59  ;;  %2746 = vrot.lane.b32.xlu0 %v2722_v52, %s5828_s15  ;;  %v6894_v59 = vmul.f32 %v6546_v8, %v2642_v13 }
 0xdc0   :  { %v2652_v23 = vpop.f32.mrb[74].mxu1 }
 0xdc1   :  { %v5154_v35 = vpop.f32.mrb[75].mxu1  ;;  %v2672_v36 = vmul.f32 %v6190_v18, %v6879_v15  ;;  %v2653_v3 = vadd.f32 %v4475_v25, %v2652_v23  ;;  %v2675_v17 = vmul.f32 %v6207_v4, %v6879_v15 }
 0xdc3   :  { %v2723_v62 = vpack.c.bf16 %v6194_v29, %v2672_v36  ;;  %v2725_v6 = vpack.c.bf16 %v6218_v16, %v2675_v17  ;;  %v2682_v23 = vmul.f32 %v6178_v27, %v2653_v3  ;;  %v2667_v63 = vmul.f32 0.35355338, %v2653_v3 }
 0xdc4   :  { %v2685_v38 = vmul.f32 %v6200_v22, %v2653_v3  ;;  %v2688_v57 = vmul.f32 %v6231_v44, %v2653_v3  ;;  %v2691_v13 = vmul.f32 %v6257_v55, %v2653_v3 }
 0xdc5   :  { %2748 = vrot.lane.b32.xlu0 %v2723_v62, %s5828_s15  ;;  %v6905_v62 = vmul.f32 %v6483_v45, %v2653_v3 }
 0xdc6   :  { %v2657_v52 = vpop.f32.mrb[76].mxu1 }
 0xdc7   :  { %v2658_v35 = vadd.f32 %v4475_v25, %v2657_v52  ;;  %v5157_v11 = vpop.f32.mrb[77].mxu1 }
 0xdc8   :  { %v2660_v36 = vpop.f32.mrb[78].mxu1 }
 0xdc9   :  { %v6907_v7 = vadd.f32 %v4475_v25, %v2660_v36  ;;  %2750 = vrot.lane.b32.xlu0 %v2724_v30, %s5828_s15  ;;  %v5158_v11 = vpop.f32.mrb[79].mxu1  ;;  %v2683_v17 = vmul.f32 %v6176_v2, %v2658_v35  ;;  %v2668_v52 = vmul.f32 0.35355338, %v2658_v35  ;;  %v2686_v27 = vmul.f32 %v6192_v26, %v2658_v35 }
 0xdca   :  { %v2689_v0 = vmul.f32 %v6216_v39, %v2658_v35  ;;  %v2692_v22 = vmul.f32 %v6248_v37, %v2658_v35  ;;  %v6915_v44 = vmul.f32 %v6481_v14, %v2658_v35  ;;  %v6918_v55 = vmul.f32 %v6493_v21, %v2658_v35 }
 0xdcb   :  { %v2730_v45 = vpack.c.bf16 %v2683_v17, %v2682_v23  ;;  %v2720_v25 = vpack.c.bf16 %v2668_v52, %v2667_v63  ;;  %v2684_v30 = vmul.f32 %v6190_v18, %v6907_v7  ;;  %v2732_v36 = vpack.c.bf16 %v2686_v27, %v2685_v38 }
 0xdcc   :  { %v2734_v2 = vpack.c.bf16 %v2689_v0, %v2688_v57  ;;  %v2736_v11 = vpack.c.bf16 %v2692_v22, %v2691_v13  ;;  %v6923_v26 = vmul.f32 %v6495_v31, %v2653_v3  ;;  %v3097_v39 = vpack.c.bf16 %v6915_v44, %v6905_v62  ;;  %v7487_v62 = vld [vmem:[#allocation15_spill] sm:$0xff] }
 0xdcd   :  { %2752 = vrot.lane.b32.xlu0 %v2725_v6, %s5828_s15  ;;  %2848 = vrot.lane.b32.xlu1 %v2730_v45, %s5828_s15  ;;  %v2731_v18 = vpack.c.bf16 %v6194_v29, %v2684_v30  ;;  %v2678_v14 = vmul.f32 %v6235_v54, %v6879_v15  ;;  %v6936_v21 = vmul.f32 %v6516_v9, %v2653_v3 }
 0xdce   :  { %5195 = vmatprep.mubr.msk.bf16.mxu1 %vm306_vm2, %v2720_v25  ;;  %v3099_v37 = vpack.c.bf16 %v6918_v55, %v6923_v26  ;;  %v6939_v31 = vmul.f32 %v6514_v61, %v2658_v35  ;;  %v6942_v57 = vmul.f32 %v6546_v8, %v2653_v3  ;;  %v6945_v38 = vmul.f32 %v6549_v12, %v2658_v35  ;;  %v7490_v55 = vld [vmem:[#allocation17_spill] sm:$0xff] }
 0xdcf   :  { %v2727_v63 = vpack.c.bf16 %v6250_v1, %v2678_v14  ;;  %v2687_v61 = vmul.f32 %v6207_v4, %v6907_v7  ;;  %v2681_v12 = vmul.f32 %v6262_v43, %v6879_v15  ;;  %v2690_v4 = vmul.f32 %v6235_v54, %v6907_v7 }
 0xdd0   :  { %v3101_v29 = vpack.c.bf16 %v6939_v31, %v6936_v21  ;;  %v3103_v9 = vpack.c.bf16 %v6945_v38, %v6942_v57  ;;  %v2693_v0 = vmul.f32 %v6262_v43, %v6907_v7 }
 0xdd1   :  { %2754 = vrot.lane.b32.xlu0 %v2726_v56, %s5828_s15  ;;  %2850 = vrot.lane.b32.xlu1 %v2731_v18, %s5828_s15  ;;  %v2733_v8 = vpack.c.bf16 %v6218_v16, %v2687_v61  ;;  %v7473_v56 = vpack.c.bf16 %v6857_v10, %v6843_v50  ;;  %v2729_v3 = vpack.c.bf16 %v6274_v60, %v2681_v12 }
 0xdd2   :  { %v2735_v16 = vpack.c.bf16 %v6250_v1, %v2690_v4  ;;  %v2737_v50 = vpack.c.bf16 %v6274_v60, %v2693_v0  ;;  %v2666_v0 = vmul.f32 0.35355338, %v6879_v15 }
 0xdd5   :  { %2756 = vrot.lane.b32.xlu0 %v2727_v63, %s5828_s15  ;;  %2852 = vrot.lane.b32.xlu1 %v2732_v36, %s5828_s15 }
 0xdd9   :  { %2758 = vrot.lane.b32.xlu0 %v7473_v56, %s5828_s15  ;;  %2854 = vrot.lane.b32.xlu1 %v2733_v8, %s5828_s15 }
 0xddd   :  { %2760 = vrot.lane.b32.xlu0 %v2729_v3, %s5828_s15  ;;  %2856 = vrot.lane.b32.xlu1 %v2734_v2, %s5828_s15 }
 0xde1   :  { %2858 = vrot.lane.b32.xlu1 %v2735_v16, %s5828_s15 }
 0xde5   :  { %2860 = vrot.lane.b32.xlu1 %v2736_v11, %s5828_s15 }
 0xde9   :  { %2862 = vrot.lane.b32.xlu1 %v2737_v50, %s5828_s15 }
 0xe31   :  { %v2747_v10 = vpop.permute.xlu0 %2746 }
 0xe32   :  { %v2769_v54 = vsel %vm306_vm2, %v2747_v10, 0  ;;  %5532 = vmatprep.subr.msk.bf16.mxu0 %vm306_vm2, %v2747_v10  ;;  %v2719_v10 = vpack.c.bf16 %v2666_v0, %v2666_v0 }
 0xe33   :  { %5160 = vmatpush3.bf16.xpose.msra.mxu0 %v2769_v54 }
 0xe37   :  { %v2749_v35 = vpop.permute.xlu0 %2748 }
 0xe38   :  { %5533 = vmatprep.subr.msk.bf16.mxu0 %vm306_vm2, %v2749_v35  ;;  %v2772_v1 = vsel %vm306_vm2, %v2749_v35, 0 }
 0xe3b   :  { %5162 = vmatpush3.bf16.xpose.msra.mxu0 %v2772_v1  ;;  %v2751_v6 = vpop.permute.xlu0 %2750  ;;  %v2669_v1 = vmul.f32 0.35355338, %v6907_v7 }
 0xe3c   :  { %5534 = vmatprep.subr.msk.bf16.mxu0 %vm306_vm2, %v2751_v6  ;;  %v2775_v23 = vsel %vm306_vm2, %v2751_v6, 0 }
 0xe3d   :  { %v2721_v58 = vpack.c.bf16 %v2669_v1, %v2669_v1 }
 0xe3f   :  { %v2849_v43 = vpop.permute.xlu1 %2848  ;;  %v2753_v13 = vpop.permute.xlu0 %2752 }
 0xe40   :  { %v2871_v60 = vsel %vm306_vm2, %v2849_v43, 0  ;;  %5540 = vmatprep.subr.msk.bf16.mxu1 %vm306_vm2, %v2849_v43  ;;  %v2778_v22 = vsel %vm306_vm2, %v2753_v13, 0 }
 0xe41   :  { %5180 = vmatpush3.bf16.xpose.msra.mxu1 %v2871_v60 }
 0xe43   :  { %v2851_v17 = vpop.permute.xlu1 %2850  ;;  %5164 = vmatpush3.bf16.xpose.msra.mxu0 %v2775_v23  ;;  %v2755_v45 = vpop.permute.xlu0 %2754  ;;  %v7478_v23 = vld [vmem:[#allocation5_spill] sm:$0xff] }
 0xe44   :  { %5535 = vmatprep.subr.msk.bf16.mxu0 %vm306_vm2, %v2753_v13  ;;  %5541 = vmatprep.subr.msk.bf16.mxu1 %vm306_vm2, %v2851_v17  ;;  %v2874_v52 = vsel %vm306_vm2, %v2851_v17, 0  ;;  %v2781_v36 = vsel %vm306_vm2, %v2755_v45, 0 }
 0xe47   :  { %v2853_v27 = vpop.permute.xlu1 %2852  ;;  %v2757_v2 = vpop.permute.xlu0 %2756 }
 0xe48   :  { %v2877_v25 = vsel %vm306_vm2, %v2853_v27, 0  ;;  %v2784_v14 = vsel %vm306_vm2, %v2757_v2, 0 }
 0xe49   :  { %5182 = vmatpush3.bf16.xpose.msra.mxu1 %v2874_v52 }
 0xe4a   :  { %5542 = vmatprep.subr.msk.bf16.mxu1 %vm306_vm2, %v2853_v27 }
 0xe4b   :  { %5166 = vmatpush3.bf16.xpose.msra.mxu0 %v2778_v22  ;;  %v2855_v30 = vpop.permute.xlu1 %2854  ;;  %v2759_v63 = vpop.permute.xlu0 %2758 }
 0xe4c   :  { %5536 = vmatprep.subr.msk.bf16.mxu0 %vm306_vm2, %v2755_v45  ;;  %v2880_v11 = vsel %vm306_vm2, %v2855_v30, 0  ;;  %v2787_v12 = vsel %vm306_vm2, %v2759_v63, 0 }
 0xe4f   :  { %v2857_v18 = vpop.permute.xlu1 %2856  ;;  %v2761_v56 = vpop.permute.xlu0 %2760 }
 0xe50   :  { %v2883_v61 = vsel %vm306_vm2, %v2857_v18, 0  ;;  %v2790_v16 = vsel %vm306_vm2, %v2761_v56, 0 }
 0xe51   :  { %5184 = vmatpush3.bf16.xpose.msra.mxu1 %v2877_v25 }
 0xe52   :  { %5543 = vmatprep.subr.msk.bf16.mxu1 %vm306_vm2, %v2855_v30 }
 0xe53   :  { %5168 = vmatpush3.bf16.xpose.msra.mxu0 %v2781_v36  ;;  %v2859_v8 = vpop.permute.xlu1 %2858 }
 0xe54   :  { %5537 = vmatprep.subr.msk.bf16.mxu0 %vm306_vm2, %v2757_v2  ;;  %v2886_v3 = vsel %vm306_vm2, %v2859_v8, 0 }
 0xe57   :  { %v2861_v4 = vpop.permute.xlu1 %2860 }
 0xe58   :  { %v2889_v50 = vsel %vm306_vm2, %v2861_v4, 0 }
 0xe59   :  { %5186 = vmatpush3.bf16.xpose.msra.mxu1 %v2880_v11 }
 0xe5a   :  { %5544 = vmatprep.subr.msk.bf16.mxu1 %vm306_vm2, %v2857_v18 }
 0xe5b   :  { %5170 = vmatpush3.bf16.xpose.msra.mxu0 %v2784_v14  ;;  %v2863_v54 = vpop.permute.xlu1 %2862  ;;  %v7479_v14 = vpack.c.bf16 %v6860_v51, %v6846_v41  ;;  %v7484_v41 = vld [vmem:[#allocation13_spill] sm:$0xff] }
 0xe5c   :  { %5538 = vmatprep.subr.msk.bf16.mxu0 %vm306_vm2, %v2759_v63  ;;  %v2892_v35 = vsel %vm306_vm2, %v2863_v54, 0  ;;  %v7480_v63 = vld [vmem:[#allocation10_spill] sm:$0xff] }
 0xe61   :  { %5188 = vmatpush3.bf16.xpose.msra.mxu1 %v2883_v61  ;;  %v2696_v61 = vmul.f32 %v7480_v63, %v6879_v15 }
 0xe62   :  { %5545 = vmatprep.subr.msk.bf16.mxu1 %vm306_vm2, %v2859_v8  ;;  %v7481_v8 = vpack.c.bf16 %v6863_v47, %v6849_v32  ;;  %v7485_v47 = vld [vmem:[#allocation14_spill] sm:$0xff] }
 0xe63   :  { %5172 = vmatpush3.bf16.xpose.msra.mxu0 %v2787_v12  ;;  %v7482_v12 = vld [vmem:[#allocation11_spill] sm:$0xff]  ;;  %v2702_v0 = vmul.f32 %v7485_v47, %v6879_v15 }
 0xe64   :  { %5539 = vmatprep.subr.msk.bf16.mxu0 %vm306_vm2, %v2761_v56  ;;  %v3090_v56 = vpack.c.bf16 %v7482_v12, %v2696_v61 }
 0xe65   :  { %v3094_v44 = vpack.c.bf16 %v7487_v62, %v2702_v0 }
 0xe69   :  { %5190 = vmatpush3.bf16.xpose.msra.mxu1 %v2886_v3  ;;  %v7483_v3 = vld [vmem:[#allocation12_spill] sm:$0xff] }
 0xe6a   :  { %5546 = vmatprep.subr.msk.bf16.mxu1 %vm306_vm2, %v2861_v4  ;;  %v2699_v4 = vmul.f32 %v7483_v3, %v6879_v15 }
 0xe6b   :  { %5174 = vmatpush3.bf16.xpose.msra.mxu0 %v2790_v16  ;;  %v2708_v16 = vmul.f32 %v7480_v63, %v6907_v7 }
 0xe6c   :  { %5469 = vmatprep.subr.msk.bf16.mxu0 %vm6343_vm9, %v7431_v24  ;;  %v3092_v51 = vpack.c.bf16 %v7484_v41, %v2699_v4 }
 0xe6d   :  { %v3098_v32 = vpack.c.bf16 %v7482_v12, %v2708_v16 }
 0xe71   :  { %5192 = vmatpush3.bf16.xpose.msra.mxu1 %v2889_v50  ;;  %v2711_v50 = vmul.f32 %v7483_v3, %v6907_v7 }
 0xe72   :  { %5176 = vmatmul.mubr.msk.bf16.vlgmr.msra.gmra.mrb[52].mxu0 %vm306_vm2, %v2719_v10  ;;  %5547 = vmatprep.subr.msk.bf16.mxu1 %vm306_vm2, %v2863_v54  ;;  %v7486_v10 = vpack.c.bf16 %v6877_v5, %v6866_v42  ;;  %v7488_v54 = vld [vmem:[#allocation16_spill] sm:$0xff]  ;;  %v2714_v42 = vmul.f32 %v7485_v47, %v6907_v7  ;;  %v7489_v5 = vpack.c.bf16 %v6888_v28, %v6894_v59 }
 0xe73   :  { %5471 = vmatpush3.bf16.msk.msra.mxu0 %vm6343_vm9, %v7431_v24  ;;  %vm3980_vm9 = vcmask 1041409  }
 0xe74   :  { %5473 = vmatprep.subr.msk.bf16.mxu0 %vm6350_vm10, %v7431_v24 }
 0xe77   :  { %5475 = vmatpush3.bf16.msk.msra.mxu0 %vm6350_vm10, %v7431_v24 }
 0xe78   :  { %5477 = vmatprep.subr.msk.bf16.mxu0 %vm6364_vm13, %v7431_v24 }
 0xe79   :  { %5194 = vmatpush3.bf16.xpose.msra.mxu1 %v2892_v35  ;;  %v2705_v35 = vmul.f32 %v7488_v54, %v6879_v15  ;;  %v2717_v15 = vmul.f32 %v7488_v54, %v6907_v7 }
 0xe7b   :  { %5479 = vmatpush3.bf16.msk.msra.mxu0 %vm6364_vm13, %v7431_v24  ;;  %v3096_v26 = vpack.c.bf16 %v7490_v55, %v2705_v35  ;;  %v3104_v1 = vpack.c.bf16 %v7490_v55, %v2717_v15 }
 0xe7c   :  { %5481 = vmatprep.subr.msk.bf16.mxu0 %vm6378_vm1, %v7431_v24 }
 0xe7f   :  { %5483 = vmatpush3.bf16.msk.msra.mxu0 %vm6378_vm1, %v7431_v24 }
 0xe80   :  { %5196 = vmatmul.mubr.msk.bf16.vlgmr.msra.gmra.mrb[80].mxu1 %vm306_vm2, %v2721_v58  ;;  %5485 = vmatprep.subr.msk.bf16.mxu0 %vm6404_vm6, %v7431_v24 }
 0xe83   :  { %5487 = vmatpush3.bf16.msk.msra.mxu0 %vm6404_vm6, %v7431_v24 }
 0xe84   :  { %5489 = vmatprep.subr.msk.bf16.mxu0 %vm6418_vm11, %v7431_v24 }
 0xe87   :  { %5491 = vmatpush3.bf16.msk.msra.mxu0 %vm6418_vm11, %v7431_v24 }
 0xe88   :  { %5493 = vmatprep.subr.msk.bf16.mxu0 %vm6436_vm4, %v7431_v24 }
 0xe8b   :  { %5495 = vmatpush3.bf16.msk.msra.mxu0 %vm6436_vm4, %v7431_v24 }
 0xe8c   :  { %5497 = vmatprep.subr.msk.bf16.mxu0 %vm6443_vm5, %v7431_v24 }
 0xe8f   :  { %5499 = vmatpush3.bf16.msk.msra.mxu0 %vm6443_vm5, %v7431_v24 }
 0xf45   :  { %v5177_v43 = vpop.f32.mrb[52].mxu0 }
 0xf46   :  { %v2826_v60 = vpop.f32.mrb[53].mxu0  ;;  %v2944_v22 = vadd.f32 %v5177_v43, %v7478_v23 }
 0xf47   :  { %v2942_v13 = vadd.f32 %v2826_v60, %v7478_v23  ;;  %v5178_v17 = vpop.f32.mrb[54].mxu0 }
 0xf48   :  { %v2829_v52 = vpop.f32.mrb[55].mxu0 }
 0xf49   :  { %v2943_v27 = vadd.f32 %v2829_v52, %v7478_v23  ;;  %2948 = vmax.xlane.f32.xlu0 %v2942_v13 }
 0xf4b   :  { %2950 = vmax.xlane.f32.xlu1 %v2943_v27 }
 0xf4d   :  { %2952 = vmax.xlane.f32.xlu0 %v2944_v22 }
 0xf53   :  { %v5197_v45 = vpop.f32.mrb[80].mxu1 }
 0xf54   :  { %v2928_v25 = vpop.f32.mrb[81].mxu1  ;;  %v7068_v18 = vadd.f32 %v5197_v45, %v7478_v23 }
 0xf55   :  { %v2945_v30 = vadd.f32 %v2928_v25, %v7478_v23  ;;  %v5198_v36 = vpop.f32.mrb[82].mxu1 }
 0xf56   :  { %v2931_v2 = vpop.f32.mrb[83].mxu1 }
 0xf57   :  { %v2946_v11 = vadd.f32 %v2931_v2, %v7478_v23  ;;  %2954 = vmax.xlane.f32.xlu0 %v2945_v30 }
 0xf59   :  { %2956 = vmax.xlane.f32.xlu1 %v2946_v11 }
 0xf5b   :  { %2958 = vmax.xlane.f32.xlu0 %v7068_v18 }
 0xf6a   :  { %3113 = vrot.lane.b32.xlu1 %v7479_v14, %s5830_s16 }
 0xf6e   :  { %3117 = vrot.lane.b32.xlu1 %v7481_v8, %s5830_s16 }
 0xf71   :  { %3115 = vrot.lane.b32.xlu0 %v3090_v56, %s5830_s16 }
 0xf72   :  { %3193 = vrot.lane.b32.xlu1 %v3097_v39, %s5830_s16  ;;  %v3100_v39 = vpack.c.bf16 %v7484_v41, %v2711_v50 }
 0xf75   :  { %3119 = vrot.lane.b32.xlu0 %v3092_v51, %s5830_s16 }
 0xf76   :  { %3195 = vrot.lane.b32.xlu1 %v3098_v32, %s5830_s16 }
 0xf79   :  { %3121 = vrot.lane.b32.xlu0 %v7486_v10, %s5830_s16 }
 0xf7a   :  { %3197 = vrot.lane.b32.xlu1 %v3099_v37, %s5830_s16  ;;  %v3102_v37 = vpack.c.bf16 %v7487_v62, %v2714_v42 }
 0xf7d   :  { %3123 = vrot.lane.b32.xlu0 %v3094_v44, %s5830_s16 }
 0xf7e   :  { %3199 = vrot.lane.b32.xlu1 %v3100_v39, %s5830_s16 }
 0xf81   :  { %3125 = vrot.lane.b32.xlu0 %v7489_v5, %s5830_s16 }
 0xf82   :  { %3201 = vrot.lane.b32.xlu1 %v3101_v29, %s5830_s16 }
 0xf85   :  { %3127 = vrot.lane.b32.xlu0 %v3096_v26, %s5830_s16 }
 0xf86   :  { %3203 = vrot.lane.b32.xlu1 %v3102_v37, %s5830_s16  ;;  %v5659_v37 = vld [vmem:[%s7373_s3 + $0x80] sm:$0xff]  }
 0xf89   :  { %3205 = vrot.lane.b32.xlu0 %v3103_v9, %s5830_s16 }
 0xf8a   :  { %3207 = vrot.lane.b32.xlu1 %v3104_v1, %s5830_s16 }
 0xfd6   :  { %v2949_v28 = vpop.xlane.xlu0 %2948 }
 0xfd7   :  { %v2960_v59 = vsub.f32 %v2942_v13, %v2949_v28 }
 0xfd8   :  { %v2951_v21 = vpop.xlane.xlu1 %2950 }
 0xfd9   :  { %v2966_v31 = vmul.f32 1.442695, %v2960_v59  ;;  %v2961_v29 = vsub.f32 %v2943_v27, %v2951_v21 }
 0xfda   :  { %v2953_v58 = vpop.xlane.xlu0 %2952 }
 0xfdb   :  { %5747 = vpow2.f32 %v2966_v31  ;;  %v2968_v7 = vmul.f32 1.442695, %v2961_v29  ;;  %v2962_v40 = vsub.f32 %v2944_v22, %v2953_v58 }
 0xfdd   :  { %5749 = vpow2.f32 %v2968_v7  ;;  %v2970_v48 = vmul.f32 1.442695, %v2962_v40  ;;  %v5660_v7 = vld [vmem:[%s7373_s3 + $0x88] sm:$0xff]  }
 0xfdf   :  { %5751 = vpow2.f32 %v2970_v48 }
 0xfe4   :  { %v2955_v46 = vpop.xlane.xlu0 %2954 }
 0xfe5   :  { %v7135_v6 = vpop.eup %5747  ;;  %v2963_v43 = vsub.f32 %v2945_v30, %v2955_v46 }
 0xfe6   :  { %5231 = vmatprep.mubr.f32.mxu0 %v7135_v6  ;;  %v2957_v57 = vpop.xlane.xlu1 %2956 }
 0xfe7   :  { %v7138_v38 = vpop.eup %5749  ;;  %v2972_v9 = vmul.f32 1.442695, %v2963_v43  ;;  %v2964_v60 = vsub.f32 %v2946_v11, %v2957_v57 }
 0xfe8   :  { %v2959_v23 = vpop.xlane.xlu0 %2958  ;;  %5232 = vmatmul.mubr.f32.vlgmr.msra.gmra.mrb[38].mxu0 %v7138_v38 }
 0xfe9   :  { %v7141_v13 = vpop.eup %5751  ;;  %5753 = vpow2.f32 %v2972_v9  ;;  %v2974_v17 = vmul.f32 1.442695, %v2964_v60  ;;  %v2965_v52 = vsub.f32 %v7068_v18, %v2959_v23 }
 0xfea   :  { %5234 = vmatprep.mubr.f32.mxu0 %v7141_v13  ;;  %v3114_v27 = vpop.permute.xlu1 %3113 }
 0xfeb   :  { %5755 = vpow2.f32 %v2974_v17  ;;  %v2976_v22 = vmul.f32 1.442695, %v2965_v52  ;;  %5240 = vmatprep.subr.bf16.mxu1 %v3114_v27  ;;  %v4501_v17 = vld [vmem:[%s7374_s4 + $0xb] ss:$0 sm:$0xff] }
 0xfec   :  { %v3116_v45 = vpop.permute.xlu0 %3115  ;;  %5241 = vmatpush3.bf16.msra.mxu1 %v3114_v27 }
 0xfed   :  { %5757 = vpow2.f32 %v2976_v22  ;;  %5242 = vmatprep.subr.bf16.mxu1 %v3116_v45 }
 0xfee   :  { %v3118_v25 = vpop.permute.xlu1 %3117 }
 0xff0   :  { %v3120_v30 = vpop.permute.xlu0 %3119  ;;  %5243 = vmatpush3.bf16.msra.mxu1 %v3116_v45 }
 0xff1   :  { %5244 = vmatprep.subr.bf16.mxu1 %v3118_v25 }
 0xff2   :  { %v3194_v36 = vpop.permute.xlu1 %3193 }
 0xff3   :  { %v7145_v2 = vpop.eup %5753  ;;  %5260 = vmatprep.subr.bf16.mxu0 %v3194_v36 }
 0xff4   :  { %v3122_v11 = vpop.permute.xlu0 %3121  ;;  %5235 = vmatmul.mubr.f32.gmra.mrb[56].mxu0 %v7145_v2  ;;  %5245 = vmatpush3.bf16.msra.mxu1 %v3118_v25 }
 0xff5   :  { %v7148_v18 = vpop.eup %5755  ;;  %5261 = vmatpush3.bf16.msra.mxu0 %v3194_v36  ;;  %5246 = vmatprep.subr.bf16.mxu1 %v3120_v30 }
 0xff6   :  { %5237 = vmatprep.mubr.f32.mxu0 %v7148_v18  ;;  %v3196_v14 = vpop.permute.xlu1 %3195 }
 0xff7   :  { %v5758_v63 = vpop.eup %5757  ;;  %5262 = vmatprep.subr.bf16.mxu0 %v3196_v14 }
 0xff8   :  { %v3124_v61 = vpop.permute.xlu0 %3123  ;;  %5238 = vmatmul.mubr.f32.gmra.mrb[58].mxu0 %v5758_v63  ;;  %5247 = vmatpush3.bf16.msra.mxu1 %v3120_v30 }
 0xff9   :  { %5263 = vmatpush3.bf16.msra.mxu0 %v3196_v14  ;;  %5248 = vmatprep.subr.bf16.mxu1 %v3122_v11 }
 0xffa   :  { %v3198_v8 = vpop.permute.xlu1 %3197 }
 0xffb   :  { %5264 = vmatprep.subr.bf16.mxu0 %v3198_v8 }
 0xffc   :  { %5249 = vmatpush3.bf16.msra.mxu1 %v3122_v11  ;;  %v3126_v12 = vpop.permute.xlu0 %3125 }
 0xffd   :  { %5265 = vmatpush3.bf16.msra.mxu0 %v3198_v8  ;;  %5250 = vmatprep.subr.bf16.mxu1 %v3124_v61 }
 0xffe   :  { %v3200_v56 = vpop.permute.xlu1 %3199 }
 0xfff   :  { %5266 = vmatprep.subr.bf16.mxu0 %v3200_v56 }
0x1000   :  { %5251 = vmatpush3.bf16.msra.mxu1 %v3124_v61  ;;  %v3128_v4 = vpop.permute.xlu0 %3127 }
0x1001   :  { %5267 = vmatpush3.bf16.msra.mxu0 %v3200_v56  ;;  %5252 = vmatprep.subr.bf16.mxu1 %v3126_v12 }
0x1002   :  { %v3202_v3 = vpop.permute.xlu1 %3201 }
0x1003   :  { %5268 = vmatprep.subr.bf16.mxu0 %v3202_v3 }
0x1004   :  { %5253 = vmatpush3.bf16.msra.mxu1 %v3126_v12  ;;  %v3206_v41 = vpop.permute.xlu0 %3205 }
0x1005   :  { %5269 = vmatpush3.bf16.msra.mxu0 %v3202_v3  ;;  %5254 = vmatprep.subr.bf16.mxu1 %v3128_v4 }
0x1006   :  { %v3204_v16 = vpop.permute.xlu1 %3203 }
0x1007   :  { %5270 = vmatprep.subr.bf16.mxu0 %v3204_v16 }
0x1008   :  { %5255 = vmatpush3.bf16.msra.mxu1 %v3128_v4 }
0x1009   :  { %5271 = vmatpush3.bf16.msra.mxu0 %v3204_v16  ;;  %5280 = vmatprep.subr.bf16.mxu1 %v7471_v49 }
0x100a   :  { %5272 = vmatprep.subr.bf16.mxu0 %v3206_v41  ;;  %v3208_v51 = vpop.permute.xlu1 %3207 }
0x100d   :  { %5273 = vmatpush3.bf16.msra.mxu0 %v3206_v41 }
0x100e   :  { %5274 = vmatprep.subr.bf16.mxu0 %v3208_v51 }
0x1011   :  { %5275 = vmatpush3.bf16.msra.mxu0 %v3208_v51 }
0x1012   :  { %5500 = vmatprep.subr.bf16.mxu0 %v7431_v24 }
0x10bb   :  { %v5233_v32 = vpop.f32.mrb[38].mxu0 }
0x10bc   :  { %5759 = vrcp.f32 %v5233_v32  ;;  %v3044_v47 = vpop.f32.mrb[39].mxu0 }
0x10bd   :  { %5761 = vrcp.f32 %v3044_v47 }
0x10c6   :  { %v5760_v0 = vpop.eup %5759 }
0x10c7   :  { %v5762_v50 = vpop.eup %5761  ;;  %v5236_v10 = vpop.f32.mrb[56].mxu0  ;;  %v3080_v62 = vmul.f32 %v5760_v0, %v7138_v38 }
0x10c8   :  { %v3054_v44 = vpop.f32.mrb[57].mxu0  ;;  %v3079_v39 = vmul.f32 %v5762_v50, %v7135_v6  ;;  %v7491_v50 = vld [vmem:[#allocation18_spill] sm:$0xff] }
0x10c9   :  { %5763 = vrcp.f32 %v3054_v44 }
0x10ca   :  { %v3085_v54 = vpack.c.bf16 %v3080_v62, %v3079_v39  ;;  %5765 = vrcp.f32 %v5236_v10 }
0x10cb   :  { %v5239_v35 = vpop.f32.mrb[58].mxu0 }
0x10cc   :  { %5767 = vrcp.f32 %v5239_v35  ;;  %v3064_v42 = vpop.f32.mrb[59].mxu0  ;;  %5256 = vmatprep.mubr.bf16.mxu1 %v3085_v54 }
0x10cd   :  { %5769 = vrcp.f32 %v3064_v42 }
0x10d3   :  { %v5764_v5 = vpop.eup %5763 }
0x10d4   :  { %v3081_v55 = vmul.f32 %v5764_v5, %v7141_v13  ;;  %v5766_v26 = vpop.eup %5765 }
0x10d5   :  { %v3082_v21 = vmul.f32 %v5766_v26, %v7145_v2 }
0x10d6   :  { %v5768_v15 = vpop.eup %5767  ;;  %v3086_v1 = vpack.c.bf16 %v3081_v55, %v3081_v55 }
0x10d7   :  { %v5770_v28 = vpop.eup %5769  ;;  %v3084_v59 = vmul.f32 %v5768_v15, %v5758_v63  ;;  %v5661_v15 = vld [vmem:[%s7373_s3 + $0x90] sm:$0xff]  }
0x10d8   :  { %5257 = vmatmul.mubr.bf16.vlgmr.msra.gmra.mrb[84].mxu1 %v3086_v1  ;;  %v3083_v31 = vmul.f32 %v5770_v28, %v7148_v18 }
0x10d9   :  { %5281 = vmatpush3.bf16.msra.mxu1 %v5659_v37  ;;  %5284 = vmatprep.mubr.msk.bf16.mxu1 %vm5824_vm0, %v7471_v49  ;;  %v3088_v58 = vpack.c.bf16 %v3084_v59, %v3084_v59 }
0x10da   :  { %v3087_v29 = vpack.c.bf16 %v3083_v31, %v3082_v21  ;;  %5282 = vmatprep.subr.bf16.mxu1 %v7471_v49 }
0x10dc   :  { %5276 = vmatprep.mubr.bf16.mxu0 %v3087_v29 }
0x10dd   :  { %5277 = vmatmul.mubr.bf16.vlgmr.msra.gmra.mrb[60].mxu0 %v3088_v58  ;;  %5283 = vmatpush3.bf16.msra.mxu1 %v5660_v7 }
0x10de   :  { %5501 = vmatpush3.bf16.msra.mxu0 %v7431_v24  ;;  %5504 = vmatprep.subr.bf16.mxu1 %v7431_v24 }
0x10df   :  { %5502 = vmatprep.subr.bf16.mxu0 %v7431_v24 }
0x10e2   :  { %5503 = vmatpush3.bf16.msra.mxu0 %v7431_v24 }
0x10e3   :  { %5330 = vmatprep.subr.bf16.mxu0 %v7471_v49 }
0x11ab   :  { %v5258_v40 = vpop.f32.mrb[84].mxu1 }
0x11ac   :  { %v3171_v48 = vpop.f32.mrb[85].mxu1 }
0x11ad   :  { %v5259_v46 = vpop.f32.mrb[86].mxu1 }
0x11ae   :  { %v3174_v6 = vpop.f32.mrb[87].mxu1 }
0x11af   :  { %v3265_v43 = vpack.c.bf16 %v3174_v6, %v3171_v48 }
0x11b0   :  { %v5278_v57 = vpop.f32.mrb[60].mxu0 }
0x11b1   :  { %v3251_v38 = vpop.f32.mrb[61].mxu0  ;;  %5285 = vmatmul.mubr.msk.bf16.vlgmr.msra.gmra.mrb[88].mxu1 %vm306_vm2, %v3265_v43 }
0x11b2   :  { %v3266_v9 = vpack.c.bf16 %v3251_v38, %v5258_v40  ;;  %v5279_v60 = vpop.f32.mrb[62].mxu0  ;;  %5288 = vmatprep.mubr.msk.bf16.mxu1 %vm5824_vm0, %v7471_v49  ;;  %5505 = vmatpush3.bf16.msra.mxu1 %v7431_v24 }
0x11b3   :  { %v3254_v23 = vpop.f32.mrb[63].mxu0  ;;  %5506 = vmatprep.subr.bf16.mxu1 %v7431_v24 }
0x11b4   :  { %v3267_v13 = vpack.c.bf16 %v5278_v57, %v3254_v23 }
0x11b6   :  { %5507 = vmatpush3.bf16.msra.mxu1 %v7431_v24 }
0x11b7   :  { %5346 = vmatprep.subr.bf16.mxu1 %v7471_v49 }
0x11b9   :  { %5289 = vmatmul.mubr.msk.bf16.gmra.mrb[92].mxu1 %vm306_vm2, %v3266_v9 }
0x11ba   :  { %5292 = vmatprep.mubr.msk.bf16.mxu1 %vm5824_vm0, %v7471_v49 }
0x11c1   :  { %5293 = vmatmul.mubr.msk.bf16.gmra.mrb[96].mxu1 %vm306_vm2, %v3267_v13 }
0x1284   :  { %v3327_v52 = vpop.f32.mrb[88].mxu1 }
0x1285   :  { %v3328_v27 = vadd.f32 %v4501_v17, %v3327_v52  ;;  %v5286_v22 = vpop.f32.mrb[89].mxu1 }
0x1286   :  { %v3330_v45 = vpop.f32.mrb[90].mxu1 }
0x1287   :  { %v7187_v25 = vadd.f32 %v3328_v27, %v6755_v19  ;;  %v3331_v30 = vadd.f32 %v4501_v17, %v3330_v45  ;;  %v5287_v36 = vpop.f32.mrb[91].mxu1 }
0x1289   :  { %v7190_v2 = vadd.f32 %v3331_v30, %v6758_v34  ;;  %5304 = vmatprep.mubr.msk.f32.mxu0 %vm306_vm2, %v7187_v25  ;;  %v3469_v11 = vmul.f32 %v7187_v25, %v7187_v25 }
0x128b   :  { %v3470_v18 = vmul.f32 %v7190_v2, %v7190_v2  ;;  %5305 = vmatmul.mubr.msk.f32.vlgmr.msra.gmra.mrb[64].mxu0 %vm306_vm2, %v7190_v2  ;;  %5321 = vmatprep.mubr.msk.f32.mxu1 %vm306_vm2, %v3469_v11 }
0x128c   :  { %v3335_v19 = vpop.f32.mrb[92].mxu1  ;;  %5331 = vmatpush3.bf16.msra.mxu0 %v5661_v15 }
0x128d   :  { %v3336_v14 = vadd.f32 %v4501_v17, %v3335_v19  ;;  %v5290_v63 = vpop.f32.mrb[93].mxu1  ;;  %5322 = vmatmul.mubr.msk.f32.vlgmr.msra.gmra.mrb[100].mxu1 %vm306_vm2, %v3470_v18  ;;  %5332 = vmatprep.subr.bf16.mxu0 %v7471_v49 }
0x128e   :  { %v3338_v34 = vpop.f32.mrb[94].mxu1 }
0x128f   :  { %v7203_v61 = vadd.f32 %v3336_v14, %v6767_v33  ;;  %v3339_v8 = vadd.f32 %v4501_v17, %v3338_v34  ;;  %v5291_v12 = vpop.f32.mrb[95].mxu1 }
0x1291   :  { %v3471_v56 = vmul.f32 %v7203_v61, %v7203_v61  ;;  %v7208_v3 = vadd.f32 %v3339_v8, %v6771_v20  ;;  %5307 = vmatprep.mubr.msk.f32.mxu0 %vm306_vm2, %v7203_v61 }
0x1293   :  { %5308 = vmatmul.mubr.msk.f32.gmra.mrb[66].mxu0 %vm306_vm2, %v7208_v3  ;;  %5324 = vmatprep.mubr.msk.f32.mxu1 %vm306_vm2, %v3471_v56  ;;  %v3472_v33 = vmul.f32 %v7208_v3, %v7208_v3 }
0x1294   :  { %v3343_v4 = vpop.f32.mrb[96].mxu1 }
0x1295   :  { %v3344_v16 = vadd.f32 %v4501_v17, %v3343_v4  ;;  %v5294_v41 = vpop.f32.mrb[97].mxu1  ;;  %5325 = vmatmul.mubr.msk.f32.gmra.mrb[102].mxu1 %vm306_vm2, %v3472_v33  ;;  %v5662_v33 = vld [vmem:[%s7373_s3 + $0x98] sm:$0xff]  }
0x1296   :  { %v3346_v51 = vpop.f32.mrb[98].mxu1  ;;  %5333 = vmatpush3.bf16.msra.mxu0 %v5662_v33 }
0x1297   :  { %v7219_v20 = vadd.f32 %v3344_v16, %v6779_v53  ;;  %v3347_v32 = vadd.f32 %v4501_v17, %v3346_v51  ;;  %v5295_v47 = vpop.f32.mrb[99].mxu1 }
0x1299   :  { %v3473_v0 = vmul.f32 %v7219_v20, %v7219_v20  ;;  %v7224_v10 = vadd.f32 %v3347_v32, %v7491_v50  ;;  %5310 = vmatprep.mubr.msk.f32.mxu0 %vm306_vm2, %v7219_v20  ;;  %v4519_v50 = vld [vmem:[%s7374_s4 + $0xc] ss:$0 sm:$0xff] }
0x129b   :  { %v3474_v62 = vmul.f32 %v7224_v10, %v7224_v10  ;;  %5311 = vmatmul.mubr.msk.f32.gmra.mrb[68].mxu0 %vm306_vm2, %v7224_v10  ;;  %5327 = vmatprep.mubr.msk.f32.mxu1 %vm306_vm2, %v3473_v0 }
0x129c   :  { %5334 = vmatprep.mubr.msk.bf16.mxu0 %vm5824_vm0, %v7471_v49 }
0x129d   :  { %5328 = vmatmul.mubr.msk.f32.gmra.mrb[104].mxu1 %vm306_vm2, %v3474_v62 }
0x129e   :  { %5362 = vmatprep.mubr.msk.bf16.mxu1 %vm5824_vm0, %v7471_v49 }
0x135e   :  { %v5306_v53 = vpop.f32.mrb[64].mxu0 }
0x135f   :  { %v3589_v44 = vmul.f32 0.03125, %v5306_v53  ;;  %v3440_v39 = vpop.f32.mrb[65].mxu0 }
0x1360   :  { %v3588_v54 = vmul.f32 0.03125, %v3440_v39  ;;  %v5323_v35 = vpop.f32.mrb[100].mxu1  ;;  %v4520_v39 = vld [vmem:[%s7374_s4 + $0xd] ss:$0 sm:$0xff] }
0x1361   :  { %v3601_v42 = vmul.f32 %v3589_v44, %v3589_v44  ;;  %v3595_v5 = vmul.f32 0.03125, %v5323_v35  ;;  %3619 = vperm.xlu1 %5559, %v3589_v44   ;;  %v3559_v55 = vpop.f32.mrb[101].mxu1 }
0x1362   :  { %v3600_v26 = vmul.f32 %v3588_v54, %v3588_v54  ;;  %v3594_v37 = vmul.f32 0.03125, %v3559_v55  ;;  %3614 = vperm.xlu0 %5558, %v3588_v54  }
0x1363   :  { %v3607_v1 = vsub.f32 %v3595_v5, %v3601_v42 }
0x1364   :  { %v3606_v28 = vsub.f32 %v3594_v37, %v3600_v26 }
0x1365   :  { %v3649_v59 = vadd.f32 1e-05, %v3607_v1 }
0x1366   :  { %v3648_v21 = vadd.f32 1e-05, %v3606_v28  ;;  %v5309_v31 = vpop.f32.mrb[66].mxu0 }
0x1367   :  { %5771 = vrsqrt.f32 %v3649_v59  ;;  %v3591_v29 = vmul.f32 0.03125, %v5309_v31  ;;  %v3450_v58 = vpop.f32.mrb[67].mxu0 }
0x1368   :  { %5773 = vrsqrt.f32 %v3648_v21  ;;  %v3590_v7 = vmul.f32 0.03125, %v3450_v58  ;;  %v5326_v40 = vpop.f32.mrb[102].mxu1 }
0x1369   :  { %v3603_v48 = vmul.f32 %v3591_v29, %v3591_v29  ;;  %v3597_v46 = vmul.f32 0.03125, %v5326_v40  ;;  %v3569_v6 = vpop.f32.mrb[103].mxu1 }
0x136a   :  { %v3602_v43 = vmul.f32 %v3590_v7, %v3590_v7  ;;  %v3596_v57 = vmul.f32 0.03125, %v3569_v6 }
0x136b   :  { %v3609_v38 = vsub.f32 %v3597_v46, %v3603_v48 }
0x136c   :  { %v3608_v9 = vsub.f32 %v3596_v57, %v3602_v43 }
0x136d   :  { %v3651_v60 = vadd.f32 1e-05, %v3609_v38 }
0x136e   :  { %v3650_v23 = vadd.f32 1e-05, %v3608_v9  ;;  %v5312_v13 = vpop.f32.mrb[68].mxu0 }
0x136f   :  { %5775 = vrsqrt.f32 %v3651_v60  ;;  %v3593_v17 = vmul.f32 0.03125, %v5312_v13  ;;  %v3460_v52 = vpop.f32.mrb[69].mxu0 }
0x1370   :  { %5777 = vrsqrt.f32 %v3650_v23  ;;  %v3592_v27 = vmul.f32 0.03125, %v3460_v52  ;;  %v5329_v22 = vpop.f32.mrb[104].mxu1 }
0x1371   :  { %v5772_v45 = vpop.eup %5771  ;;  %v3605_v30 = vmul.f32 %v3593_v17, %v3593_v17  ;;  %v3599_v36 = vmul.f32 0.03125, %v5329_v22  ;;  %v3579_v11 = vpop.f32.mrb[105].mxu1  ;;  %v5665_v22 = vld [vmem:[%s7373_s3 + $0xb0] sm:$0xff]  }
0x1372   :  { %v5774_v18 = vpop.eup %5773  ;;  %v3604_v19 = vmul.f32 %v3592_v27, %v3592_v27  ;;  %v3598_v14 = vmul.f32 0.03125, %v3579_v11  ;;  %3667 = vperm.xlu1 %5559, %v5772_v45   ;;  %v5666_v45 = vld [vmem:[%s7373_s3 + $0xb8] sm:$0xff]   ;;  %v5669_v11 = vld [vmem:[%s7373_s3 + $0xd0] sm:$0xff]  }
0x1373   :  { %v3611_v63 = vsub.f32 %v3599_v36, %v3605_v30  ;;  %3662 = vperm.xlu0 %5558, %v5774_v18   ;;  %v5667_v30 = vld [vmem:[%s7373_s3 + $0xc0] sm:$0xff]   ;;  %v5668_v36 = vld [vmem:[%s7373_s3 + $0xc8] sm:$0xff]   ;;  %v5670_v18 = vld [vmem:[%s7373_s3 + $0xd8] sm:$0xff]  }
0x1374   :  { %v3610_v34 = vsub.f32 %v3598_v14, %v3604_v19  ;;  %v5831_v19 = vmov 0.0|0.0   ;;  %v4521_v14 = vld [vmem:[%s7374_s4 + $0xe] ss:$0 sm:$0xff] }
0x1375   :  { %v3653_v8 = vadd.f32 1e-05, %v3611_v63  ;;  %5508 = vmatprep.subr.bf16.mxu0 %v5831_v19 }
0x1376   :  { %v3652_v12 = vadd.f32 1e-05, %v3610_v34  ;;  %3629 = vperm.xlu1 %5559, %v3591_v29  }
0x1377   :  { %5779 = vrsqrt.f32 %v3653_v8  ;;  %3624 = vperm.xlu0 %5558, %v3590_v7  }
0x1378   :  { %5781 = vrsqrt.f32 %v3652_v12 }
0x1379   :  { %v5776_v56 = vpop.eup %5775 }
0x137a   :  { %v5778_v4 = vpop.eup %5777  ;;  %3677 = vperm.xlu1 %5559, %v5776_v56  }
0x137b   :  { %3672 = vperm.xlu0 %5558, %v5778_v4  }
0x137e   :  { %3639 = vperm.xlu1 %5559, %v3593_v17  }
0x137f   :  { %3634 = vperm.xlu0 %5558, %v3592_v27  }
0x1381   :  { %v5780_v16 = vpop.eup %5779 }
0x1382   :  { %v5782_v41 = vpop.eup %5781  ;;  %3687 = vperm.xlu1 %5559, %v5780_v16  }
0x1383   :  { %3682 = vperm.xlu0 %5558, %v5782_v41  }
0x13e0   :  { %v3620_v51 = vpop.permute.xlu1 %3619 }
0x13e1   :  { %v3615_v32 = vpop.permute.xlu0 %3614  ;;  %v3643_v47 = vsub.f32 %v7190_v2, %v3620_v51 }
0x13e2   :  { %v3642_v0 = vsub.f32 %v7187_v25, %v3615_v32 }
0x13f1   :  { %v3668_v62 = vpop.permute.xlu1 %3667 }
0x13f2   :  { %v3691_v53 = vmul.f32 %v3668_v62, %v3643_v47  ;;  %v3663_v44 = vpop.permute.xlu0 %3662 }
0x13f3   :  { %v3690_v54 = vmul.f32 %v3663_v44, %v3642_v0 }
0x13f4   :  { %v3701_v35 = vmul.f32 %v4519_v50, %v3691_v53 }
0x13f5   :  { %v3700_v42 = vmul.f32 %v4519_v50, %v3690_v54  ;;  %v3630_v5 = vpop.permute.xlu1 %3629 }
0x13f6   :  { %v3711_v55 = vadd.f32 %v4520_v39, %v3701_v35  ;;  %v3625_v26 = vpop.permute.xlu0 %3624  ;;  %v3645_v37 = vsub.f32 %v7208_v3, %v3630_v5 }
0x13f7   :  { %v3710_v2 = vadd.f32 %v4520_v39, %v3700_v42  ;;  %v3644_v1 = vsub.f32 %v7203_v61, %v3625_v26 }
0x13f9   :  { %v3716_v15 = vpack.c.bf16 %v3711_v55, %v3710_v2  ;;  %v3678_v28 = vpop.permute.xlu1 %3677 }
0x13fa   :  { %v3693_v59 = vmul.f32 %v3678_v28, %v3645_v37  ;;  %v3673_v21 = vpop.permute.xlu0 %3672 }
0x13fb   :  { %v3692_v31 = vmul.f32 %v3673_v21, %v3644_v1  ;;  %5335 = vmatmul.mubr.msk.bf16.vlgmr.msra.gmra.mrb[72].mxu0 %vm306_vm2, %v3716_v15 }
0x13fc   :  { %v3703_v29 = vmul.f32 %v4519_v50, %v3693_v59  ;;  %5338 = vmatprep.mubr.msk.bf16.mxu0 %vm5824_vm0, %v7471_v49  ;;  %5509 = vmatpush3.bf16.msra.mxu0 %v7431_v24 }
0x13fd   :  { %v3702_v58 = vmul.f32 %v4519_v50, %v3692_v31  ;;  %v3640_v7 = vpop.permute.xlu1 %3639  ;;  %5510 = vmatprep.subr.bf16.mxu0 %v5831_v19 }
0x13fe   :  { %v3713_v40 = vadd.f32 %v4520_v39, %v3703_v29  ;;  %v3635_v48 = vpop.permute.xlu0 %3634  ;;  %v3647_v6 = vsub.f32 %v7224_v10, %v3640_v7  ;;  %v5664_v10 = vld [vmem:[%s7373_s3 + $0xa8] sm:$0xff]  }
0x13ff   :  { %v3712_v46 = vadd.f32 %v4520_v39, %v3702_v58  ;;  %v3646_v61 = vsub.f32 %v7219_v20, %v3635_v48  ;;  %v5663_v20 = vld [vmem:[%s7373_s3 + $0xa0] sm:$0xff]  }
0x1400   :  { %5347 = vmatpush3.bf16.msra.mxu1 %v5663_v20  ;;  %5511 = vmatpush3.bf16.msra.mxu0 %v7431_v24 }
0x1401   :  { %v3717_v43 = vpack.c.bf16 %v3713_v40, %v3712_v46  ;;  %v3688_v57 = vpop.permute.xlu1 %3687  ;;  %5348 = vmatprep.subr.bf16.mxu1 %v7471_v49  ;;  %5512 = vmatprep.subr.bf16.mxu0 %v5831_v19 }
0x1402   :  { %v3695_v38 = vmul.f32 %v3688_v57, %v3647_v6  ;;  %v3683_v9 = vpop.permute.xlu0 %3682 }
0x1403   :  { %v3694_v60 = vmul.f32 %v3683_v9, %v3646_v61  ;;  %5339 = vmatmul.mubr.msk.bf16.gmra.mrb[76].mxu0 %vm306_vm2, %v3717_v43 }
0x1404   :  { %v3705_v23 = vmul.f32 %v4519_v50, %v3695_v38  ;;  %5342 = vmatprep.mubr.msk.bf16.mxu0 %vm5824_vm0, %v7471_v49  ;;  %5349 = vmatpush3.bf16.msra.mxu1 %v5664_v10 }
0x1405   :  { %v3704_v13 = vmul.f32 %v4519_v50, %v3694_v60  ;;  %5350 = vmatprep.subr.bf16.mxu1 %v7471_v49 }
0x1406   :  { %v3715_v17 = vadd.f32 %v4520_v39, %v3705_v23 }
0x1407   :  { %v3714_v52 = vadd.f32 %v4520_v39, %v3704_v13 }
0x1408   :  { %5351 = vmatpush3.bf16.msra.mxu1 %v5665_v22 }
0x1409   :  { %v3718_v27 = vpack.c.bf16 %v3715_v17, %v3714_v52  ;;  %5352 = vmatprep.subr.bf16.mxu1 %v7471_v49 }
0x140b   :  { %5343 = vmatmul.mubr.msk.bf16.gmra.mrb[80].mxu0 %vm306_vm2, %v3718_v27 }
0x140c   :  { %5382 = vmatprep.mubr.msk.f32.mxu0 %vm5824_vm0, %v7471_v49  ;;  %5353 = vmatpush3.bf16.msra.mxu1 %v5666_v45 }
0x140d   :  { %5354 = vmatprep.subr.bf16.mxu1 %v7471_v49 }
0x1410   :  { %5355 = vmatpush3.bf16.msra.mxu1 %v5667_v30 }
0x1411   :  { %5356 = vmatprep.subr.bf16.mxu1 %v7471_v49 }
0x1414   :  { %5357 = vmatpush3.bf16.msra.mxu1 %v5668_v36 }
0x1415   :  { %5358 = vmatprep.subr.bf16.mxu1 %v7471_v49 }
0x1418   :  { %5359 = vmatpush3.bf16.msra.mxu1 %v5669_v11 }
0x1419   :  { %5360 = vmatprep.subr.bf16.mxu1 %v7471_v49 }
0x141c   :  { %5361 = vmatpush3.bf16.msra.mxu1 %v5670_v18 }
0x14ce   :  { %v3778_v63 = vpop.f32.mrb[72].mxu0 }
0x14cf   :  { %v3779_v34 = vadd.f32 %v4521_v14, %v3778_v63  ;;  %v5336_v8 = vpop.f32.mrb[73].mxu0 }
0x14d0   :  { %v3781_v12 = vpop.f32.mrb[74].mxu0 }
0x14d1   :  { %v3807_v56 = vmul.f32 0.044715, %v3779_v34  ;;  %v3782_v33 = vadd.f32 %v4521_v14, %v3781_v12  ;;  %v5337_v4 = vpop.f32.mrb[75].mxu0  ;;  %v3801_v52 = vmul.f32 0.5, %v3779_v34 }
0x14d3   :  { %v3813_v16 = vmul.f32 %v3807_v56, %v3779_v34  ;;  %v3808_v41 = vmul.f32 0.044715, %v3782_v33  ;;  %v3802_v27 = vmul.f32 0.5, %v3782_v33 }
0x14d5   :  { %v3819_v51 = vmul.f32 %v3813_v16, %v3779_v34  ;;  %v3814_v32 = vmul.f32 %v3808_v41, %v3782_v33 }
0x14d6   :  { %v3786_v47 = vpop.f32.mrb[76].mxu0 }
0x14d7   :  { %v3825_v0 = vadd.f32 %v3819_v51, %v3779_v34  ;;  %v3820_v50 = vmul.f32 %v3814_v32, %v3782_v33  ;;  %v3787_v62 = vadd.f32 %v4521_v14, %v3786_v47  ;;  %v5340_v53 = vpop.f32.mrb[77].mxu0 }
0x14d8   :  { %v3789_v44 = vpop.f32.mrb[78].mxu0 }
0x14d9   :  { %v3831_v39 = vmul.f32 0.7978846, %v3825_v0  ;;  %v3826_v54 = vadd.f32 %v3820_v50, %v3782_v33  ;;  %v3809_v35 = vmul.f32 0.044715, %v3787_v62  ;;  %v3790_v42 = vadd.f32 %v4521_v14, %v3789_v44  ;;  %v5341_v5 = vpop.f32.mrb[79].mxu0 }
0x14da   :  { %v3803_v8 = vmul.f32 0.5, %v3787_v62 }
0x14db   :  { %5783 = vtanh.f32 %v3831_v39  ;;  %v3832_v55 = vmul.f32 0.7978846, %v3826_v54  ;;  %v3815_v26 = vmul.f32 %v3809_v35, %v3787_v62  ;;  %v3810_v2 = vmul.f32 0.044715, %v3790_v42 }
0x14dc   :  { %v3804_v12 = vmul.f32 0.5, %v3790_v42 }
0x14dd   :  { %5785 = vtanh.f32 %v3832_v55  ;;  %v3821_v37 = vmul.f32 %v3815_v26, %v3787_v62  ;;  %v3816_v15 = vmul.f32 %v3810_v2, %v3790_v42 }
0x14de   :  { %v3794_v1 = vpop.f32.mrb[80].mxu0 }
0x14df   :  { %v3822_v28 = vmul.f32 %v3816_v15, %v3790_v42  ;;  %v3795_v59 = vadd.f32 %v4521_v14, %v3794_v1  ;;  %v5344_v21 = vpop.f32.mrb[81].mxu0  ;;  %v3827_v31 = vadd.f32 %v3821_v37, %v3787_v62 }
0x14e0   :  { %v3797_v29 = vpop.f32.mrb[82].mxu0 }
0x14e1   :  { %v3811_v58 = vmul.f32 0.044715, %v3795_v59  ;;  %v3798_v7 = vadd.f32 %v4521_v14, %v3797_v29  ;;  %v5345_v40 = vpop.f32.mrb[83].mxu0  ;;  %v3828_v48 = vadd.f32 %v3822_v28, %v3790_v42  ;;  %v3833_v46 = vmul.f32 0.7978846, %v3827_v31 }
0x14e2   :  { %v3805_v32 = vmul.f32 0.5, %v3795_v59  ;;  %v4527_v42 = vld [vmem:[%s7374_s4 + $0xf] ss:$0 sm:$0xff] }
0x14e3   :  { %v3817_v6 = vmul.f32 %v3811_v58, %v3795_v59  ;;  %v3812_v43 = vmul.f32 0.044715, %v3798_v7  ;;  %v3834_v61 = vmul.f32 0.7978846, %v3828_v48  ;;  %5787 = vtanh.f32 %v3833_v46 }
0x14e4   :  { %v3806_v47 = vmul.f32 0.5, %v3798_v7 }
0x14e5   :  { %v5784_v57 = vpop.eup %5783  ;;  %v3823_v38 = vmul.f32 %v3817_v6, %v3795_v59  ;;  %v3818_v9 = vmul.f32 %v3812_v43, %v3798_v7  ;;  %5789 = vtanh.f32 %v3834_v61 }
0x14e6   :  { %v3843_v60 = vadd.f32 1.0, %v5784_v57 }
0x14e7   :  { %v5786_v23 = vpop.eup %5785  ;;  %v3824_v13 = vmul.f32 %v3818_v9, %v3798_v7  ;;  %v3829_v17 = vadd.f32 %v3823_v38, %v3795_v59 }
0x14e8   :  { %v3844_v20 = vadd.f32 1.0, %v5786_v23  ;;  %v3849_v45 = vmul.f32 %v3843_v60, %v3801_v52  ;;  %v5671_v23 = vld [vmem:[%s7375_s5] sm:$0xff]  }
0x14e9   :  { %v3830_v10 = vadd.f32 %v3824_v13, %v3798_v7  ;;  %v3835_v22 = vmul.f32 0.7978846, %v3829_v17  ;;  %v5672_v13 = vld [vmem:[%s7375_s5 + $0x8] sm:$0xff]  }
0x14ea   :  { %v3850_v30 = vmul.f32 %v3844_v20, %v3802_v27  ;;  %v4538_v20 = vld [vmem:[%s7376_s6] ss:$0 sm:$0xff] }
0x14eb   :  { %v3836_v36 = vmul.f32 0.7978846, %v3830_v10  ;;  %5791 = vtanh.f32 %v3835_v22 }
0x14ec   :  { %v3855_v11 = vpack.c.bf16 %v3850_v30, %v3849_v45 }
0x14ed   :  { %v5788_v18 = vpop.eup %5787  ;;  %5793 = vtanh.f32 %v3836_v36  ;;  %v4539_v36 = vld [vmem:[%s7376_s6 + $0x1] ss:$0 sm:$0xff] }
0x14ee   :  { %5363 = vmatmul.mubr.bf16.vlgmr.msra.gmra.mrb[108].mxu1 %v3855_v11  ;;  %v3845_v14 = vadd.f32 1.0, %v5788_v18 }
0x14ef   :  { %v5790_v63 = vpop.eup %5789  ;;  %5366 = vmatprep.mubr.msk.bf16.mxu1 %vm5824_vm0, %v7471_v49 }
0x14f0   :  { %v3846_v34 = vadd.f32 1.0, %v5790_v63  ;;  %v3851_v56 = vmul.f32 %v3845_v14, %v3803_v8 }
0x14f2   :  { %v3852_v33 = vmul.f32 %v3846_v34, %v3804_v12 }
0x14f4   :  { %v3856_v4 = vpack.c.bf16 %v3852_v33, %v3851_v56 }
0x14f5   :  { %v5792_v16 = vpop.eup %5791 }
0x14f6   :  { %5367 = vmatmul.mubr.bf16.gmra.mrb[112].mxu1 %v3856_v4  ;;  %v3847_v41 = vadd.f32 1.0, %v5792_v16 }
0x14f7   :  { %v5794_v51 = vpop.eup %5793  ;;  %5370 = vmatprep.mubr.msk.bf16.mxu1 %vm5824_vm0, %v7471_v49 }
0x14f8   :  { %v3848_v0 = vadd.f32 1.0, %v5794_v51  ;;  %v3853_v50 = vmul.f32 %v3847_v41, %v3805_v32  ;;  %v5673_v51 = vld [vmem:[%s7375_s5 + $0x10] sm:$0xff]   ;;  %v5674_v32 = vld [vmem:[%s7375_s5 + $0x18] sm:$0xff]   ;;  %s5832_s5 = smov [#allocation2]  }
0x14f9   :  { %s4304_s8 = sshll.u32 %s5832_s5, 4  ;;  %s4305_s8 = int_to_ptr.vmem [resolvable:$true] %s4304_s8 }
0x14fa   :  { %v3854_v53 = vmul.f32 %v3848_v0, %v3806_v47  ;;  %v4540_v47 = vld [vmem:[%s7376_s6 + $0x2] ss:$0 sm:$0xff]  ;;  %s5799_s9 = scalar_lea.vmem %s4305_s8, 32  ;;  %p5804_p1 = scmp.lt.s32.totalorder %s4305_s8, %s4305_s8 }
0x14fb   :  { %p5800_p0 = scmp.ne.s32.totalorder %s4305_s8, %s5799_s9  ;;  %p5805_p2 = scmp.lt.s32.totalorder %s5799_s9, %s5799_s9 }
0x14fc   :  { %v3857_v44 = vpack.c.bf16 %v3854_v53, %v3853_v50 }
0x14fd   :  { %p5806_p3 = por %p5805_p2, %p5804_p1 }
0x14fe   :  { %5371 = vmatmul.mubr.bf16.gmra.mrb[116].mxu1 %v3857_v44 }
0x14ff   :  { %p5807_p4 = pnand %p5806_p3, %p5800_p0 }
0x15c1   :  { %v3944_v62 = vpop.f32.mrb[108].mxu1 }
0x15c2   :  { %v5364_v39 = vpop.f32.mrb[109].mxu1  ;;  %v3945_v2 = vadd.f32 %v4527_v42, %v3944_v62 }
0x15c3   :  { %v3947_v54 = vpop.f32.mrb[110].mxu1 }
0x15c4   :  { %v5365_v35 = vpop.f32.mrb[111].mxu1  ;;  %v3963_v28 = vadd.f32 %v3945_v2, %v7187_v25 }
0x15c5   :  { %v4544_v35 = vld [vmem:[%s7376_s6 + $0x3] ss:$0 sm:$0xff] }
0x15c6   :  { %v4054_v48 = vmul.f32 %v3963_v28, %v3963_v28 }
0x15c9   :  { %v3951_v5 = vpop.f32.mrb[112].mxu1 }
0x15ca   :  { %v5368_v55 = vpop.f32.mrb[113].mxu1 }
0x15cb   :  { %v3953_v26 = vpop.f32.mrb[114].mxu1 }
0x15cc   :  { %v3954_v37 = vadd.f32 %v4527_v42, %v3953_v26  ;;  %v5369_v15 = vpop.f32.mrb[115].mxu1 }
0x15ce   :  { %v3964_v1 = vadd.f32 %v3954_v37, %v7208_v3 }
0x15d0   :  { %v3979_v59 = vrot.slane %v3964_v1, 7  ;;  %v4055_v31 = vmul.f32 %v3964_v1, %v3964_v1 }
0x15d1   :  { %v3958_v21 = vpop.f32.mrb[116].mxu1 }
0x15d2   :  { %v5372_v29 = vpop.f32.mrb[117].mxu1  ;;  %v3981_v58 = vsel %vm3980_vm9, %v3979_v59, %v3963_v28  ;;  %v4058_v3 = vrot.slane %v4055_v31, 7 }
0x15d3   :  { %v3960_v7 = vpop.f32.mrb[118].mxu1  ;;  %5383 = vmatmul.mubr.msk.f32.vlgmr.msra.gmra.mrb[70].mxu0 %vm306_vm2, %v3981_v58 }
0x15d4   :  { %5513 = vmatpush3.bf16.msra.mxu0 %v7431_v24  ;;  %v5373_v40 = vpop.f32.mrb[119].mxu1  ;;  %5393 = vmatprep.mubr.msk.f32.mxu0 %vm5824_vm0, %v7471_v49  ;;  %v4059_v25 = vsel %vm3980_vm9, %v4058_v3, %v4054_v48 }
0x15d5   :  { %5514 = vmatprep.subr.bf16.mxu0 %v5831_v19 }
0x15d8   :  { %5515 = vmatpush3.bf16.msra.mxu0 %v7431_v24 }
0x15d9   :  { %5396 = vmatprep.subr.bf16.mxu0 %v7471_v49 }
0x15db   :  { %5394 = vmatmul.mubr.msk.f32.vlgmr.msra.gmra.mrb[84].mxu0 %vm306_vm2, %v4059_v25 }
0x15dc   :  { %5400 = vmatprep.mubr.msk.bf16.mxu0 %vm5824_vm0, %v7471_v49  ;;  %5397 = vmatpush3.bf16.msra.mxu0 %v5671_v23 }
0x15dd   :  { %5398 = vmatprep.subr.bf16.mxu0 %v7471_v49 }
0x15e0   :  { %5399 = vmatpush3.bf16.msra.mxu0 %v5672_v13 }
0x15e1   :  { %5404 = vmatprep.subr.bf16.mxu0 %v7471_v49 }
0x16a6   :  { %v4050_v46 = vpop.f32.mrb[70].mxu0 }
0x16a7   :  { %v4132_v6 = vmul.f32 0.03125, %v4050_v46  ;;  %v5384_v43 = vpop.f32.mrb[71].mxu0 }
0x16a9   :  { %4138 = vperm.xlu0 %5558, %v4132_v6   ;;  %v4134_v57 = vmul.f32 %v4132_v6, %v4132_v6 }
0x16ae   :  { %v4128_v61 = vpop.f32.mrb[84].mxu0 }
0x16af   :  { %v4133_v19 = vmul.f32 0.03125, %v4128_v61  ;;  %v5395_v38 = vpop.f32.mrb[85].mxu0 }
0x16b1   :  { %v4135_v9 = vsub.f32 %v4133_v19, %v4134_v57 }
0x16b3   :  { %v4145_v60 = vadd.f32 1e-05, %v4135_v9 }
0x16b5   :  { %5795 = vrsqrt.f32 %v4145_v60 }
0x16bf   :  { %v5796_v24 = vpop.eup %5795 }
0x16c0   :  { %4149 = vperm.xlu1 %5559, %v5796_v24  }
0x1728   :  { %v4139_v17 = vpop.permute.xlu0 %4138 }
0x1729   :  { %v4140_v52 = vrot.slane %v4139_v17, 1  ;;  %v4143_v27 = vsub.f32 %v3963_v28, %v4139_v17 }
0x172b   :  { %v4144_v22 = vsub.f32 %v3964_v1, %v4140_v52 }
0x173f   :  { %v4150_v10 = vpop.permute.xlu1 %4149 }
0x1740   :  { %v4151_v45 = vrot.slane %v4150_v10, 1  ;;  %v4154_v30 = vmul.f32 %v4150_v10, %v4143_v27 }
0x1742   :  { %v4155_v11 = vmul.f32 %v4151_v45, %v4144_v22  ;;  %v4160_v18 = vmul.f32 %v4538_v20, %v4154_v30 }
0x1744   :  { %v4161_v14 = vmul.f32 %v4538_v20, %v4155_v11  ;;  %v4166_v63 = vadd.f32 %v4539_v36, %v4160_v18 }
0x1746   :  { %v4167_v8 = vadd.f32 %v4539_v36, %v4161_v14  ;;  %v4168_v12 = vpack.c.bf16 %v4166_v63, %v4166_v63 }
0x1748   :  { %v4169_v34 = vpack.c.bf16 %v4167_v8, %v4167_v8  ;;  %v4176_v33 = vunpack.c.l.b16 %v4168_v12 }
0x174a   :  { %v4177_v56 = vunpack.c.l.b16 %v4169_v34 }
0x174c   :  { %v4178_v4 = vrot.slane %v4177_v56, 7 }
0x174e   :  { %v4179_v16 = vsel %vm3980_vm9, %v4178_v4, %v4176_v33 }
0x174f   :  { %v4180_v41 = vpack.c.b16 %v4179_v16, %v4179_v16 }
0x1751   :  { %5401 = vmatmul.mubr.msk.bf16.vlgmr.msra.gmra.mrb[88].mxu0 %vm306_vm2, %v4180_v41 }
0x1752   :  { %5408 = vmatprep.mubr.msk.bf16.mxu0 %vm5824_vm0, %v7471_v49  ;;  %5405 = vmatpush3.bf16.msra.mxu0 %v5673_v51 }
0x1753   :  { %5406 = vmatprep.subr.bf16.mxu0 %v7471_v49 }
0x1756   :  { %5407 = vmatpush3.bf16.msra.mxu0 %v5674_v32 }
0x1824   :  { %v4230_v0 = vpop.f32.mrb[88].mxu0 }
0x1825   :  { %v4231_v50 = vadd.f32 %v4540_v47, %v4230_v0  ;;  %v5402_v53 = vpop.f32.mrb[89].mxu0 }
0x1826   :  { %v4233_v44 = vpop.f32.mrb[90].mxu0 }
0x1827   :  { %5797 = vtanh.f32 %v4231_v50  ;;  %v5403_v62 = vpop.f32.mrb[91].mxu0 }
0x1831   :  { %v5798_v39 = vpop.eup %5797 }
0x1832   :  { %v4237_v54 = vpack.c.bf16 %v5798_v39, %v5798_v39 }
0x1834   :  { %5409 = vmatmul.mubr.msk.bf16.vlgmr.msra.gmra.mrb[92].mxu0 %vm306_vm2, %v4237_v54 }
0x1907   :  { %v4291_v49 = vpop.f32.mrb[92].mxu0 }
0x1908   :  { %v4292_v42 = vadd.f32 %v4544_v35, %v4291_v49  ;;  %v5410_v5 = vpop.f32.mrb[93].mxu0 }
0x1909   :  { %v4294_v55 = vpop.f32.mrb[94].mxu0 }
0x190a   :  { %4297 = vst [vmem:[#allocation2] sm:$0x3] %v4292_v42  ;;  %v5411_v26 = vpop.f32.mrb[95].mxu0 }
0x190b   :  { %5810 = shalt.err (!%p5807_p4)
}
0x190c   :  { %s5811_s6 = scalar_lea.hbm %s7377_s7, 32 }
0x190d   :  { %p5812_p5 = scmp.ne.s32.totalorder %s7377_s7, %s5811_s6  ;;  %p5815_p6 = scmp.lt.u32.totalorder %s5811_s6, %s7377_s7 }
0x190f   :  { %p5817_p7 = pnand %p5815_p6, %p5812_p5 }
0x1911   :  { %5820 = shalt.err (!%p5817_p7)
}
0x1912   :  { %4307 = dma.vmem_to_hbm [thread:$0]  %s4305_s8, 32, %s7377_s7, [#allocation3]  }
0x1913   :  { %5821 = dma.done.wait [#allocation3], 32  }
0x1914   :  { %5822 = vsyncadd [#allocation3], 4294967264 }
0x1915   :  { %4311 = vsyncpa [#allocation3], 1 }

</bundles_post_ra>
